<compile_context>
chip_gen: v6e
topology: v6e:2x2x1
jax: 0.10.0
libtpu: 0.0.40
codegen_flags: <defaults>
</compile_context>

<pallas_src>
import jax
import jax.numpy as jnp
from jax import lax
from jax.experimental import pallas as pl
from jax.experimental.pallas import tpu as pltpu

INPUT = 28      # GRU input size
HIDDEN = 128    # GRU hidden size
NCLASS = 10     # fc output size
SEQ = 28        # sequence length (x.view(-1, 28, 28))


def _gru_kernel(x_ref, wih_ref, whh_ref, bg_ref, bhn_ref, h_out_ref, gi_ref):
    """Whole GRU (all 28 timesteps) in one invocation.

    x_ref    : (T*B, I)    time-major flattened input
    wih_ref  : (I, 3H)     W_ih^T
    whh_ref  : (H, 3H)     W_hh^T
    bg_ref   : (1, 3H)     [b_ir+b_hr, b_iz+b_hz, b_in]  (fused biases)
    bhn_ref  : (1, H)      b_hn (must stay inside r*(...))
    h_out_ref: (B, H)      last hidden state (lane-dense, 128 wide)
    gi_ref   : (T*B, 3H)   VMEM scratch for the hoisted input projection
    """
    H = HIDDEN
    B = h_out_ref.shape[0]
    T = x_ref.shape[0] // B

    # Hoisted input projection for ALL timesteps: one wide MXU matmul (off the
    # serial chain, f32), biases fused, result parked in VMEM scratch so it does
    # not occupy vregs across the recurrence.
    gi_ref[...] = (
        jnp.dot(x_ref[...], wih_ref[...], preferred_element_type=jnp.float32)
        + bg_ref[...]
    )

    # Serial-chain matmul operands in bf16 (f32 accumulation); cast W_hh once.
    whh_bf = whh_ref[...].astype(jnp.bfloat16)
    bhn = jnp.broadcast_to(bhn_ref[...], (B, H))   # hoisted broadcast (no CSE in loop)

    def step(t, h):
        start = pl.multiple_of(t * B, B)           # B == 8 -> sublane-aligned slice
        gi = gi_ref[pl.ds(start, B), :]            # (B, 3H) f32
        gh = jnp.dot(h.astype(jnp.bfloat16), whh_bf,
                     preferred_element_type=jnp.float32)
        # Fused r|z sigmoid on the contiguous (B, 2H) slice; gate math stays f32.
        rz = jax.nn.sigmoid(gi[:, :2 * H] + gh[:, :2 * H])
        r = rz[:, :H]
        z = rz[:, H:]
        n = jnp.tanh(gi[:, 2 * H:] + r * (gh[:, 2 * H:] + bhn))
        return n + z * (h - n)                     # == (1 - z) * n + z * h

    h0 = jnp.zeros((B, H), jnp.float32)
    h_out_ref[...] = lax.fori_loop(0, T, step, h0, unroll=True)


def simple_gru_forward(x, params):
    """Matches SimpleGRU.forward: x.view(-1,28,28) -> GRU -> fc(out[:, -1, :])."""
    x = x.reshape(-1, SEQ, INPUT).astype(jnp.float32)       # (B, T, I)
    B = x.shape[0]
    H = HIDDEN

    # Fill f32 sublanes: pad batch to a multiple of 8 (padded rows discarded later).
    B_pad = max(8, ((B + 7) // 8) * 8)
    if B_pad != B:
        x = jnp.pad(x, ((0, B_pad - B), (0, 0), (0, 0)))

    # Time-major, flattened to (T*B, I) so per-step slices are contiguous rows.
    x_tm = jnp.transpose(x, (1, 0, 2)).reshape(SEQ * B_pad, INPUT)

    w_ih_t = params["w_ih"].T                                # (I, 3H)
    w_hh_t = params["w_hh"].T                                # (H, 3H)
    b_ih = params["b_ih"]
    b_hh = params["b_hh"]
    # r/z gate biases fuse fully; n-gate keeps b_hn separate (inside r*(...)).
    b_gates = jnp.concatenate(
        [b_ih[:2 * H] + b_hh[:2 * H], b_ih[2 * H:]]).reshape(1, 3 * H)
    b_hn = b_hh[2 * H:].reshape(1, H)

    vmem = pl.BlockSpec(memory_space=pltpu.MemorySpace.VMEM)
    h_last = pl.pallas_call(
        _gru_kernel,
        out_shape=jax.ShapeDtypeStruct((B_pad, H), jnp.float32),
        in_specs=[vmem, vmem, vmem, vmem, vmem],
        out_specs=vmem,
        scratch_shapes=[pltpu.VMEM((SEQ * B_pad, 3 * HIDDEN), jnp.float32)],
    )(x_tm, w_ih_t, w_hh_t, b_gates, b_hn)

    h_last = h_last[:B]
    # fc head (128 -> 10) in plain JAX: keeps the kernel output lane-dense and the
    # matmul is trivial.  Semantics identical to fc(out[:, -1, :]).
    return h_last @ params["w_fc"].T + params["b_fc"]


def reference_forward(x, params):
    """Pure-JAX f32 reference (PyTorch GRU semantics) for validation."""
    x = x.reshape(-1, SEQ, INPUT).astype(jnp.float32)
    B = x.shape[0]
    H = HIDDEN

    def step(h, x_t):
        gi = x_t @ params["w_ih"].T + params["b_ih"]
        gh = h @ params["w_hh"].T + params["b_hh"]
        i_r, i_z, i_n = gi[:, :H], gi[:, H:2 * H], gi[:, 2 * H:]
        h_r, h_z, h_n = gh[:, :H], gh[:, H:2 * H], gh[:, 2 * H:]
        r = jax.nn.sigmoid(i_r + h_r)
        z = jax.nn.sigmoid(i_z + h_z)
        n = jnp.tanh(i_n + r * h_n)
        h_new = (1.0 - z) * n + z * h
        return h_new, None

    h0 = jnp.zeros((B, H), jnp.float32)
    h_last, _ = lax.scan(step, h0, jnp.transpose(x, (1, 0, 2)))
    return h_last @ params["w_fc"].T + params["b_fc"]


def init_params(key):
    ks = jax.random.split(key, 6)
    s = 0.1
    return {
        "w_ih": (s * jax.random.normal(ks[0], (3 * HIDDEN, INPUT))).astype(jnp.float32),
        "w_hh": (s * jax.random.normal(ks[1], (3 * HIDDEN, HIDDEN))).astype(jnp.float32),
        "b_ih": (s * jax.random.normal(ks[2], (3 * HIDDEN,))).astype(jnp.float32),
        "b_hh": (s * jax.random.normal(ks[3], (3 * HIDDEN,))).astype(jnp.float32),
        "w_fc": (s * jax.random.normal(ks[4], (NCLASS, HIDDEN))).astype(jnp.float32),
        "b_fc": (s * jax.random.normal(ks[5], (NCLASS,))).astype(jnp.float32),
    }


if __name__ == "__main__":
    key = jax.random.PRNGKey(0)
    kx, kp = jax.random.split(key)
    params = init_params(kp)
    # MNIST-style input (NCHW); forward does x.view(-1, 28, 28)
    x = jax.random.normal(kx, (2, 1, 28, 28), dtype=jnp.float32)

    out = simple_gru_forward(x, params)
    out = jax.block_until_ready(out)

    ref = jax.block_until_ready(reference_forward(x, params))
    assert out.shape == (2, NCLASS)
    # Tolerance 2e-3 (vs f32 reference): the recurrent h @ W_hh matmul now uses
    # bf16 MXU operands with f32 accumulation.
    assert jnp.allclose(out, ref, atol=2e-3, rtol=2e-3), "mismatch vs reference"

    print("KERNEL_OK")
</pallas_src>

<mosaic_0001>
module attributes {stable_mosaic.version = 11 : i64} {
  func.func @_gru_kernel(%arg0: memref<224x28xf32, #tpu.memory_space<vmem>>, %arg1: memref<28x384xf32, #tpu.memory_space<vmem>>, %arg2: memref<128x384xf32, #tpu.memory_space<vmem>>, %arg3: memref<1x384xf32, #tpu.memory_space<vmem>>, %arg4: memref<1x128xf32, #tpu.memory_space<vmem>>, %arg5: memref<8x128xf32, #tpu.memory_space<vmem>>, %arg6: memref<224x384xf32, #tpu.memory_space<vmem>>) attributes {dimension_semantics = [], scalar_prefetch = 0 : i64, scratch_operands = 1 : i64, tpu.core_type = #tpu.core_type<tc>} {
    %c0 = arith.constant 0 : index
    %c0_0 = arith.constant 0 : index
    %0 = vector.load %arg0[%c0, %c0_0] : memref<224x28xf32, #tpu.memory_space<vmem>>, vector<224x28xf32>
    %c0_1 = arith.constant 0 : index
    %c0_2 = arith.constant 0 : index
    %1 = vector.load %arg1[%c0_1, %c0_2] : memref<28x384xf32, #tpu.memory_space<vmem>>, vector<28x384xf32>
    %cst = arith.constant dense<0.000000e+00> : vector<224x384xf32>
    %2 = tpu.matmul %0, %1, %cst {dimension_numbers = #tpu.dot_dimension_numbers<[1], [0], [0], [1], [0, 0, 1, 1], [], []>} : vector<224x28xf32>, vector<28x384xf32>, vector<224x384xf32> -> vector<224x384xf32>
    %c0_3 = arith.constant 0 : index
    %c0_4 = arith.constant 0 : index
    %3 = vector.load %arg3[%c0_3, %c0_4] : memref<1x384xf32, #tpu.memory_space<vmem>>, vector<1x384xf32>
    %4 = vector.broadcast %3 : vector<1x384xf32> to vector<224x384xf32>
    %5 = arith.addf %2, %4 : vector<224x384xf32>
    %c0_5 = arith.constant 0 : index
    %c0_6 = arith.constant 0 : index
    %6 = vector.load %arg6[%c0_5, %c0_6] : memref<224x384xf32, #tpu.memory_space<vmem>>, vector<224x384xf32>
    tpu.vector_store %arg6[%c0_5, %c0_6], %5 {strides = array<i32>} : memref<224x384xf32, #tpu.memory_space<vmem>>, vector<224x384xf32>,
    %c0_7 = arith.constant 0 : index
    %c0_8 = arith.constant 0 : index
    %7 = vector.load %arg2[%c0_7, %c0_8] : memref<128x384xf32, #tpu.memory_space<vmem>>, vector<128x384xf32>
    %8 = arith.truncf %7 : vector<128x384xf32> to vector<128x384xbf16>
    %c0_9 = arith.constant 0 : index
    %c0_10 = arith.constant 0 : index
    %9 = vector.load %arg4[%c0_9, %c0_10] : memref<1x128xf32, #tpu.memory_space<vmem>>, vector<1x128xf32>
    %10 = vector.shape_cast %9 : vector<1x128xf32> to vector<1x128xf32>
    %11 = vector.broadcast %10 : vector<1x128xf32> to vector<8x128xf32>
    %cst_11 = arith.constant 0.000000e+00 : f32
    %12 = vector.broadcast %cst_11 : f32 to vector<8x128xf32>
    %c0_i32 = arith.constant 0 : i32
    %c8_i32 = arith.constant 8 : i32
    %13 = arith.muli %c0_i32, %c8_i32 : i32
    %14 = tpu.assume_multiple %13, 8 : i32
    %15 = arith.index_cast %14 : i32 to index
    %c0_12 = arith.constant 0 : index
    %16 = vector.load %arg6[%15, %c0_12] : memref<224x384xf32, #tpu.memory_space<vmem>>, vector<8x384xf32>
    %17 = arith.truncf %12 : vector<8x128xf32> to vector<8x128xbf16>
    %cst_13 = arith.constant dense<0.000000e+00> : vector<8x384xf32>
    %18 = tpu.matmul %17, %8, %cst_13 {dimension_numbers = #tpu.dot_dimension_numbers<[1], [0], [0], [1], [0, 0, 1, 1], [], []>} : vector<8x128xbf16>, vector<128x384xbf16>, vector<8x384xf32> -> vector<8x384xf32>
    %19 = vector.extract_strided_slice %16 {offsets = [0, 0], sizes = [8, 256], strides = [1, 1]} : vector<8x384xf32> to vector<8x256xf32>
    %20 = vector.extract_strided_slice %18 {offsets = [0, 0], sizes = [8, 256], strides = [1, 1]} : vector<8x384xf32> to vector<8x256xf32>
    %21 = arith.addf %19, %20 : vector<8x256xf32>
    %22 = arith.negf %21 : vector<8x256xf32>
    %23 = math.exp %22 : vector<8x256xf32>
    %cst_14 = arith.constant 1.000000e+00 : f32
    %24 = vector.broadcast %cst_14 : f32 to vector<8x256xf32>
    %25 = arith.addf %24, %23 : vector<8x256xf32>
    %26 = arith.divf %24, %25 : vector<8x256xf32>
    %27 = vector.extract_strided_slice %26 {offsets = [0, 0], sizes = [8, 128], strides = [1, 1]} : vector<8x256xf32> to vector<8x128xf32>
    %28 = vector.extract_strided_slice %26 {offsets = [0, 128], sizes = [8, 128], strides = [1, 1]} : vector<8x256xf32> to vector<8x128xf32>
    %29 = vector.extract_strided_slice %16 {offsets = [0, 256], sizes = [8, 128], strides = [1, 1]} : vector<8x384xf32> to vector<8x128xf32>
    %30 = vector.extract_strided_slice %18 {offsets = [0, 256], sizes = [8, 128], strides = [1, 1]} : vector<8x384xf32> to vector<8x128xf32>
    %31 = arith.addf %30, %11 : vector<8x128xf32>
    %32 = arith.mulf %27, %31 : vector<8x128xf32>
    %33 = arith.addf %29, %32 : vector<8x128xf32>
    %34 = math.tanh %33 : vector<8x128xf32>
    %35 = arith.subf %12, %34 : vector<8x128xf32>
    %36 = arith.mulf %28, %35 : vector<8x128xf32>
    %37 = arith.addf %34, %36 : vector<8x128xf32>
    %c1_i32 = arith.constant 1 : i32
    %c8_i32_15 = arith.constant 8 : i32
    %38 = arith.muli %c1_i32, %c8_i32_15 : i32
    %39 = tpu.assume_multiple %38, 8 : i32
    %40 = arith.index_cast %39 : i32 to index
    %c0_16 = arith.constant 0 : index
    %41 = vector.load %arg6[%40, %c0_16] : memref<224x384xf32, #tpu.memory_space<vmem>>, vector<8x384xf32>
    %42 = arith.truncf %37 : vector<8x128xf32> to vector<8x128xbf16>
    %cst_17 = arith.constant dense<0.000000e+00> : vector<8x384xf32>
    %43 = tpu.matmul %42, %8, %cst_17 {dimension_numbers = #tpu.dot_dimension_numbers<[1], [0], [0], [1], [0, 0, 1, 1], [], []>} : vector<8x128xbf16>, vector<128x384xbf16>, vector<8x384xf32> -> vector<8x384xf32>
    %44 = vector.extract_strided_slice %41 {offsets = [0, 0], sizes = [8, 256], strides = [1, 1]} : vector<8x384xf32> to vector<8x256xf32>
    %45 = vector.extract_strided_slice %43 {offsets = [0, 0], sizes = [8, 256], strides = [1, 1]} : vector<8x384xf32> to vector<8x256xf32>
    %46 = arith.addf %44, %45 : vector<8x256xf32>
    %47 = arith.negf %46 : vector<8x256xf32>
    %48 = math.exp %47 : vector<8x256xf32>
    %cst_18 = arith.constant 1.000000e+00 : f32
    %49 = vector.broadcast %cst_18 : f32 to vector<8x256xf32>
    %50 = arith.addf %49, %48 : vector<8x256xf32>
    %51 = arith.divf %49, %50 : vector<8x256xf32>
    %52 = vector.extract_strided_slice %51 {offsets = [0, 0], sizes = [8, 128], strides = [1, 1]} : vector<8x256xf32> to vector<8x128xf32>
    %53 = vector.extract_strided_slice %51 {offsets = [0, 128], sizes = [8, 128], strides = [1, 1]} : vector<8x256xf32> to vector<8x128xf32>
    %54 = vector.extract_strided_slice %41 {offsets = [0, 256], sizes = [8, 128], strides = [1, 1]} : vector<8x384xf32> to vector<8x128xf32>
    %55 = vector.extract_strided_slice %43 {offsets = [0, 256], sizes = [8, 128], strides = [1, 1]} : vector<8x384xf32> to vector<8x128xf32>
    %56 = arith.addf %55, %11 : vector<8x128xf32>
    %57 = arith.mulf %52, %56 : vector<8x128xf32>
    %58 = arith.addf %54, %57 : vector<8x128xf32>
    %59 = math.tanh %58 : vector<8x128xf32>
    %60 = arith.subf %37, %59 : vector<8x128xf32>
    %61 = arith.mulf %53, %60 : vector<8x128xf32>
    %62 = arith.addf %59, %61 : vector<8x128xf32>
    %c2_i32 = arith.constant 2 : i32
    %c8_i32_19 = arith.constant 8 : i32
    %63 = arith.muli %c2_i32, %c8_i32_19 : i32
    %64 = tpu.assume_multiple %63, 8 : i32
    %65 = arith.index_cast %64 : i32 to index
    %c0_20 = arith.constant 0 : index
    %66 = vector.load %arg6[%65, %c0_20] : memref<224x384xf32, #tpu.memory_space<vmem>>, vector<8x384xf32>
    %67 = arith.truncf %62 : vector<8x128xf32> to vector<8x128xbf16>
    %cst_21 = arith.constant dense<0.000000e+00> : vector<8x384xf32>
    %68 = tpu.matmul %67, %8, %cst_21 {dimension_numbers = #tpu.dot_dimension_numbers<[1], [0], [0], [1], [0, 0, 1, 1], [], []>} : vector<8x128xbf16>, vector<128x384xbf16>, vector<8x384xf32> -> vector<8x384xf32>
    %69 = vector.extract_strided_slice %66 {offsets = [0, 0], sizes = [8, 256], strides = [1, 1]} : vector<8x384xf32> to vector<8x256xf32>
    %70 = vector.extract_strided_slice %68 {offsets = [0, 0], sizes = [8, 256], strides = [1, 1]} : vector<8x384xf32> to vector<8x256xf32>
    %71 = arith.addf %69, %70 : vector<8x256xf32>
    %72 = arith.negf %71 : vector<8x256xf32>
    %73 = math.exp %72 : vector<8x256xf32>
    %cst_22 = arith.constant 1.000000e+00 : f32
    %74 = vector.broadcast %cst_22 : f32 to vector<8x256xf32>
    %75 = arith.addf %74, %73 : vector<8x256xf32>
    %76 = arith.divf %74, %75 : vector<8x256xf32>
    %77 = vector.extract_strided_slice %76 {offsets = [0, 0], sizes = [8, 128], strides = [1, 1]} : vector<8x256xf32> to vector<8x128xf32>
    %78 = vector.extract_strided_slice %76 {offsets = [0, 128], sizes = [8, 128], strides = [1, 1]} : vector<8x256xf32> to vector<8x128xf32>
    %79 = vector.extract_strided_slice %66 {offsets = [0, 256], sizes = [8, 128], strides = [1, 1]} : vector<8x384xf32> to vector<8x128xf32>
    %80 = vector.extract_strided_slice %68 {offsets = [0, 256], sizes = [8, 128], strides = [1, 1]} : vector<8x384xf32> to vector<8x128xf32>
    %81 = arith.addf %80, %11 : vector<8x128xf32>
    %82 = arith.mulf %77, %81 : vector<8x128xf32>
    %83 = arith.addf %79, %82 : vector<8x128xf32>
    %84 = math.tanh %83 : vector<8x128xf32>
    %85 = arith.subf %62, %84 : vector<8x128xf32>
    %86 = arith.mulf %78, %85 : vector<8x128xf32>
    %87 = arith.addf %84, %86 : vector<8x128xf32>
    %c3_i32 = arith.constant 3 : i32
    %c8_i32_23 = arith.constant 8 : i32
    %88 = arith.muli %c3_i32, %c8_i32_23 : i32
    %89 = tpu.assume_multiple %88, 8 : i32
    %90 = arith.index_cast %89 : i32 to index
    %c0_24 = arith.constant 0 : index
    %91 = vector.load %arg6[%90, %c0_24] : memref<224x384xf32, #tpu.memory_space<vmem>>, vector<8x384xf32>
    %92 = arith.truncf %87 : vector<8x128xf32> to vector<8x128xbf16>
    %cst_25 = arith.constant dense<0.000000e+00> : vector<8x384xf32>
    %93 = tpu.matmul %92, %8, %cst_25 {dimension_numbers = #tpu.dot_dimension_numbers<[1], [0], [0], [1], [0, 0, 1, 1], [], []>} : vector<8x128xbf16>, vector<128x384xbf16>, vector<8x384xf32> -> vector<8x384xf32>
    %94 = vector.extract_strided_slice %91 {offsets = [0, 0], sizes = [8, 256], strides = [1, 1]} : vector<8x384xf32> to vector<8x256xf32>
    %95 = vector.extract_strided_slice %93 {offsets = [0, 0], sizes = [8, 256], strides = [1, 1]} : vector<8x384xf32> to vector<8x256xf32>
    %96 = arith.addf %94, %95 : vector<8x256xf32>
    %97 = arith.negf %96 : vector<8x256xf32>
    %98 = math.exp %97 : vector<8x256xf32>
    %cst_26 = arith.constant 1.000000e+00 : f32
    %99 = vector.broadcast %cst_26 : f32 to vector<8x256xf32>
    %100 = arith.addf %99, %98 : vector<8x256xf32>
    %101 = arith.divf %99, %100 : vector<8x256xf32>
    %102 = vector.extract_strided_slice %101 {offsets = [0, 0], sizes = [8, 128], strides = [1, 1]} : vector<8x256xf32> to vector<8x128xf32>
    %103 = vector.extract_strided_slice %101 {offsets = [0, 128], sizes = [8, 128], strides = [1, 1]} : vector<8x256xf32> to vector<8x128xf32>
    %104 = vector.extract_strided_slice %91 {offsets = [0, 256], sizes = [8, 128], strides = [1, 1]} : vector<8x384xf32> to vector<8x128xf32>
    %105 = vector.extract_strided_slice %93 {offsets = [0, 256], sizes = [8, 128], strides = [1, 1]} : vector<8x384xf32> to vector<8x128xf32>
    %106 = arith.addf %105, %11 : vector<8x128xf32>
    %107 = arith.mulf %102, %106 : vector<8x128xf32>
    %108 = arith.addf %104, %107 : vector<8x128xf32>
    %109 = math.tanh %108 : vector<8x128xf32>
    %110 = arith.subf %87, %109 : vector<8x128xf32>
    %111 = arith.mulf %103, %110 : vector<8x128xf32>
    %112 = arith.addf %109, %111 : vector<8x128xf32>
    %c4_i32 = arith.constant 4 : i32
    %c8_i32_27 = arith.constant 8 : i32
    %113 = arith.muli %c4_i32, %c8_i32_27 : i32
    %114 = tpu.assume_multiple %113, 8 : i32
    %115 = arith.index_cast %114 : i32 to index
    %c0_28 = arith.constant 0 : index
    %116 = vector.load %arg6[%115, %c0_28] : memref<224x384xf32, #tpu.memory_space<vmem>>, vector<8x384xf32>
    %117 = arith.truncf %112 : vector<8x128xf32> to vector<8x128xbf16>
    %cst_29 = arith.constant dense<0.000000e+00> : vector<8x384xf32>
    %118 = tpu.matmul %117, %8, %cst_29 {dimension_numbers = #tpu.dot_dimension_numbers<[1], [0], [0], [1], [0, 0, 1, 1], [], []>} : vector<8x128xbf16>, vector<128x384xbf16>, vector<8x384xf32> -> vector<8x384xf32>
    %119 = vector.extract_strided_slice %116 {offsets = [0, 0], sizes = [8, 256], strides = [1, 1]} : vector<8x384xf32> to vector<8x256xf32>
    %120 = vector.extract_strided_slice %118 {offsets = [0, 0], sizes = [8, 256], strides = [1, 1]} : vector<8x384xf32> to vector<8x256xf32>
    %121 = arith.addf %119, %120 : vector<8x256xf32>
    %122 = arith.negf %121 : vector<8x256xf32>
    %123 = math.exp %122 : vector<8x256xf32>
    %cst_30 = arith.constant 1.000000e+00 : f32
    %124 = vector.broadcast %cst_30 : f32 to vector<8x256xf32>
    %125 = arith.addf %124, %123 : vector<8x256xf32>
    %126 = arith.divf %124, %125 : vector<8x256xf32>
    %127 = vector.extract_strided_slice %126 {offsets = [0, 0], sizes = [8, 128], strides = [1, 1]} : vector<8x256xf32> to vector<8x128xf32>
    %128 = vector.extract_strided_slice %126 {offsets = [0, 128], sizes = [8, 128], strides = [1, 1]} : vector<8x256xf32> to vector<8x128xf32>
    %129 = vector.extract_strided_slice %116 {offsets = [0, 256], sizes = [8, 128], strides = [1, 1]} : vector<8x384xf32> to vector<8x128xf32>
    %130 = vector.extract_strided_slice %118 {offsets = [0, 256], sizes = [8, 128], strides = [1, 1]} : vector<8x384xf32> to vector<8x128xf32>
    %131 = arith.addf %130, %11 : vector<8x128xf32>
    %132 = arith.mulf %127, %131 : vector<8x128xf32>
    %133 = arith.addf %129, %132 : vector<8x128xf32>
    %134 = math.tanh %133 : vector<8x128xf32>
    %135 = arith.subf %112, %134 : vector<8x128xf32>
    %136 = arith.mulf %128, %135 : vector<8x128xf32>
    %137 = arith.addf %134, %136 : vector<8x128xf32>
    %c5_i32 = arith.constant 5 : i32
    %c8_i32_31 = arith.constant 8 : i32
    %138 = arith.muli %c5_i32, %c8_i32_31 : i32
    %139 = tpu.assume_multiple %138, 8 : i32
    %140 = arith.index_cast %139 : i32 to index
    %c0_32 = arith.constant 0 : index
    %141 = vector.load %arg6[%140, %c0_32] : memref<224x384xf32, #tpu.memory_space<vmem>>, vector<8x384xf32>
    %142 = arith.truncf %137 : vector<8x128xf32> to vector<8x128xbf16>
    %cst_33 = arith.constant dense<0.000000e+00> : vector<8x384xf32>
    %143 = tpu.matmul %142, %8, %cst_33 {dimension_numbers = #tpu.dot_dimension_numbers<[1], [0], [0], [1], [0, 0, 1, 1], [], []>} : vector<8x128xbf16>, vector<128x384xbf16>, vector<8x384xf32> -> vector<8x384xf32>
    %144 = vector.extract_strided_slice %141 {offsets = [0, 0], sizes = [8, 256], strides = [1, 1]} : vector<8x384xf32> to vector<8x256xf32>
    %145 = vector.extract_strided_slice %143 {offsets = [0, 0], sizes = [8, 256], strides = [1, 1]} : vector<8x384xf32> to vector<8x256xf32>
    %146 = arith.addf %144, %145 : vector<8x256xf32>
    %147 = arith.negf %146 : vector<8x256xf32>
    %148 = math.exp %147 : vector<8x256xf32>
    %cst_34 = arith.constant 1.000000e+00 : f32
    %149 = vector.broadcast %cst_34 : f32 to vector<8x256xf32>
    %150 = arith.addf %149, %148 : vector<8x256xf32>
    %151 = arith.divf %149, %150 : vector<8x256xf32>
    %152 = vector.extract_strided_slice %151 {offsets = [0, 0], sizes = [8, 128], strides = [1, 1]} : vector<8x256xf32> to vector<8x128xf32>
    %153 = vector.extract_strided_slice %151 {offsets = [0, 128], sizes = [8, 128], strides = [1, 1]} : vector<8x256xf32> to vector<8x128xf32>
    %154 = vector.extract_strided_slice %141 {offsets = [0, 256], sizes = [8, 128], strides = [1, 1]} : vector<8x384xf32> to vector<8x128xf32>
    %155 = vector.extract_strided_slice %143 {offsets = [0, 256], sizes = [8, 128], strides = [1, 1]} : vector<8x384xf32> to vector<8x128xf32>
    %156 = arith.addf %155, %11 : vector<8x128xf32>
    %157 = arith.mulf %152, %156 : vector<8x128xf32>
    %158 = arith.addf %154, %157 : vector<8x128xf32>
    %159 = math.tanh %158 : vector<8x128xf32>
    %160 = arith.subf %137, %159 : vector<8x128xf32>
    %161 = arith.mulf %153, %160 : vector<8x128xf32>
    %162 = arith.addf %159, %161 : vector<8x128xf32>
    %c6_i32 = arith.constant 6 : i32
    %c8_i32_35 = arith.constant 8 : i32
    %163 = arith.muli %c6_i32, %c8_i32_35 : i32
    %164 = tpu.assume_multiple %163, 8 : i32
    %165 = arith.index_cast %164 : i32 to index
    %c0_36 = arith.constant 0 : index
    %166 = vector.load %arg6[%165, %c0_36] : memref<224x384xf32, #tpu.memory_space<vmem>>, vector<8x384xf32>
    %167 = arith.truncf %162 : vector<8x128xf32> to vector<8x128xbf16>
    %cst_37 = arith.constant dense<0.000000e+00> : vector<8x384xf32>
    %168 = tpu.matmul %167, %8, %cst_37 {dimension_numbers = #tpu.dot_dimension_numbers<[1], [0], [0], [1], [0, 0, 1, 1], [], []>} : vector<8x128xbf16>, vector<128x384xbf16>, vector<8x384xf32> -> vector<8x384xf32>
    %169 = vector.extract_strided_slice %166 {offsets = [0, 0], sizes = [8, 256], strides = [1, 1]} : vector<8x384xf32> to vector<8x256xf32>
    %170 = vector.extract_strided_slice %168 {offsets = [0, 0], sizes = [8, 256], strides = [1, 1]} : vector<8x384xf32> to vector<8x256xf32>
    %171 = arith.addf %169, %170 : vector<8x256xf32>
    %172 = arith.negf %171 : vector<8x256xf32>
    %173 = math.exp %172 : vector<8x256xf32>
    %cst_38 = arith.constant 1.000000e+00 : f32
    %174 = vector.broadcast %cst_38 : f32 to vector<8x256xf32>
    %175 = arith.addf %174, %173 : vector<8x256xf32>
    %176 = arith.divf %174, %175 : vector<8x256xf32>
    %177 = vector.extract_strided_slice %176 {offsets = [0, 0], sizes = [8, 128], strides = [1, 1]} : vector<8x256xf32> to vector<8x128xf32>
    %178 = vector.extract_strided_slice %176 {offsets = [0, 128], sizes = [8, 128], strides = [1, 1]} : vector<8x256xf32> to vector<8x128xf32>
    %179 = vector.extract_strided_slice %166 {offsets = [0, 256], sizes = [8, 128], strides = [1, 1]} : vector<8x384xf32> to vector<8x128xf32>
    %180 = vector.extract_strided_slice %168 {offsets = [0, 256], sizes = [8, 128], strides = [1, 1]} : vector<8x384xf32> to vector<8x128xf32>
    %181 = arith.addf %180, %11 : vector<8x128xf32>
    %182 = arith.mulf %177, %181 : vector<8x128xf32>
    %183 = arith.addf %179, %182 : vector<8x128xf32>
    %184 = math.tanh %183 : vector<8x128xf32>
    %185 = arith.subf %162, %184 : vector<8x128xf32>
    %186 = arith.mulf %178, %185 : vector<8x128xf32>
    %187 = arith.addf %184, %186 : vector<8x128xf32>
    %c7_i32 = arith.constant 7 : i32
    %c8_i32_39 = arith.constant 8 : i32
    %188 = arith.muli %c7_i32, %c8_i32_39 : i32
    %189 = tpu.assume_multiple %188, 8 : i32
    %190 = arith.index_cast %189 : i32 to index
    %c0_40 = arith.constant 0 : index
    %191 = vector.load %arg6[%190, %c0_40] : memref<224x384xf32, #tpu.memory_space<vmem>>, vector<8x384xf32>
    %192 = arith.truncf %187 : vector<8x128xf32> to vector<8x128xbf16>
    %cst_41 = arith.constant dense<0.000000e+00> : vector<8x384xf32>
    %193 = tpu.matmul %192, %8, %cst_41 {dimension_numbers = #tpu.dot_dimension_numbers<[1], [0], [0], [1], [0, 0, 1, 1], [], []>} : vector<8x128xbf16>, vector<128x384xbf16>, vector<8x384xf32> -> vector<8x384xf32>
    %194 = vector.extract_strided_slice %191 {offsets = [0, 0], sizes = [8, 256], strides = [1, 1]} : vector<8x384xf32> to vector<8x256xf32>
    %195 = vector.extract_strided_slice %193 {offsets = [0, 0], sizes = [8, 256], strides = [1, 1]} : vector<8x384xf32> to vector<8x256xf32>
    %196 = arith.addf %194, %195 : vector<8x256xf32>
    %197 = arith.negf %196 : vector<8x256xf32>
    %198 = math.exp %197 : vector<8x256xf32>
    %cst_42 = arith.constant 1.000000e+00 : f32
    %199 = vector.broadcast %cst_42 : f32 to vector<8x256xf32>
    %200 = arith.addf %199, %198 : vector<8x256xf32>
    %201 = arith.divf %199, %200 : vector<8x256xf32>
    %202 = vector.extract_strided_slice %201 {offsets = [0, 0], sizes = [8, 128], strides = [1, 1]} : vector<8x256xf32> to vector<8x128xf32>
    %203 = vector.extract_strided_slice %201 {offsets = [0, 128], sizes = [8, 128], strides = [1, 1]} : vector<8x256xf32> to vector<8x128xf32>
    %204 = vector.extract_strided_slice %191 {offsets = [0, 256], sizes = [8, 128], strides = [1, 1]} : vector<8x384xf32> to vector<8x128xf32>
    %205 = vector.extract_strided_slice %193 {offsets = [0, 256], sizes = [8, 128], strides = [1, 1]} : vector<8x384xf32> to vector<8x128xf32>
    %206 = arith.addf %205, %11 : vector<8x128xf32>
    %207 = arith.mulf %202, %206 : vector<8x128xf32>
    %208 = arith.addf %204, %207 : vector<8x128xf32>
    %209 = math.tanh %208 : vector<8x128xf32>
    %210 = arith.subf %187, %209 : vector<8x128xf32>
    %211 = arith.mulf %203, %210 : vector<8x128xf32>
    %212 = arith.addf %209, %211 : vector<8x128xf32>
    %c8_i32_43 = arith.constant 8 : i32
    %c8_i32_44 = arith.constant 8 : i32
    %213 = arith.muli %c8_i32_43, %c8_i32_44 : i32
    %214 = tpu.assume_multiple %213, 8 : i32
    %215 = arith.index_cast %214 : i32 to index
    %c0_45 = arith.constant 0 : index
    %216 = vector.load %arg6[%215, %c0_45] : memref<224x384xf32, #tpu.memory_space<vmem>>, vector<8x384xf32>
    %217 = arith.truncf %212 : vector<8x128xf32> to vector<8x128xbf16>
    %cst_46 = arith.constant dense<0.000000e+00> : vector<8x384xf32>
    %218 = tpu.matmul %217, %8, %cst_46 {dimension_numbers = #tpu.dot_dimension_numbers<[1], [0], [0], [1], [0, 0, 1, 1], [], []>} : vector<8x128xbf16>, vector<128x384xbf16>, vector<8x384xf32> -> vector<8x384xf32>
    %219 = vector.extract_strided_slice %216 {offsets = [0, 0], sizes = [8, 256], strides = [1, 1]} : vector<8x384xf32> to vector<8x256xf32>
    %220 = vector.extract_strided_slice %218 {offsets = [0, 0], sizes = [8, 256], strides = [1, 1]} : vector<8x384xf32> to vector<8x256xf32>
    %221 = arith.addf %219, %220 : vector<8x256xf32>
    %222 = arith.negf %221 : vector<8x256xf32>
    %223 = math.exp %222 : vector<8x256xf32>
    %cst_47 = arith.constant 1.000000e+00 : f32
    %224 = vector.broadcast %cst_47 : f32 to vector<8x256xf32>
    %225 = arith.addf %224, %223 : vector<8x256xf32>
    %226 = arith.divf %224, %225 : vector<8x256xf32>
    %227 = vector.extract_strided_slice %226 {offsets = [0, 0], sizes = [8, 128], strides = [1, 1]} : vector<8x256xf32> to vector<8x128xf32>
    %228 = vector.extract_strided_slice %226 {offsets = [0, 128], sizes = [8, 128], strides = [1, 1]} : vector<8x256xf32> to vector<8x128xf32>
    %229 = vector.extract_strided_slice %216 {offsets = [0, 256], sizes = [8, 128], strides = [1, 1]} : vector<8x384xf32> to vector<8x128xf32>
    %230 = vector.extract_strided_slice %218 {offsets = [0, 256], sizes = [8, 128], strides = [1, 1]} : vector<8x384xf32> to vector<8x128xf32>
    %231 = arith.addf %230, %11 : vector<8x128xf32>
    %232 = arith.mulf %227, %231 : vector<8x128xf32>
    %233 = arith.addf %229, %232 : vector<8x128xf32>
    %234 = math.tanh %233 : vector<8x128xf32>
    %235 = arith.subf %212, %234 : vector<8x128xf32>
    %236 = arith.mulf %228, %235 : vector<8x128xf32>
    %237 = arith.addf %234, %236 : vector<8x128xf32>
    %c9_i32 = arith.constant 9 : i32
    %c8_i32_48 = arith.constant 8 : i32
    %238 = arith.muli %c9_i32, %c8_i32_48 : i32
    %239 = tpu.assume_multiple %238, 8 : i32
    %240 = arith.index_cast %239 : i32 to index
    %c0_49 = arith.constant 0 : index
    %241 = vector.load %arg6[%240, %c0_49] : memref<224x384xf32, #tpu.memory_space<vmem>>, vector<8x384xf32>
    %242 = arith.truncf %237 : vector<8x128xf32> to vector<8x128xbf16>
    %cst_50 = arith.constant dense<0.000000e+00> : vector<8x384xf32>
    %243 = tpu.matmul %242, %8, %cst_50 {dimension_numbers = #tpu.dot_dimension_numbers<[1], [0], [0], [1], [0, 0, 1, 1], [], []>} : vector<8x128xbf16>, vector<128x384xbf16>, vector<8x384xf32> -> vector<8x384xf32>
    %244 = vector.extract_strided_slice %241 {offsets = [0, 0], sizes = [8, 256], strides = [1, 1]} : vector<8x384xf32> to vector<8x256xf32>
    %245 = vector.extract_strided_slice %243 {offsets = [0, 0], sizes = [8, 256], strides = [1, 1]} : vector<8x384xf32> to vector<8x256xf32>
    %246 = arith.addf %244, %245 : vector<8x256xf32>
    %247 = arith.negf %246 : vector<8x256xf32>
    %248 = math.exp %247 : vector<8x256xf32>
    %cst_51 = arith.constant 1.000000e+00 : f32
    %249 = vector.broadcast %cst_51 : f32 to vector<8x256xf32>
    %250 = arith.addf %249, %248 : vector<8x256xf32>
    %251 = arith.divf %249, %250 : vector<8x256xf32>
    %252 = vector.extract_strided_slice %251 {offsets = [0, 0], sizes = [8, 128], strides = [1, 1]} : vector<8x256xf32> to vector<8x128xf32>
    %253 = vector.extract_strided_slice %251 {offsets = [0, 128], sizes = [8, 128], strides = [1, 1]} : vector<8x256xf32> to vector<8x128xf32>
    %254 = vector.extract_strided_slice %241 {offsets = [0, 256], sizes = [8, 128], strides = [1, 1]} : vector<8x384xf32> to vector<8x128xf32>
    %255 = vector.extract_strided_slice %243 {offsets = [0, 256], sizes = [8, 128], strides = [1, 1]} : vector<8x384xf32> to vector<8x128xf32>
    %256 = arith.addf %255, %11 : vector<8x128xf32>
    %257 = arith.mulf %252, %256 : vector<8x128xf32>
    %258 = arith.addf %254, %257 : vector<8x128xf32>
    %259 = math.tanh %258 : vector<8x128xf32>
    %260 = arith.subf %237, %259 : vector<8x128xf32>
    %261 = arith.mulf %253, %260 : vector<8x128xf32>
    %262 = arith.addf %259, %261 : vector<8x128xf32>
    %c10_i32 = arith.constant 10 : i32
    %c8_i32_52 = arith.constant 8 : i32
    %263 = arith.muli %c10_i32, %c8_i32_52 : i32
    %264 = tpu.assume_multiple %263, 8 : i32
    %265 = arith.index_cast %264 : i32 to index
    %c0_53 = arith.constant 0 : index
    %266 = vector.load %arg6[%265, %c0_53] : memref<224x384xf32, #tpu.memory_space<vmem>>, vector<8x384xf32>
    %267 = arith.truncf %262 : vector<8x128xf32> to vector<8x128xbf16>
    %cst_54 = arith.constant dense<0.000000e+00> : vector<8x384xf32>
    %268 = tpu.matmul %267, %8, %cst_54 {dimension_numbers = #tpu.dot_dimension_numbers<[1], [0], [0], [1], [0, 0, 1, 1], [], []>} : vector<8x128xbf16>, vector<128x384xbf16>, vector<8x384xf32> -> vector<8x384xf32>
    %269 = vector.extract_strided_slice %266 {offsets = [0, 0], sizes = [8, 256], strides = [1, 1]} : vector<8x384xf32> to vector<8x256xf32>
    %270 = vector.extract_strided_slice %268 {offsets = [0, 0], sizes = [8, 256], strides = [1, 1]} : vector<8x384xf32> to vector<8x256xf32>
    %271 = arith.addf %269, %270 : vector<8x256xf32>
    %272 = arith.negf %271 : vector<8x256xf32>
    %273 = math.exp %272 : vector<8x256xf32>
    %cst_55 = arith.constant 1.000000e+00 : f32
    %274 = vector.broadcast %cst_55 : f32 to vector<8x256xf32>
    %275 = arith.addf %274, %273 : vector<8x256xf32>
    %276 = arith.divf %274, %275 : vector<8x256xf32>
    %277 = vector.extract_strided_slice %276 {offsets = [0, 0], sizes = [8, 128], strides = [1, 1]} : vector<8x256xf32> to vector<8x128xf32>
    %278 = vector.extract_strided_slice %276 {offsets = [0, 128], sizes = [8, 128], strides = [1, 1]} : vector<8x256xf32> to vector<8x128xf32>
    %279 = vector.extract_strided_slice %266 {offsets = [0, 256], sizes = [8, 128], strides = [1, 1]} : vector<8x384xf32> to vector<8x128xf32>
    %280 = vector.extract_strided_slice %268 {offsets = [0, 256], sizes = [8, 128], strides = [1, 1]} : vector<8x384xf32> to vector<8x128xf32>
    %281 = arith.addf %280, %11 : vector<8x128xf32>
    %282 = arith.mulf %277, %281 : vector<8x128xf32>
    %283 = arith.addf %279, %282 : vector<8x128xf32>
    %284 = math.tanh %283 : vector<8x128xf32>
    %285 = arith.subf %262, %284 : vector<8x128xf32>
    %286 = arith.mulf %278, %285 : vector<8x128xf32>
    %287 = arith.addf %284, %286 : vector<8x128xf32>
    %c11_i32 = arith.constant 11 : i32
    %c8_i32_56 = arith.constant 8 : i32
    %288 = arith.muli %c11_i32, %c8_i32_56 : i32
    %289 = tpu.assume_multiple %288, 8 : i32
    %290 = arith.index_cast %289 : i32 to index
    %c0_57 = arith.constant 0 : index
    %291 = vector.load %arg6[%290, %c0_57] : memref<224x384xf32, #tpu.memory_space<vmem>>, vector<8x384xf32>
    %292 = arith.truncf %287 : vector<8x128xf32> to vector<8x128xbf16>
    %cst_58 = arith.constant dense<0.000000e+00> : vector<8x384xf32>
    %293 = tpu.matmul %292, %8, %cst_58 {dimension_numbers = #tpu.dot_dimension_numbers<[1], [0], [0], [1], [0, 0, 1, 1], [], []>} : vector<8x128xbf16>, vector<128x384xbf16>, vector<8x384xf32> -> vector<8x384xf32>
    %294 = vector.extract_strided_slice %291 {offsets = [0, 0], sizes = [8, 256], strides = [1, 1]} : vector<8x384xf32> to vector<8x256xf32>
    %295 = vector.extract_strided_slice %293 {offsets = [0, 0], sizes = [8, 256], strides = [1, 1]} : vector<8x384xf32> to vector<8x256xf32>
    %296 = arith.addf %294, %295 : vector<8x256xf32>
    %297 = arith.negf %296 : vector<8x256xf32>
    %298 = math.exp %297 : vector<8x256xf32>
    %cst_59 = arith.constant 1.000000e+00 : f32
    %299 = vector.broadcast %cst_59 : f32 to vector<8x256xf32>
    %300 = arith.addf %299, %298 : vector<8x256xf32>
    %301 = arith.divf %299, %300 : vector<8x256xf32>
    %302 = vector.extract_strided_slice %301 {offsets = [0, 0], sizes = [8, 128], strides = [1, 1]} : vector<8x256xf32> to vector<8x128xf32>
    %303 = vector.extract_strided_slice %301 {offsets = [0, 128], sizes = [8, 128], strides = [1, 1]} : vector<8x256xf32> to vector<8x128xf32>
    %304 = vector.extract_strided_slice %291 {offsets = [0, 256], sizes = [8, 128], strides = [1, 1]} : vector<8x384xf32> to vector<8x128xf32>
    %305 = vector.extract_strided_slice %293 {offsets = [0, 256], sizes = [8, 128], strides = [1, 1]} : vector<8x384xf32> to vector<8x128xf32>
    %306 = arith.addf %305, %11 : vector<8x128xf32>
    %307 = arith.mulf %302, %306 : vector<8x128xf32>
    %308 = arith.addf %304, %307 : vector<8x128xf32>
    %309 = math.tanh %308 : vector<8x128xf32>
    %310 = arith.subf %287, %309 : vector<8x128xf32>
    %311 = arith.mulf %303, %310 : vector<8x128xf32>
    %312 = arith.addf %309, %311 : vector<8x128xf32>
    %c12_i32 = arith.constant 12 : i32
    %c8_i32_60 = arith.constant 8 : i32
    %313 = arith.muli %c12_i32, %c8_i32_60 : i32
    %314 = tpu.assume_multiple %313, 8 : i32
    %315 = arith.index_cast %314 : i32 to index
    %c0_61 = arith.constant 0 : index
    %316 = vector.load %arg6[%315, %c0_61] : memref<224x384xf32, #tpu.memory_space<vmem>>, vector<8x384xf32>
    %317 = arith.truncf %312 : vector<8x128xf32> to vector<8x128xbf16>
    %cst_62 = arith.constant dense<0.000000e+00> : vector<8x384xf32>
    %318 = tpu.matmul %317, %8, %cst_62 {dimension_numbers = #tpu.dot_dimension_numbers<[1], [0], [0], [1], [0, 0, 1, 1], [], []>} : vector<8x128xbf16>, vector<128x384xbf16>, vector<8x384xf32> -> vector<8x384xf32>
    %319 = vector.extract_strided_slice %316 {offsets = [0, 0], sizes = [8, 256], strides = [1, 1]} : vector<8x384xf32> to vector<8x256xf32>
    %320 = vector.extract_strided_slice %318 {offsets = [0, 0], sizes = [8, 256], strides = [1, 1]} : vector<8x384xf32> to vector<8x256xf32>
    %321 = arith.addf %319, %320 : vector<8x256xf32>
    %322 = arith.negf %321 : vector<8x256xf32>
    %323 = math.exp %322 : vector<8x256xf32>
    %cst_63 = arith.constant 1.000000e+00 : f32
    %324 = vector.broadcast %cst_63 : f32 to vector<8x256xf32>
    %325 = arith.addf %324, %323 : vector<8x256xf32>
    %326 = arith.divf %324, %325 : vector<8x256xf32>
    %327 = vector.extract_strided_slice %326 {offsets = [0, 0], sizes = [8, 128], strides = [1, 1]} : vector<8x256xf32> to vector<8x128xf32>
    %328 = vector.extract_strided_slice %326 {offsets = [0, 128], sizes = [8, 128], strides = [1, 1]} : vector<8x256xf32> to vector<8x128xf32>
    %329 = vector.extract_strided_slice %316 {offsets = [0, 256], sizes = [8, 128], strides = [1, 1]} : vector<8x384xf32> to vector<8x128xf32>
    %330 = vector.extract_strided_slice %318 {offsets = [0, 256], sizes = [8, 128], strides = [1, 1]} : vector<8x384xf32> to vector<8x128xf32>
    %331 = arith.addf %330, %11 : vector<8x128xf32>
    %332 = arith.mulf %327, %331 : vector<8x128xf32>
    %333 = arith.addf %329, %332 : vector<8x128xf32>
    %334 = math.tanh %333 : vector<8x128xf32>
    %335 = arith.subf %312, %334 : vector<8x128xf32>
    %336 = arith.mulf %328, %335 : vector<8x128xf32>
    %337 = arith.addf %334, %336 : vector<8x128xf32>
    %c13_i32 = arith.constant 13 : i32
    %c8_i32_64 = arith.constant 8 : i32
    %338 = arith.muli %c13_i32, %c8_i32_64 : i32
    %339 = tpu.assume_multiple %338, 8 : i32
    %340 = arith.index_cast %339 : i32 to index
    %c0_65 = arith.constant 0 : index
    %341 = vector.load %arg6[%340, %c0_65] : memref<224x384xf32, #tpu.memory_space<vmem>>, vector<8x384xf32>
    %342 = arith.truncf %337 : vector<8x128xf32> to vector<8x128xbf16>
    %cst_66 = arith.constant dense<0.000000e+00> : vector<8x384xf32>
    %343 = tpu.matmul %342, %8, %cst_66 {dimension_numbers = #tpu.dot_dimension_numbers<[1], [0], [0], [1], [0, 0, 1, 1], [], []>} : vector<8x128xbf16>, vector<128x384xbf16>, vector<8x384xf32> -> vector<8x384xf32>
    %344 = vector.extract_strided_slice %341 {offsets = [0, 0], sizes = [8, 256], strides = [1, 1]} : vector<8x384xf32> to vector<8x256xf32>
    %345 = vector.extract_strided_slice %343 {offsets = [0, 0], sizes = [8, 256], strides = [1, 1]} : vector<8x384xf32> to vector<8x256xf32>
    %346 = arith.addf %344, %345 : vector<8x256xf32>
    %347 = arith.negf %346 : vector<8x256xf32>
    %348 = math.exp %347 : vector<8x256xf32>
    %cst_67 = arith.constant 1.000000e+00 : f32
    %349 = vector.broadcast %cst_67 : f32 to vector<8x256xf32>
    %350 = arith.addf %349, %348 : vector<8x256xf32>
    %351 = arith.divf %349, %350 : vector<8x256xf32>
    %352 = vector.extract_strided_slice %351 {offsets = [0, 0], sizes = [8, 128], strides = [1, 1]} : vector<8x256xf32> to vector<8x128xf32>
    %353 = vector.extract_strided_slice %351 {offsets = [0, 128], sizes = [8, 128], strides = [1, 1]} : vector<8x256xf32> to vector<8x128xf32>
    %354 = vector.extract_strided_slice %341 {offsets = [0, 256], sizes = [8, 128], strides = [1, 1]} : vector<8x384xf32> to vector<8x128xf32>
    %355 = vector.extract_strided_slice %343 {offsets = [0, 256], sizes = [8, 128], strides = [1, 1]} : vector<8x384xf32> to vector<8x128xf32>
    %356 = arith.addf %355, %11 : vector<8x128xf32>
    %357 = arith.mulf %352, %356 : vector<8x128xf32>
    %358 = arith.addf %354, %357 : vector<8x128xf32>
    %359 = math.tanh %358 : vector<8x128xf32>
    %360 = arith.subf %337, %359 : vector<8x128xf32>
    %361 = arith.mulf %353, %360 : vector<8x128xf32>
    %362 = arith.addf %359, %361 : vector<8x128xf32>
    %c14_i32 = arith.constant 14 : i32
    %c8_i32_68 = arith.constant 8 : i32
    %363 = arith.muli %c14_i32, %c8_i32_68 : i32
    %364 = tpu.assume_multiple %363, 8 : i32
    %365 = arith.index_cast %364 : i32 to index
    %c0_69 = arith.constant 0 : index
    %366 = vector.load %arg6[%365, %c0_69] : memref<224x384xf32, #tpu.memory_space<vmem>>, vector<8x384xf32>
    %367 = arith.truncf %362 : vector<8x128xf32> to vector<8x128xbf16>
    %cst_70 = arith.constant dense<0.000000e+00> : vector<8x384xf32>
    %368 = tpu.matmul %367, %8, %cst_70 {dimension_numbers = #tpu.dot_dimension_numbers<[1], [0], [0], [1], [0, 0, 1, 1], [], []>} : vector<8x128xbf16>, vector<128x384xbf16>, vector<8x384xf32> -> vector<8x384xf32>
    %369 = vector.extract_strided_slice %366 {offsets = [0, 0], sizes = [8, 256], strides = [1, 1]} : vector<8x384xf32> to vector<8x256xf32>
    %370 = vector.extract_strided_slice %368 {offsets = [0, 0], sizes = [8, 256], strides = [1, 1]} : vector<8x384xf32> to vector<8x256xf32>
    %371 = arith.addf %369, %370 : vector<8x256xf32>
    %372 = arith.negf %371 : vector<8x256xf32>
    %373 = math.exp %372 : vector<8x256xf32>
    %cst_71 = arith.constant 1.000000e+00 : f32
    %374 = vector.broadcast %cst_71 : f32 to vector<8x256xf32>
    %375 = arith.addf %374, %373 : vector<8x256xf32>
    %376 = arith.divf %374, %375 : vector<8x256xf32>
    %377 = vector.extract_strided_slice %376 {offsets = [0, 0], sizes = [8, 128], strides = [1, 1]} : vector<8x256xf32> to vector<8x128xf32>
    %378 = vector.extract_strided_slice %376 {offsets = [0, 128], sizes = [8, 128], strides = [1, 1]} : vector<8x256xf32> to vector<8x128xf32>
    %379 = vector.extract_strided_slice %366 {offsets = [0, 256], sizes = [8, 128], strides = [1, 1]} : vector<8x384xf32> to vector<8x128xf32>
    %380 = vector.extract_strided_slice %368 {offsets = [0, 256], sizes = [8, 128], strides = [1, 1]} : vector<8x384xf32> to vector<8x128xf32>
    %381 = arith.addf %380, %11 : vector<8x128xf32>
    %382 = arith.mulf %377, %381 : vector<8x128xf32>
    %383 = arith.addf %379, %382 : vector<8x128xf32>
    %384 = math.tanh %383 : vector<8x128xf32>
    %385 = arith.subf %362, %384 : vector<8x128xf32>
    %386 = arith.mulf %378, %385 : vector<8x128xf32>
    %387 = arith.addf %384, %386 : vector<8x128xf32>
    %c15_i32 = arith.constant 15 : i32
    %c8_i32_72 = arith.constant 8 : i32
    %388 = arith.muli %c15_i32, %c8_i32_72 : i32
    %389 = tpu.assume_multiple %388, 8 : i32
    %390 = arith.index_cast %389 : i32 to index
    %c0_73 = arith.constant 0 : index
    %391 = vector.load %arg6[%390, %c0_73] : memref<224x384xf32, #tpu.memory_space<vmem>>, vector<8x384xf32>
    %392 = arith.truncf %387 : vector<8x128xf32> to vector<8x128xbf16>
    %cst_74 = arith.constant dense<0.000000e+00> : vector<8x384xf32>
    %393 = tpu.matmul %392, %8, %cst_74 {dimension_numbers = #tpu.dot_dimension_numbers<[1], [0], [0], [1], [0, 0, 1, 1], [], []>} : vector<8x128xbf16>, vector<128x384xbf16>, vector<8x384xf32> -> vector<8x384xf32>
    %394 = vector.extract_strided_slice %391 {offsets = [0, 0], sizes = [8, 256], strides = [1, 1]} : vector<8x384xf32> to vector<8x256xf32>
    %395 = vector.extract_strided_slice %393 {offsets = [0, 0], sizes = [8, 256], strides = [1, 1]} : vector<8x384xf32> to vector<8x256xf32>
    %396 = arith.addf %394, %395 : vector<8x256xf32>
    %397 = arith.negf %396 : vector<8x256xf32>
    %398 = math.exp %397 : vector<8x256xf32>
    %cst_75 = arith.constant 1.000000e+00 : f32
    %399 = vector.broadcast %cst_75 : f32 to vector<8x256xf32>
    %400 = arith.addf %399, %398 : vector<8x256xf32>
    %401 = arith.divf %399, %400 : vector<8x256xf32>
    %402 = vector.extract_strided_slice %401 {offsets = [0, 0], sizes = [8, 128], strides = [1, 1]} : vector<8x256xf32> to vector<8x128xf32>
    %403 = vector.extract_strided_slice %401 {offsets = [0, 128], sizes = [8, 128], strides = [1, 1]} : vector<8x256xf32> to vector<8x128xf32>
    %404 = vector.extract_strided_slice %391 {offsets = [0, 256], sizes = [8, 128], strides = [1, 1]} : vector<8x384xf32> to vector<8x128xf32>
    %405 = vector.extract_strided_slice %393 {offsets = [0, 256], sizes = [8, 128], strides = [1, 1]} : vector<8x384xf32> to vector<8x128xf32>
    %406 = arith.addf %405, %11 : vector<8x128xf32>
    %407 = arith.mulf %402, %406 : vector<8x128xf32>
    %408 = arith.addf %404, %407 : vector<8x128xf32>
    %409 = math.tanh %408 : vector<8x128xf32>
    %410 = arith.subf %387, %409 : vector<8x128xf32>
    %411 = arith.mulf %403, %410 : vector<8x128xf32>
    %412 = arith.addf %409, %411 : vector<8x128xf32>
    %c16_i32 = arith.constant 16 : i32
    %c8_i32_76 = arith.constant 8 : i32
    %413 = arith.muli %c16_i32, %c8_i32_76 : i32
    %414 = tpu.assume_multiple %413, 8 : i32
    %415 = arith.index_cast %414 : i32 to index
    %c0_77 = arith.constant 0 : index
    %416 = vector.load %arg6[%415, %c0_77] : memref<224x384xf32, #tpu.memory_space<vmem>>, vector<8x384xf32>
    %417 = arith.truncf %412 : vector<8x128xf32> to vector<8x128xbf16>
    %cst_78 = arith.constant dense<0.000000e+00> : vector<8x384xf32>
    %418 = tpu.matmul %417, %8, %cst_78 {dimension_numbers = #tpu.dot_dimension_numbers<[1], [0], [0], [1], [0, 0, 1, 1], [], []>} : vector<8x128xbf16>, vector<128x384xbf16>, vector<8x384xf32> -> vector<8x384xf32>
    %419 = vector.extract_strided_slice %416 {offsets = [0, 0], sizes = [8, 256], strides = [1, 1]} : vector<8x384xf32> to vector<8x256xf32>
    %420 = vector.extract_strided_slice %418 {offsets = [0, 0], sizes = [8, 256], strides = [1, 1]} : vector<8x384xf32> to vector<8x256xf32>
    %421 = arith.addf %419, %420 : vector<8x256xf32>
    %422 = arith.negf %421 : vector<8x256xf32>
    %423 = math.exp %422 : vector<8x256xf32>
    %cst_79 = arith.constant 1.000000e+00 : f32
    %424 = vector.broadcast %cst_79 : f32 to vector<8x256xf32>
    %425 = arith.addf %424, %423 : vector<8x256xf32>
    %426 = arith.divf %424, %425 : vector<8x256xf32>
    %427 = vector.extract_strided_slice %426 {offsets = [0, 0], sizes = [8, 128], strides = [1, 1]} : vector<8x256xf32> to vector<8x128xf32>
    %428 = vector.extract_strided_slice %426 {offsets = [0, 128], sizes = [8, 128], strides = [1, 1]} : vector<8x256xf32> to vector<8x128xf32>
    %429 = vector.extract_strided_slice %416 {offsets = [0, 256], sizes = [8, 128], strides = [1, 1]} : vector<8x384xf32> to vector<8x128xf32>
    %430 = vector.extract_strided_slice %418 {offsets = [0, 256], sizes = [8, 128], strides = [1, 1]} : vector<8x384xf32> to vector<8x128xf32>
    %431 = arith.addf %430, %11 : vector<8x128xf32>
    %432 = arith.mulf %427, %431 : vector<8x128xf32>
    %433 = arith.addf %429, %432 : vector<8x128xf32>
    %434 = math.tanh %433 : vector<8x128xf32>
    %435 = arith.subf %412, %434 : vector<8x128xf32>
    %436 = arith.mulf %428, %435 : vector<8x128xf32>
    %437 = arith.addf %434, %436 : vector<8x128xf32>
    %c17_i32 = arith.constant 17 : i32
    %c8_i32_80 = arith.constant 8 : i32
    %438 = arith.muli %c17_i32, %c8_i32_80 : i32
    %439 = tpu.assume_multiple %438, 8 : i32
    %440 = arith.index_cast %439 : i32 to index
    %c0_81 = arith.constant 0 : index
    %441 = vector.load %arg6[%440, %c0_81] : memref<224x384xf32, #tpu.memory_space<vmem>>, vector<8x384xf32>
    %442 = arith.truncf %437 : vector<8x128xf32> to vector<8x128xbf16>
    %cst_82 = arith.constant dense<0.000000e+00> : vector<8x384xf32>
    %443 = tpu.matmul %442, %8, %cst_82 {dimension_numbers = #tpu.dot_dimension_numbers<[1], [0], [0], [1], [0, 0, 1, 1], [], []>} : vector<8x128xbf16>, vector<128x384xbf16>, vector<8x384xf32> -> vector<8x384xf32>
    %444 = vector.extract_strided_slice %441 {offsets = [0, 0], sizes = [8, 256], strides = [1, 1]} : vector<8x384xf32> to vector<8x256xf32>
    %445 = vector.extract_strided_slice %443 {offsets = [0, 0], sizes = [8, 256], strides = [1, 1]} : vector<8x384xf32> to vector<8x256xf32>
    %446 = arith.addf %444, %445 : vector<8x256xf32>
    %447 = arith.negf %446 : vector<8x256xf32>
    %448 = math.exp %447 : vector<8x256xf32>
    %cst_83 = arith.constant 1.000000e+00 : f32
    %449 = vector.broadcast %cst_83 : f32 to vector<8x256xf32>
    %450 = arith.addf %449, %448 : vector<8x256xf32>
    %451 = arith.divf %449, %450 : vector<8x256xf32>
    %452 = vector.extract_strided_slice %451 {offsets = [0, 0], sizes = [8, 128], strides = [1, 1]} : vector<8x256xf32> to vector<8x128xf32>
    %453 = vector.extract_strided_slice %451 {offsets = [0, 128], sizes = [8, 128], strides = [1, 1]} : vector<8x256xf32> to vector<8x128xf32>
    %454 = vector.extract_strided_slice %441 {offsets = [0, 256], sizes = [8, 128], strides = [1, 1]} : vector<8x384xf32> to vector<8x128xf32>
    %455 = vector.extract_strided_slice %443 {offsets = [0, 256], sizes = [8, 128], strides = [1, 1]} : vector<8x384xf32> to vector<8x128xf32>
    %456 = arith.addf %455, %11 : vector<8x128xf32>
    %457 = arith.mulf %452, %456 : vector<8x128xf32>
    %458 = arith.addf %454, %457 : vector<8x128xf32>
    %459 = math.tanh %458 : vector<8x128xf32>
    %460 = arith.subf %437, %459 : vector<8x128xf32>
    %461 = arith.mulf %453, %460 : vector<8x128xf32>
    %462 = arith.addf %459, %461 : vector<8x128xf32>
    %c18_i32 = arith.constant 18 : i32
    %c8_i32_84 = arith.constant 8 : i32
    %463 = arith.muli %c18_i32, %c8_i32_84 : i32
    %464 = tpu.assume_multiple %463, 8 : i32
    %465 = arith.index_cast %464 : i32 to index
    %c0_85 = arith.constant 0 : index
    %466 = vector.load %arg6[%465, %c0_85] : memref<224x384xf32, #tpu.memory_space<vmem>>, vector<8x384xf32>
    %467 = arith.truncf %462 : vector<8x128xf32> to vector<8x128xbf16>
    %cst_86 = arith.constant dense<0.000000e+00> : vector<8x384xf32>
    %468 = tpu.matmul %467, %8, %cst_86 {dimension_numbers = #tpu.dot_dimension_numbers<[1], [0], [0], [1], [0, 0, 1, 1], [], []>} : vector<8x128xbf16>, vector<128x384xbf16>, vector<8x384xf32> -> vector<8x384xf32>
    %469 = vector.extract_strided_slice %466 {offsets = [0, 0], sizes = [8, 256], strides = [1, 1]} : vector<8x384xf32> to vector<8x256xf32>
    %470 = vector.extract_strided_slice %468 {offsets = [0, 0], sizes = [8, 256], strides = [1, 1]} : vector<8x384xf32> to vector<8x256xf32>
    %471 = arith.addf %469, %470 : vector<8x256xf32>
    %472 = arith.negf %471 : vector<8x256xf32>
    %473 = math.exp %472 : vector<8x256xf32>
    %cst_87 = arith.constant 1.000000e+00 : f32
    %474 = vector.broadcast %cst_87 : f32 to vector<8x256xf32>
    %475 = arith.addf %474, %473 : vector<8x256xf32>
    %476 = arith.divf %474, %475 : vector<8x256xf32>
    %477 = vector.extract_strided_slice %476 {offsets = [0, 0], sizes = [8, 128], strides = [1, 1]} : vector<8x256xf32> to vector<8x128xf32>
    %478 = vector.extract_strided_slice %476 {offsets = [0, 128], sizes = [8, 128], strides = [1, 1]} : vector<8x256xf32> to vector<8x128xf32>
    %479 = vector.extract_strided_slice %466 {offsets = [0, 256], sizes = [8, 128], strides = [1, 1]} : vector<8x384xf32> to vector<8x128xf32>
    %480 = vector.extract_strided_slice %468 {offsets = [0, 256], sizes = [8, 128], strides = [1, 1]} : vector<8x384xf32> to vector<8x128xf32>
    %481 = arith.addf %480, %11 : vector<8x128xf32>
    %482 = arith.mulf %477, %481 : vector<8x128xf32>
    %483 = arith.addf %479, %482 : vector<8x128xf32>
    %484 = math.tanh %483 : vector<8x128xf32>
    %485 = arith.subf %462, %484 : vector<8x128xf32>
    %486 = arith.mulf %478, %485 : vector<8x128xf32>
    %487 = arith.addf %484, %486 : vector<8x128xf32>
    %c19_i32 = arith.constant 19 : i32
    %c8_i32_88 = arith.constant 8 : i32
    %488 = arith.muli %c19_i32, %c8_i32_88 : i32
    %489 = tpu.assume_multiple %488, 8 : i32
    %490 = arith.index_cast %489 : i32 to index
    %c0_89 = arith.constant 0 : index
    %491 = vector.load %arg6[%490, %c0_89] : memref<224x384xf32, #tpu.memory_space<vmem>>, vector<8x384xf32>
    %492 = arith.truncf %487 : vector<8x128xf32> to vector<8x128xbf16>
    %cst_90 = arith.constant dense<0.000000e+00> : vector<8x384xf32>
    %493 = tpu.matmul %492, %8, %cst_90 {dimension_numbers = #tpu.dot_dimension_numbers<[1], [0], [0], [1], [0, 0, 1, 1], [], []>} : vector<8x128xbf16>, vector<128x384xbf16>, vector<8x384xf32> -> vector<8x384xf32>
    %494 = vector.extract_strided_slice %491 {offsets = [0, 0], sizes = [8, 256], strides = [1, 1]} : vector<8x384xf32> to vector<8x256xf32>
    %495 = vector.extract_strided_slice %493 {offsets = [0, 0], sizes = [8, 256], strides = [1, 1]} : vector<8x384xf32> to vector<8x256xf32>
    %496 = arith.addf %494, %495 : vector<8x256xf32>
    %497 = arith.negf %496 : vector<8x256xf32>
    %498 = math.exp %497 : vector<8x256xf32>
    %cst_91 = arith.constant 1.000000e+00 : f32
    %499 = vector.broadcast %cst_91 : f32 to vector<8x256xf32>
    %500 = arith.addf %499, %498 : vector<8x256xf32>
    %501 = arith.divf %499, %500 : vector<8x256xf32>
    %502 = vector.extract_strided_slice %501 {offsets = [0, 0], sizes = [8, 128], strides = [1, 1]} : vector<8x256xf32> to vector<8x128xf32>
    %503 = vector.extract_strided_slice %501 {offsets = [0, 128], sizes = [8, 128], strides = [1, 1]} : vector<8x256xf32> to vector<8x128xf32>
    %504 = vector.extract_strided_slice %491 {offsets = [0, 256], sizes = [8, 128], strides = [1, 1]} : vector<8x384xf32> to vector<8x128xf32>
    %505 = vector.extract_strided_slice %493 {offsets = [0, 256], sizes = [8, 128], strides = [1, 1]} : vector<8x384xf32> to vector<8x128xf32>
    %506 = arith.addf %505, %11 : vector<8x128xf32>
    %507 = arith.mulf %502, %506 : vector<8x128xf32>
    %508 = arith.addf %504, %507 : vector<8x128xf32>
    %509 = math.tanh %508 : vector<8x128xf32>
    %510 = arith.subf %487, %509 : vector<8x128xf32>
    %511 = arith.mulf %503, %510 : vector<8x128xf32>
    %512 = arith.addf %509, %511 : vector<8x128xf32>
    %c20_i32 = arith.constant 20 : i32
    %c8_i32_92 = arith.constant 8 : i32
    %513 = arith.muli %c20_i32, %c8_i32_92 : i32
    %514 = tpu.assume_multiple %513, 8 : i32
    %515 = arith.index_cast %514 : i32 to index
    %c0_93 = arith.constant 0 : index
    %516 = vector.load %arg6[%515, %c0_93] : memref<224x384xf32, #tpu.memory_space<vmem>>, vector<8x384xf32>
    %517 = arith.truncf %512 : vector<8x128xf32> to vector<8x128xbf16>
    %cst_94 = arith.constant dense<0.000000e+00> : vector<8x384xf32>
    %518 = tpu.matmul %517, %8, %cst_94 {dimension_numbers = #tpu.dot_dimension_numbers<[1], [0], [0], [1], [0, 0, 1, 1], [], []>} : vector<8x128xbf16>, vector<128x384xbf16>, vector<8x384xf32> -> vector<8x384xf32>
    %519 = vector.extract_strided_slice %516 {offsets = [0, 0], sizes = [8, 256], strides = [1, 1]} : vector<8x384xf32> to vector<8x256xf32>
    %520 = vector.extract_strided_slice %518 {offsets = [0, 0], sizes = [8, 256], strides = [1, 1]} : vector<8x384xf32> to vector<8x256xf32>
    %521 = arith.addf %519, %520 : vector<8x256xf32>
    %522 = arith.negf %521 : vector<8x256xf32>
    %523 = math.exp %522 : vector<8x256xf32>
    %cst_95 = arith.constant 1.000000e+00 : f32
    %524 = vector.broadcast %cst_95 : f32 to vector<8x256xf32>
    %525 = arith.addf %524, %523 : vector<8x256xf32>
    %526 = arith.divf %524, %525 : vector<8x256xf32>
    %527 = vector.extract_strided_slice %526 {offsets = [0, 0], sizes = [8, 128], strides = [1, 1]} : vector<8x256xf32> to vector<8x128xf32>
    %528 = vector.extract_strided_slice %526 {offsets = [0, 128], sizes = [8, 128], strides = [1, 1]} : vector<8x256xf32> to vector<8x128xf32>
    %529 = vector.extract_strided_slice %516 {offsets = [0, 256], sizes = [8, 128], strides = [1, 1]} : vector<8x384xf32> to vector<8x128xf32>
    %530 = vector.extract_strided_slice %518 {offsets = [0, 256], sizes = [8, 128], strides = [1, 1]} : vector<8x384xf32> to vector<8x128xf32>
    %531 = arith.addf %530, %11 : vector<8x128xf32>
    %532 = arith.mulf %527, %531 : vector<8x128xf32>
    %533 = arith.addf %529, %532 : vector<8x128xf32>
    %534 = math.tanh %533 : vector<8x128xf32>
    %535 = arith.subf %512, %534 : vector<8x128xf32>
    %536 = arith.mulf %528, %535 : vector<8x128xf32>
    %537 = arith.addf %534, %536 : vector<8x128xf32>
    %c21_i32 = arith.constant 21 : i32
    %c8_i32_96 = arith.constant 8 : i32
    %538 = arith.muli %c21_i32, %c8_i32_96 : i32
    %539 = tpu.assume_multiple %538, 8 : i32
    %540 = arith.index_cast %539 : i32 to index
    %c0_97 = arith.constant 0 : index
    %541 = vector.load %arg6[%540, %c0_97] : memref<224x384xf32, #tpu.memory_space<vmem>>, vector<8x384xf32>
    %542 = arith.truncf %537 : vector<8x128xf32> to vector<8x128xbf16>
    %cst_98 = arith.constant dense<0.000000e+00> : vector<8x384xf32>
    %543 = tpu.matmul %542, %8, %cst_98 {dimension_numbers = #tpu.dot_dimension_numbers<[1], [0], [0], [1], [0, 0, 1, 1], [], []>} : vector<8x128xbf16>, vector<128x384xbf16>, vector<8x384xf32> -> vector<8x384xf32>
    %544 = vector.extract_strided_slice %541 {offsets = [0, 0], sizes = [8, 256], strides = [1, 1]} : vector<8x384xf32> to vector<8x256xf32>
    %545 = vector.extract_strided_slice %543 {offsets = [0, 0], sizes = [8, 256], strides = [1, 1]} : vector<8x384xf32> to vector<8x256xf32>
    %546 = arith.addf %544, %545 : vector<8x256xf32>
    %547 = arith.negf %546 : vector<8x256xf32>
    %548 = math.exp %547 : vector<8x256xf32>
    %cst_99 = arith.constant 1.000000e+00 : f32
    %549 = vector.broadcast %cst_99 : f32 to vector<8x256xf32>
    %550 = arith.addf %549, %548 : vector<8x256xf32>
    %551 = arith.divf %549, %550 : vector<8x256xf32>
    %552 = vector.extract_strided_slice %551 {offsets = [0, 0], sizes = [8, 128], strides = [1, 1]} : vector<8x256xf32> to vector<8x128xf32>
    %553 = vector.extract_strided_slice %551 {offsets = [0, 128], sizes = [8, 128], strides = [1, 1]} : vector<8x256xf32> to vector<8x128xf32>
    %554 = vector.extract_strided_slice %541 {offsets = [0, 256], sizes = [8, 128], strides = [1, 1]} : vector<8x384xf32> to vector<8x128xf32>
    %555 = vector.extract_strided_slice %543 {offsets = [0, 256], sizes = [8, 128], strides = [1, 1]} : vector<8x384xf32> to vector<8x128xf32>
    %556 = arith.addf %555, %11 : vector<8x128xf32>
    %557 = arith.mulf %552, %556 : vector<8x128xf32>
    %558 = arith.addf %554, %557 : vector<8x128xf32>
    %559 = math.tanh %558 : vector<8x128xf32>
    %560 = arith.subf %537, %559 : vector<8x128xf32>
    %561 = arith.mulf %553, %560 : vector<8x128xf32>
    %562 = arith.addf %559, %561 : vector<8x128xf32>
    %c22_i32 = arith.constant 22 : i32
    %c8_i32_100 = arith.constant 8 : i32
    %563 = arith.muli %c22_i32, %c8_i32_100 : i32
    %564 = tpu.assume_multiple %563, 8 : i32
    %565 = arith.index_cast %564 : i32 to index
    %c0_101 = arith.constant 0 : index
    %566 = vector.load %arg6[%565, %c0_101] : memref<224x384xf32, #tpu.memory_space<vmem>>, vector<8x384xf32>
    %567 = arith.truncf %562 : vector<8x128xf32> to vector<8x128xbf16>
    %cst_102 = arith.constant dense<0.000000e+00> : vector<8x384xf32>
    %568 = tpu.matmul %567, %8, %cst_102 {dimension_numbers = #tpu.dot_dimension_numbers<[1], [0], [0], [1], [0, 0, 1, 1], [], []>} : vector<8x128xbf16>, vector<128x384xbf16>, vector<8x384xf32> -> vector<8x384xf32>
    %569 = vector.extract_strided_slice %566 {offsets = [0, 0], sizes = [8, 256], strides = [1, 1]} : vector<8x384xf32> to vector<8x256xf32>
    %570 = vector.extract_strided_slice %568 {offsets = [0, 0], sizes = [8, 256], strides = [1, 1]} : vector<8x384xf32> to vector<8x256xf32>
    %571 = arith.addf %569, %570 : vector<8x256xf32>
    %572 = arith.negf %571 : vector<8x256xf32>
    %573 = math.exp %572 : vector<8x256xf32>
    %cst_103 = arith.constant 1.000000e+00 : f32
    %574 = vector.broadcast %cst_103 : f32 to vector<8x256xf32>
    %575 = arith.addf %574, %573 : vector<8x256xf32>
    %576 = arith.divf %574, %575 : vector<8x256xf32>
    %577 = vector.extract_strided_slice %576 {offsets = [0, 0], sizes = [8, 128], strides = [1, 1]} : vector<8x256xf32> to vector<8x128xf32>
    %578 = vector.extract_strided_slice %576 {offsets = [0, 128], sizes = [8, 128], strides = [1, 1]} : vector<8x256xf32> to vector<8x128xf32>
    %579 = vector.extract_strided_slice %566 {offsets = [0, 256], sizes = [8, 128], strides = [1, 1]} : vector<8x384xf32> to vector<8x128xf32>
    %580 = vector.extract_strided_slice %568 {offsets = [0, 256], sizes = [8, 128], strides = [1, 1]} : vector<8x384xf32> to vector<8x128xf32>
    %581 = arith.addf %580, %11 : vector<8x128xf32>
    %582 = arith.mulf %577, %581 : vector<8x128xf32>
    %583 = arith.addf %579, %582 : vector<8x128xf32>
    %584 = math.tanh %583 : vector<8x128xf32>
    %585 = arith.subf %562, %584 : vector<8x128xf32>
    %586 = arith.mulf %578, %585 : vector<8x128xf32>
    %587 = arith.addf %584, %586 : vector<8x128xf32>
    %c23_i32 = arith.constant 23 : i32
    %c8_i32_104 = arith.constant 8 : i32
    %588 = arith.muli %c23_i32, %c8_i32_104 : i32
    %589 = tpu.assume_multiple %588, 8 : i32
    %590 = arith.index_cast %589 : i32 to index
    %c0_105 = arith.constant 0 : index
    %591 = vector.load %arg6[%590, %c0_105] : memref<224x384xf32, #tpu.memory_space<vmem>>, vector<8x384xf32>
    %592 = arith.truncf %587 : vector<8x128xf32> to vector<8x128xbf16>
    %cst_106 = arith.constant dense<0.000000e+00> : vector<8x384xf32>
    %593 = tpu.matmul %592, %8, %cst_106 {dimension_numbers = #tpu.dot_dimension_numbers<[1], [0], [0], [1], [0, 0, 1, 1], [], []>} : vector<8x128xbf16>, vector<128x384xbf16>, vector<8x384xf32> -> vector<8x384xf32>
    %594 = vector.extract_strided_slice %591 {offsets = [0, 0], sizes = [8, 256], strides = [1, 1]} : vector<8x384xf32> to vector<8x256xf32>
    %595 = vector.extract_strided_slice %593 {offsets = [0, 0], sizes = [8, 256], strides = [1, 1]} : vector<8x384xf32> to vector<8x256xf32>
    %596 = arith.addf %594, %595 : vector<8x256xf32>
    %597 = arith.negf %596 : vector<8x256xf32>
    %598 = math.exp %597 : vector<8x256xf32>
    %cst_107 = arith.constant 1.000000e+00 : f32
    %599 = vector.broadcast %cst_107 : f32 to vector<8x256xf32>
    %600 = arith.addf %599, %598 : vector<8x256xf32>
    %601 = arith.divf %599, %600 : vector<8x256xf32>
    %602 = vector.extract_strided_slice %601 {offsets = [0, 0], sizes = [8, 128], strides = [1, 1]} : vector<8x256xf32> to vector<8x128xf32>
    %603 = vector.extract_strided_slice %601 {offsets = [0, 128], sizes = [8, 128], strides = [1, 1]} : vector<8x256xf32> to vector<8x128xf32>
    %604 = vector.extract_strided_slice %591 {offsets = [0, 256], sizes = [8, 128], strides = [1, 1]} : vector<8x384xf32> to vector<8x128xf32>
    %605 = vector.extract_strided_slice %593 {offsets = [0, 256], sizes = [8, 128], strides = [1, 1]} : vector<8x384xf32> to vector<8x128xf32>
    %606 = arith.addf %605, %11 : vector<8x128xf32>
    %607 = arith.mulf %602, %606 : vector<8x128xf32>
    %608 = arith.addf %604, %607 : vector<8x128xf32>
    %609 = math.tanh %608 : vector<8x128xf32>
    %610 = arith.subf %587, %609 : vector<8x128xf32>
    %611 = arith.mulf %603, %610 : vector<8x128xf32>
    %612 = arith.addf %609, %611 : vector<8x128xf32>
    %c24_i32 = arith.constant 24 : i32
    %c8_i32_108 = arith.constant 8 : i32
    %613 = arith.muli %c24_i32, %c8_i32_108 : i32
    %614 = tpu.assume_multiple %613, 8 : i32
    %615 = arith.index_cast %614 : i32 to index
    %c0_109 = arith.constant 0 : index
    %616 = vector.load %arg6[%615, %c0_109] : memref<224x384xf32, #tpu.memory_space<vmem>>, vector<8x384xf32>
    %617 = arith.truncf %612 : vector<8x128xf32> to vector<8x128xbf16>
    %cst_110 = arith.constant dense<0.000000e+00> : vector<8x384xf32>
    %618 = tpu.matmul %617, %8, %cst_110 {dimension_numbers = #tpu.dot_dimension_numbers<[1], [0], [0], [1], [0, 0, 1, 1], [], []>} : vector<8x128xbf16>, vector<128x384xbf16>, vector<8x384xf32> -> vector<8x384xf32>
    %619 = vector.extract_strided_slice %616 {offsets = [0, 0], sizes = [8, 256], strides = [1, 1]} : vector<8x384xf32> to vector<8x256xf32>
    %620 = vector.extract_strided_slice %618 {offsets = [0, 0], sizes = [8, 256], strides = [1, 1]} : vector<8x384xf32> to vector<8x256xf32>
    %621 = arith.addf %619, %620 : vector<8x256xf32>
    %622 = arith.negf %621 : vector<8x256xf32>
    %623 = math.exp %622 : vector<8x256xf32>
    %cst_111 = arith.constant 1.000000e+00 : f32
    %624 = vector.broadcast %cst_111 : f32 to vector<8x256xf32>
    %625 = arith.addf %624, %623 : vector<8x256xf32>
    %626 = arith.divf %624, %625 : vector<8x256xf32>
    %627 = vector.extract_strided_slice %626 {offsets = [0, 0], sizes = [8, 128], strides = [1, 1]} : vector<8x256xf32> to vector<8x128xf32>
    %628 = vector.extract_strided_slice %626 {offsets = [0, 128], sizes = [8, 128], strides = [1, 1]} : vector<8x256xf32> to vector<8x128xf32>
    %629 = vector.extract_strided_slice %616 {offsets = [0, 256], sizes = [8, 128], strides = [1, 1]} : vector<8x384xf32> to vector<8x128xf32>
    %630 = vector.extract_strided_slice %618 {offsets = [0, 256], sizes = [8, 128], strides = [1, 1]} : vector<8x384xf32> to vector<8x128xf32>
    %631 = arith.addf %630, %11 : vector<8x128xf32>
    %632 = arith.mulf %627, %631 : vector<8x128xf32>
    %633 = arith.addf %629, %632 : vector<8x128xf32>
    %634 = math.tanh %633 : vector<8x128xf32>
    %635 = arith.subf %612, %634 : vector<8x128xf32>
    %636 = arith.mulf %628, %635 : vector<8x128xf32>
    %637 = arith.addf %634, %636 : vector<8x128xf32>
    %c25_i32 = arith.constant 25 : i32
    %c8_i32_112 = arith.constant 8 : i32
    %638 = arith.muli %c25_i32, %c8_i32_112 : i32
    %639 = tpu.assume_multiple %638, 8 : i32
    %640 = arith.index_cast %639 : i32 to index
    %c0_113 = arith.constant 0 : index
    %641 = vector.load %arg6[%640, %c0_113] : memref<224x384xf32, #tpu.memory_space<vmem>>, vector<8x384xf32>
    %642 = arith.truncf %637 : vector<8x128xf32> to vector<8x128xbf16>
    %cst_114 = arith.constant dense<0.000000e+00> : vector<8x384xf32>
    %643 = tpu.matmul %642, %8, %cst_114 {dimension_numbers = #tpu.dot_dimension_numbers<[1], [0], [0], [1], [0, 0, 1, 1], [], []>} : vector<8x128xbf16>, vector<128x384xbf16>, vector<8x384xf32> -> vector<8x384xf32>
    %644 = vector.extract_strided_slice %641 {offsets = [0, 0], sizes = [8, 256], strides = [1, 1]} : vector<8x384xf32> to vector<8x256xf32>
    %645 = vector.extract_strided_slice %643 {offsets = [0, 0], sizes = [8, 256], strides = [1, 1]} : vector<8x384xf32> to vector<8x256xf32>
    %646 = arith.addf %644, %645 : vector<8x256xf32>
    %647 = arith.negf %646 : vector<8x256xf32>
    %648 = math.exp %647 : vector<8x256xf32>
    %cst_115 = arith.constant 1.000000e+00 : f32
    %649 = vector.broadcast %cst_115 : f32 to vector<8x256xf32>
    %650 = arith.addf %649, %648 : vector<8x256xf32>
    %651 = arith.divf %649, %650 : vector<8x256xf32>
    %652 = vector.extract_strided_slice %651 {offsets = [0, 0], sizes = [8, 128], strides = [1, 1]} : vector<8x256xf32> to vector<8x128xf32>
    %653 = vector.extract_strided_slice %651 {offsets = [0, 128], sizes = [8, 128], strides = [1, 1]} : vector<8x256xf32> to vector<8x128xf32>
    %654 = vector.extract_strided_slice %641 {offsets = [0, 256], sizes = [8, 128], strides = [1, 1]} : vector<8x384xf32> to vector<8x128xf32>
    %655 = vector.extract_strided_slice %643 {offsets = [0, 256], sizes = [8, 128], strides = [1, 1]} : vector<8x384xf32> to vector<8x128xf32>
    %656 = arith.addf %655, %11 : vector<8x128xf32>
    %657 = arith.mulf %652, %656 : vector<8x128xf32>
    %658 = arith.addf %654, %657 : vector<8x128xf32>
    %659 = math.tanh %658 : vector<8x128xf32>
    %660 = arith.subf %637, %659 : vector<8x128xf32>
    %661 = arith.mulf %653, %660 : vector<8x128xf32>
    %662 = arith.addf %659, %661 : vector<8x128xf32>
    %c26_i32 = arith.constant 26 : i32
    %c8_i32_116 = arith.constant 8 : i32
    %663 = arith.muli %c26_i32, %c8_i32_116 : i32
    %664 = tpu.assume_multiple %663, 8 : i32
    %665 = arith.index_cast %664 : i32 to index
    %c0_117 = arith.constant 0 : index
    %666 = vector.load %arg6[%665, %c0_117] : memref<224x384xf32, #tpu.memory_space<vmem>>, vector<8x384xf32>
    %667 = arith.truncf %662 : vector<8x128xf32> to vector<8x128xbf16>
    %cst_118 = arith.constant dense<0.000000e+00> : vector<8x384xf32>
    %668 = tpu.matmul %667, %8, %cst_118 {dimension_numbers = #tpu.dot_dimension_numbers<[1], [0], [0], [1], [0, 0, 1, 1], [], []>} : vector<8x128xbf16>, vector<128x384xbf16>, vector<8x384xf32> -> vector<8x384xf32>
    %669 = vector.extract_strided_slice %666 {offsets = [0, 0], sizes = [8, 256], strides = [1, 1]} : vector<8x384xf32> to vector<8x256xf32>
    %670 = vector.extract_strided_slice %668 {offsets = [0, 0], sizes = [8, 256], strides = [1, 1]} : vector<8x384xf32> to vector<8x256xf32>
    %671 = arith.addf %669, %670 : vector<8x256xf32>
    %672 = arith.negf %671 : vector<8x256xf32>
    %673 = math.exp %672 : vector<8x256xf32>
    %cst_119 = arith.constant 1.000000e+00 : f32
    %674 = vector.broadcast %cst_119 : f32 to vector<8x256xf32>
    %675 = arith.addf %674, %673 : vector<8x256xf32>
    %676 = arith.divf %674, %675 : vector<8x256xf32>
    %677 = vector.extract_strided_slice %676 {offsets = [0, 0], sizes = [8, 128], strides = [1, 1]} : vector<8x256xf32> to vector<8x128xf32>
    %678 = vector.extract_strided_slice %676 {offsets = [0, 128], sizes = [8, 128], strides = [1, 1]} : vector<8x256xf32> to vector<8x128xf32>
    %679 = vector.extract_strided_slice %666 {offsets = [0, 256], sizes = [8, 128], strides = [1, 1]} : vector<8x384xf32> to vector<8x128xf32>
    %680 = vector.extract_strided_slice %668 {offsets = [0, 256], sizes = [8, 128], strides = [1, 1]} : vector<8x384xf32> to vector<8x128xf32>
    %681 = arith.addf %680, %11 : vector<8x128xf32>
    %682 = arith.mulf %677, %681 : vector<8x128xf32>
    %683 = arith.addf %679, %682 : vector<8x128xf32>
    %684 = math.tanh %683 : vector<8x128xf32>
    %685 = arith.subf %662, %684 : vector<8x128xf32>
    %686 = arith.mulf %678, %685 : vector<8x128xf32>
    %687 = arith.addf %684, %686 : vector<8x128xf32>
    %c27_i32 = arith.constant 27 : i32
    %c8_i32_120 = arith.constant 8 : i32
    %688 = arith.muli %c27_i32, %c8_i32_120 : i32
    %689 = tpu.assume_multiple %688, 8 : i32
    %690 = arith.index_cast %689 : i32 to index
    %c0_121 = arith.constant 0 : index
    %691 = vector.load %arg6[%690, %c0_121] : memref<224x384xf32, #tpu.memory_space<vmem>>, vector<8x384xf32>
    %692 = arith.truncf %687 : vector<8x128xf32> to vector<8x128xbf16>
    %cst_122 = arith.constant dense<0.000000e+00> : vector<8x384xf32>
    %693 = tpu.matmul %692, %8, %cst_122 {dimension_numbers = #tpu.dot_dimension_numbers<[1], [0], [0], [1], [0, 0, 1, 1], [], []>} : vector<8x128xbf16>, vector<128x384xbf16>, vector<8x384xf32> -> vector<8x384xf32>
    %694 = vector.extract_strided_slice %691 {offsets = [0, 0], sizes = [8, 256], strides = [1, 1]} : vector<8x384xf32> to vector<8x256xf32>
    %695 = vector.extract_strided_slice %693 {offsets = [0, 0], sizes = [8, 256], strides = [1, 1]} : vector<8x384xf32> to vector<8x256xf32>
    %696 = arith.addf %694, %695 : vector<8x256xf32>
    %697 = arith.negf %696 : vector<8x256xf32>
    %698 = math.exp %697 : vector<8x256xf32>
    %cst_123 = arith.constant 1.000000e+00 : f32
    %699 = vector.broadcast %cst_123 : f32 to vector<8x256xf32>
    %700 = arith.addf %699, %698 : vector<8x256xf32>
    %701 = arith.divf %699, %700 : vector<8x256xf32>
    %702 = vector.extract_strided_slice %701 {offsets = [0, 0], sizes = [8, 128], strides = [1, 1]} : vector<8x256xf32> to vector<8x128xf32>
    %703 = vector.extract_strided_slice %701 {offsets = [0, 128], sizes = [8, 128], strides = [1, 1]} : vector<8x256xf32> to vector<8x128xf32>
    %704 = vector.extract_strided_slice %691 {offsets = [0, 256], sizes = [8, 128], strides = [1, 1]} : vector<8x384xf32> to vector<8x128xf32>
    %705 = vector.extract_strided_slice %693 {offsets = [0, 256], sizes = [8, 128], strides = [1, 1]} : vector<8x384xf32> to vector<8x128xf32>
    %706 = arith.addf %705, %11 : vector<8x128xf32>
    %707 = arith.mulf %702, %706 : vector<8x128xf32>
    %708 = arith.addf %704, %707 : vector<8x128xf32>
    %709 = math.tanh %708 : vector<8x128xf32>
    %710 = arith.subf %687, %709 : vector<8x128xf32>
    %711 = arith.mulf %703, %710 : vector<8x128xf32>
    %712 = arith.addf %709, %711 : vector<8x128xf32>
    %c28_i32 = arith.constant 28 : i32
    %c0_124 = arith.constant 0 : index
    %c0_125 = arith.constant 0 : index
    %713 = vector.load %arg5[%c0_124, %c0_125] : memref<8x128xf32, #tpu.memory_space<vmem>>, vector<8x128xf32>
    tpu.vector_store %arg5[%c0_124, %c0_125], %712 {strides = array<i32>} : memref<8x128xf32, #tpu.memory_space<vmem>>, vector<8x128xf32>,
    return
  }
}

</mosaic_0001>

<bundles_post_ra>
// kernel: tpu_custom_call.1
= control target key start
LH: loop header
LB: loop body
LE: loop exit
PB: predicated region body
PF: predicated region fallthrough
CT: control target
= control target key end

     0   :  { %10 = vsyncpa [#allocation4], 0  ;;  %s7142_s0 = inlined_call_operand.vmem [shape: f32[224,28], index: 0, kind: input, shape index: {}]   ;;  %s7143_s1 = inlined_call_operand.vmem [shape: f32[28,384], index: 1, kind: input, shape index: {}]   ;;  %s7144_s2 = inlined_call_operand.hbm [shape: f32[128,384], index: 2, kind: input, shape index: {}]   ;;  %s7145_s3 = inlined_call_operand.vmem [shape: f32[1,384], index: 3, kind: input, shape index: {}]   ;;  %s7146_s4 = inlined_call_operand.vmem [shape: f32[1,128], index: 4, kind: input, shape index: {}]   ;;  %s7147_s5 = inlined_call_operand.hbm [shape: f32[8,128], index: 5, kind: output, shape index: {}]  }
   0x1   :  { %11 = vsyncpa [#allocation5], 0  ;;  %s5227_s18 = smov [#allocation3]  }
   0x2   :  { %s21_s19 = sshll.u32 %s5227_s18, 4  ;;  %s22_s19 = int_to_ptr.vmem [resolvable:$true] %s21_s19 }
   0x3   :  { %s5191_s20 = scalar_lea.vmem %s22_s19, 6144  ;;  %p5196_p1 = scmp.lt.s32.totalorder %s22_s19, %s22_s19 }
   0x4   :  { %p5192_p0 = scmp.ne.s32.totalorder %s22_s19, %s5191_s20  ;;  %p5197_p2 = scmp.lt.s32.totalorder %s5191_s20, %s5191_s20 }
   0x6   :  { %p5198_p3 = por %p5197_p2, %p5196_p1 }
   0x8   :  { %p5199_p4 = pnand %p5198_p3, %p5192_p0 }
   0xa   :  { %5202 = shalt.err (!%p5199_p4)
}
   0xb   :  { %s5228_s21 = smov 384   ;;  %s5229_s22 = smov 24  }
   0xc   :  { %27 = dma.hbm_to_vmem [thread:$0]  %s7144_s2, 6144, %s22_s19, [#allocation4], %s5228_s21, %s5228_s21, %s5229_s22  }
   0xd   :  { %5223 = dma.done.wait [#allocation4], 6144  }
   0xe   :  { %5224 = vsyncadd [#allocation4], 4294961152  ;;  %v7150_v0 = vmov 0.0   ;;  %vm178_vm0 = vcmask 1043456   ;;  %vm93_vm1 = vcmask 228352   ;;  %v72_v2 = vld [vmem:[%s7143_s1 + $0x40] sm:$0xff] }
   0xf   :  { %252 = vmatprep.mubr.f32.mxu0 %v7150_v0  ;;  %v75_v1 = vld [vmem:[%s7143_s1 + $0x58] sm:$0xf]  ;;  %v5278_v3 = vld [vmem:[%s7142_s0] sm:$0xff]  ;;  %v69_v4 = vld [vmem:[%s7143_s1 + $0x28] sm:$0xff]  ;;  %vm5232_vm2 = vmmov 0  }
  0x10   :  { %4283 = vmatprep.subr.msk.mxu1 %vm178_vm0, %v75_v1  ;;  %4291 = vmatprep.mubr.msk.f32.mxu1 %vm93_vm1, %v5278_v3  ;;  %v753_v5 = vld [vmem:[#allocation3 + $0x158] sm:$0xff]  ;;  %v756_v6 = vld [vmem:[#allocation3 + $0x170] sm:$0xff]  ;;  %v755_v8 = vld [vmem:[#allocation3 + $0x168] sm:$0xff] }
  0x11   :  { %4284 = vmatpush3.msk.msra.mxu1 %vm178_vm0, %v75_v1  ;;  %v752_v7 = vld [vmem:[#allocation3 + $0x150] sm:$0xff]  ;;  %v747_v10 = vld [vmem:[#allocation3 + $0x128] sm:$0xff]  ;;  %v750_v11 = vld [vmem:[#allocation3 + $0x140] sm:$0xff]  ;;  %v5289_v12 = vpack.c.bf16 %v756_v6, %v753_v5 }
  0x12   :  { %4285 = vmatprep.subr.mxu1 %v72_v2  ;;  %v66_v9 = vld [vmem:[%s7143_s1 + $0x10] sm:$0xff]  ;;  %v5294_v13 = vld [vmem:[%s7142_s0 + $0x8] sm:$0xff]  ;;  %v5296_v14 = vpack.c.bf16 %v755_v8, %v752_v7  ;;  %v5303_v16 = vpack.c.bf16 %v750_v11, %v747_v10  ;;  %v746_v17 = vld [vmem:[#allocation3 + $0x120] sm:$0xff] }
  0x13   :  { %4286 = vmatpush3.msra.mxu1 %v72_v2  ;;  %v5301_v15 = vld [vmem:[%s7142_s0 + $0x10] sm:$0xff]  ;;  %v749_v18 = vld [vmem:[#allocation3 + $0x138] sm:$0xff]  ;;  %v5321_v23 = vld [vmem:[%s7142_s0 + $0x20] sm:$0xff] }
  0x14   :  { %4287 = vmatprep.subr.mxu1 %v69_v4  ;;  %v741_v19 = vld [vmem:[#allocation3 + $0xf8] sm:$0xff]  ;;  %v744_v20 = vld [vmem:[#allocation3 + $0x110] sm:$0xff]  ;;  %v5316_v22 = vpack.c.bf16 %v749_v18, %v746_v17  ;;  %v743_v26 = vld [vmem:[#allocation3 + $0x108] sm:$0xff] }
  0x15   :  { %4288 = vmatpush3.msra.mxu1 %v69_v4  ;;  %v5314_v21 = vld [vmem:[%s7142_s0 + $0x18] sm:$0xff]  ;;  %v5324_v24 = vpack.c.bf16 %v744_v20, %v741_v19  ;;  %v740_v25 = vld [vmem:[#allocation3 + $0xf0] sm:$0xff]  ;;  %v735_v27 = vld [vmem:[#allocation3 + $0xc8] sm:$0xff] }
  0x16   :  { %4289 = vmatprep.subr.mxu1 %v66_v9  ;;  %v738_v28 = vld [vmem:[#allocation3 + $0xe0] sm:$0xff]  ;;  %v5333_v29 = vld [vmem:[%s7142_s0 + $0x28] sm:$0xff]  ;;  %v5336_v30 = vpack.c.bf16 %v743_v26, %v740_v25  ;;  %v5341_v31 = vld [vmem:[%s7142_s0 + $0x30] sm:$0xff] }
  0x17   :  { %4290 = vmatpush3.msra.mxu1 %v66_v9  ;;  %v5344_v32 = vpack.c.bf16 %v738_v28, %v735_v27  ;;  %v734_v33 = vld [vmem:[#allocation3 + $0xc0] sm:$0xff]  ;;  %v737_v34 = vld [vmem:[#allocation3 + $0xd8] sm:$0xff]  ;;  %v732_v36 = vld [vmem:[#allocation3 + $0xb0] sm:$0xff] }
  0x18   :  { %4292 = vmatmul.mubr.msk.f32.vlgmr.msra.gmra.mxu1 %vm93_vm1, %v5294_v13  ;;  %795 = vmatprep.subr.bf16.mxu1 %v5289_v12  ;;  %v729_v35 = vld [vmem:[#allocation3 + $0x98] sm:$0xff]  ;;  %v5358_v38 = vld [vmem:[%s7142_s0 + $0x40] sm:$0xff]  ;;  %v5361_v39 = vpack.c.bf16 %v737_v34, %v734_v33  ;;  %v728_v40 = vld [vmem:[#allocation3 + $0x90] sm:$0xff] }
  0x19   :  { %796 = vmatpush1.bf16.msra.mxu1 %v5296_v14  ;;  %4294 = vmatprep.mubr.msk.f32.mxu1 %vm93_vm1, %v5301_v15  ;;  %v5351_v37 = vld [vmem:[%s7142_s0 + $0x38] sm:$0xff]  ;;  %v74_v41 = vld [vmem:[%s7143_s1 + $0x50] sm:$0xf]  ;;  %v5367_v42 = vpack.c.bf16 %v732_v36, %v729_v35  ;;  %v731_v43 = vld [vmem:[#allocation3 + $0xa8] sm:$0xff]  ;;  %v7148_v35 = vmov 0  }
  0x1a   :  { %797 = vmatprep.subr.bf16.mxu1 %v5303_v16  ;;  %3883 = vmatprep.subr.msk.mxu0 %vm178_vm0, %v74_v41  ;;  %v73_v44 = vld [vmem:[%s7143_s1 + $0x48] sm:$0xf]  ;;  %v71_v45 = vld [vmem:[%s7143_s1 + $0x38] sm:$0xff]  ;;  %v726_v47 = vld [vmem:[#allocation3 + $0x80] sm:$0xff]  ;;  %v5393_v51 = vpack.c.bf16 %v731_v43, %v728_v40 }
  0x1b   :  { %v723_v46 = vld [vmem:[#allocation3 + $0x68] sm:$0xff]  ;;  %3884 = vmatpush1.msk.msra.mxu0 %vm178_vm0, %v73_v44  ;;  %v70_v48 = vld [vmem:[%s7143_s1 + $0x30] sm:$0xff]  ;;  %v68_v49 = vld [vmem:[%s7143_s1 + $0x20] sm:$0xff] }
  0x1c   :  { %4295 = vmatmul.mubr.msk.f32.gmra.mxu1 %vm93_vm1, %v5314_v21  ;;  %214 = vmatprep.subr.mxu0 %v71_v45  ;;  %v5390_v50 = vld [vmem:[%s7142_s0 + $0x48] sm:$0xff]  ;;  %v67_v52 = vld [vmem:[%s7143_s1 + $0x18] sm:$0xff]  ;;  %v5401_v53 = vld [vmem:[%s7142_s0 + $0x50] sm:$0xff]  ;;  %v5404_v54 = vpack.c.bf16 %v726_v47, %v723_v46 }
  0x1d   :  { %4297 = vmatprep.mubr.msk.f32.mxu1 %vm93_vm1, %v5321_v23  ;;  %798 = vmatpush1.bf16.msra.mxu1 %v5316_v22  ;;  %v722_v55 = vld [vmem:[#allocation3 + $0x60] sm:$0xff]  ;;  %v725_v56 = vld [vmem:[#allocation3 + $0x78] sm:$0xff]  ;;  %v720_v58 = vld [vmem:[#allocation3 + $0x50] sm:$0xff] }
  0x1e   :  { %799 = vmatprep.subr.bf16.mxu1 %v5324_v24  ;;  %215 = vmatpush1.msra.mxu0 %v70_v48  ;;  %v717_v57 = vld [vmem:[#allocation3 + $0x38] sm:$0xff]  ;;  %v65_v59 = vld [vmem:[%s7143_s1 + $0x8] sm:$0xff]  ;;  %v64_v60 = vld [vmem:[%s7143_s1] sm:$0xff]  ;;  %v5422_v62 = vpack.c.bf16 %v725_v56, %v722_v55 }
  0x1f   :  { %216 = vmatprep.subr.mxu0 %v68_v49  ;;  %v5419_v61 = vld [vmem:[%s7142_s0 + $0x58] sm:$0xff]  ;;  %v5427_v63 = vld [vmem:[%s7142_s0 + $0x60] sm:$0xff]  ;;  %v5430_v1 = vpack.c.bf16 %v720_v58, %v717_v57  ;;  %v716_v2 = vld [vmem:[#allocation3 + $0x30] sm:$0xff] }
  0x20   :  { %4298 = vmatmul.mubr.msk.f32.gmra.mxu1 %vm93_vm1, %v5333_v29  ;;  %217 = vmatpush1.msra.mxu0 %v67_v52  ;;  %v719_v4 = vld [vmem:[#allocation3 + $0x48] sm:$0xff]  ;;  %v714_v6 = vld [vmem:[#allocation3 + $0x20] sm:$0xff]  ;;  %v5449_v9 = vld [vmem:[%s7142_s0 + $0x70] sm:$0xff] }
  0x21   :  { %4300 = vmatprep.mubr.msk.f32.mxu1 %vm93_vm1, %v5341_v31  ;;  %800 = vmatpush1.bf16.msra.mxu1 %v5336_v30  ;;  %v711_v5 = vld [vmem:[#allocation3 + $0x8] sm:$0xff]  ;;  %v5444_v8 = vpack.c.bf16 %v719_v4, %v716_v2  ;;  %v710_v10 = vld [vmem:[#allocation3] sm:$0xff]  ;;  %v713_v11 = vld [vmem:[#allocation3 + $0x18] sm:$0xff] }
  0x22   :  { %801 = vmatprep.subr.bf16.mxu1 %v5344_v32  ;;  %218 = vmatprep.subr.mxu0 %v65_v59  ;;  %v5441_v7 = vld [vmem:[%s7142_s0 + $0x68] sm:$0xff]  ;;  %v5466_v17 = vld [vmem:[%s7142_s0 + $0x78] sm:$0xff]  ;;  %v5469_v18 = vpack.c.bf16 %v713_v11, %v710_v10  ;;  %v5474_v19 = vld [vmem:[%s7142_s0 + $0x80] sm:$0xff] }
  0x23   :  { %219 = vmatpush1.msra.mxu0 %v64_v60  ;;  %v5494_v20 = vld [vmem:[%s7142_s0 + $0x90] sm:$0xff]  ;;  %v5514_v25 = vld [vmem:[%s7142_s0 + $0xa0] sm:$0xff]  ;;  %v5565_v28 = vld [vmem:[%s7142_s0 + $0xc8] sm:$0xff] }
  0x24   :  { %4301 = vmatmul.mubr.msk.f32.gmra.mxu1 %vm93_vm1, %v5351_v37  ;;  %3885 = vmatmul.mubr.msk.f32.vlgmr.msra.gmra.mxu0 %vm93_vm1, %v5278_v3  ;;  %v5452_v3 = vpack.c.bf16 %v714_v6, %v711_v5  ;;  %v5533_v26 = vld [vmem:[%s7142_s0 + $0xb0] sm:$0xff]  ;;  %v5552_v27 = vld [vmem:[%s7142_s0 + $0xc0] sm:$0xff]  ;;  %v757_v34 = vld [vmem:[#allocation3 + $0x178] sm:$0xff] }
  0x25   :  { %4303 = vmatprep.mubr.msk.f32.mxu1 %vm93_vm1, %v5358_v38  ;;  %802 = vmatpush1.bf16.msra.mxu1 %v5361_v39  ;;  %v754_v33 = vld [vmem:[#allocation3 + $0x160] sm:$0xff]  ;;  %v751_v40 = vld [vmem:[#allocation3 + $0x148] sm:$0xff]  ;;  %v745_v43 = vld [vmem:[#allocation3 + $0x118] sm:$0xff] }
  0x26   :  { %803 = vmatprep.subr.bf16.mxu1 %v5367_v42  ;;  %904 = vmatprep.subr.bf16.mxu0 %v5289_v12  ;;  %v5594_v36 = vpack.c.bf16 %v757_v34, %v754_v33  ;;  %v742_v41 = vld [vmem:[#allocation3 + $0x100] sm:$0xff]  ;;  %v736_v45 = vld [vmem:[#allocation3 + $0xd0] sm:$0xff]  ;;  %v739_v46 = vld [vmem:[#allocation3 + $0xe8] sm:$0xff] }
  0x27   :  { %905 = vmatpush1.bf16.msra.mxu0 %v5296_v14  ;;  %258 = vmatprep.mubr.f32.mxu0 %v7150_v0  ;;  %v5613_v44 = vpack.c.bf16 %v745_v43, %v742_v41  ;;  %v5620_v47 = vpack.c.bf16 %v739_v46, %v736_v45  ;;  %v730_v48 = vld [vmem:[#allocation3 + $0xa0] sm:$0xff]  ;;  %v733_v49 = vld [vmem:[#allocation3 + $0xb8] sm:$0xff]  ;;  %v724_v52 = vld [vmem:[#allocation3 + $0x70] sm:$0xff] }
  0x28   :  { %4304 = vmatmul.mubr.msk.f32.gmra.mxu1 %vm93_vm1, %v5390_v50  ;;  %3886 = vmatmul.mubr.msk.f32.gmra.mxu0 %vm93_vm1, %v5294_v13  ;;  %v5488_v13 = vld [vmem:[%s7142_s0 + $0x88] sm:$0xff]  ;;  %v718_v56 = vld [vmem:[#allocation3 + $0x40] sm:$0xff]  ;;  %v721_v57 = vld [vmem:[#allocation3 + $0x58] sm:$0xff] }
  0x29   :  { %4306 = vmatprep.mubr.msk.f32.mxu1 %vm93_vm1, %v5401_v53  ;;  %804 = vmatpush1.bf16.msra.mxu1 %v5393_v51  ;;  %v5641_v58 = vpack.c.bf16 %v721_v57, %v718_v56  ;;  %v712_v59 = vld [vmem:[#allocation3 + $0x10] sm:$0xff]  ;;  %v715_v60 = vld [vmem:[#allocation3 + $0x28] sm:$0xff]  ;;  %v76_v5 = vld [vmem:[%s7145_s3] sm:$0x7] }
  0x2a   :  { %805 = vmatprep.subr.bf16.mxu1 %v5404_v54  ;;  %264 = vmatprep.mubr.f32.mxu0 %v7150_v0 }
  0x2b   :  { %906 = vmatprep.subr.bf16.mxu0 %v5303_v16 }
  0x2c   :  { %4307 = vmatmul.mubr.msk.f32.gmra.mxu1 %vm93_vm1, %v5419_v61  ;;  %3887 = vmatmul.mubr.msk.f32.gmra.mxu0 %vm93_vm1, %v5301_v15  ;;  %v5508_v15 = vld [vmem:[%s7142_s0 + $0x98] sm:$0xff] }
  0x2d   :  { %4309 = vmatprep.mubr.msk.f32.mxu1 %vm93_vm1, %v5427_v63  ;;  %806 = vmatpush1.bf16.msra.mxu1 %v5422_v62 }
  0x2e   :  { %807 = vmatprep.subr.bf16.mxu1 %v5430_v1  ;;  %270 = vmatprep.mubr.f32.mxu0 %v7150_v0 }
  0x2f   :  { %907 = vmatpush1.bf16.msra.mxu0 %v5316_v22 }
  0x30   :  { %4310 = vmatmul.mubr.msk.f32.gmra.mxu1 %vm93_vm1, %v5441_v7  ;;  %3888 = vmatmul.mubr.msk.f32.gmra.mxu0 %vm93_vm1, %v5314_v21  ;;  %v5527_v21 = vld [vmem:[%s7142_s0 + $0xa8] sm:$0xff] }
  0x31   :  { %4312 = vmatprep.mubr.msk.f32.mxu1 %vm93_vm1, %v5449_v9  ;;  %808 = vmatpush1.bf16.msra.mxu1 %v5444_v8 }
  0x32   :  { %809 = vmatprep.subr.bf16.mxu1 %v5452_v3  ;;  %276 = vmatprep.mubr.f32.mxu0 %v7150_v0 }
  0x33   :  { %908 = vmatprep.subr.bf16.mxu0 %v5324_v24 }
  0x34   :  { %4313 = vmatmul.mubr.msk.f32.gmra.mxu1 %vm93_vm1, %v5466_v17  ;;  %909 = vmatpush1.bf16.msra.mxu0 %v5336_v30 }
  0x35   :  { %4315 = vmatprep.mubr.msk.f32.mxu1 %vm93_vm1, %v5474_v19  ;;  %810 = vmatpush1.bf16.msra.mxu1 %v5469_v18 }
  0x36   :  { %4333 = vmatprep.subr.bf16.mxu1 %v7150_v0  ;;  %3889 = vmatmul.mubr.msk.f32.gmra.mxu0 %vm93_vm1, %v5321_v23  ;;  %v5546_v23 = vld [vmem:[%s7142_s0 + $0xb8] sm:$0xff] }
  0x37   :  { %282 = vmatprep.mubr.f32.mxu0 %v7150_v0  ;;  %910 = vmatprep.subr.bf16.mxu0 %v5344_v32 }
  0x38   :  { %4316 = vmatmul.mubr.msk.f32.gmra.mxu1 %vm93_vm1, %v5488_v13  ;;  %911 = vmatpush1.bf16.msra.mxu0 %v5361_v39 }
  0x39   :  { %4318 = vmatprep.mubr.msk.f32.mxu1 %vm93_vm1, %v5494_v20  ;;  %912 = vmatprep.subr.bf16.mxu0 %v5367_v42 }
  0x3a   :  { %3890 = vmatmul.mubr.msk.f32.gmra.mxu0 %vm93_vm1, %v5333_v29  ;;  %v5571_v29 = vld [vmem:[%s7142_s0 + $0xd0] sm:$0xff] }
  0x3b   :  { %288 = vmatprep.mubr.f32.mxu0 %v7150_v0 }
  0x3c   :  { %4319 = vmatmul.mubr.msk.f32.gmra.mxu1 %vm93_vm1, %v5508_v15  ;;  %913 = vmatpush1.bf16.msra.mxu0 %v5393_v51 }
  0x3d   :  { %4321 = vmatprep.mubr.msk.f32.mxu1 %vm93_vm1, %v5514_v25  ;;  %914 = vmatprep.subr.bf16.mxu0 %v5404_v54 }
  0x3e   :  { %3891 = vmatmul.mubr.msk.f32.gmra.mxu0 %vm93_vm1, %v5341_v31  ;;  %v5584_v31 = vld [vmem:[%s7142_s0 + $0xd8] sm:$0xff] }
  0x3f   :  { %294 = vmatprep.mubr.f32.mxu0 %v7150_v0 }
  0x40   :  { %4322 = vmatmul.mubr.msk.f32.gmra.mxu1 %vm93_vm1, %v5527_v21  ;;  %915 = vmatpush1.bf16.msra.mxu0 %v5422_v62 }
  0x41   :  { %4324 = vmatprep.mubr.msk.f32.mxu1 %vm93_vm1, %v5533_v26  ;;  %916 = vmatprep.subr.bf16.mxu0 %v5430_v1 }
  0x42   :  { %3892 = vmatmul.mubr.msk.f32.gmra.mxu0 %vm93_vm1, %v5351_v37  ;;  %v748_v37 = vld [vmem:[#allocation3 + $0x130] sm:$0xff] }
  0x43   :  { %300 = vmatprep.mubr.f32.mxu0 %v7150_v0 }
  0x44   :  { %4325 = vmatmul.mubr.msk.f32.gmra.mxu1 %vm93_vm1, %v5546_v23  ;;  %917 = vmatpush1.bf16.msra.mxu0 %v5444_v8 }
  0x45   :  { %4327 = vmatprep.mubr.msk.f32.mxu1 %vm93_vm1, %v5552_v27  ;;  %918 = vmatprep.subr.bf16.mxu0 %v5452_v3 }
  0x46   :  { %3893 = vmatmul.mubr.msk.f32.gmra.mxu0 %vm93_vm1, %v5358_v38  ;;  %v5603_v38 = vpack.c.bf16 %v751_v40, %v748_v37 }
  0x47   :  { %306 = vmatprep.mubr.f32.mxu0 %v7150_v0 }
  0x48   :  { %4328 = vmatmul.mubr.msk.f32.gmra.mxu1 %vm93_vm1, %v5565_v28  ;;  %919 = vmatpush1.bf16.msra.mxu0 %v5469_v18 }
  0x49   :  { %4330 = vmatprep.mubr.msk.f32.mxu1 %vm93_vm1, %v5571_v29  ;;  %1013 = vmatprep.subr.bf16.mxu0 %v5289_v12 }
  0x4a   :  { %3894 = vmatmul.mubr.msk.f32.gmra.mxu0 %vm93_vm1, %v5390_v50  ;;  %v5627_v50 = vpack.c.bf16 %v733_v49, %v730_v48 }
  0x4b   :  { %312 = vmatprep.mubr.f32.mxu0 %v7150_v0 }
  0x4c   :  { %4331 = vmatmul.mubr.msk.f32.gmra.mxu1 %vm93_vm1, %v5584_v31 }
  0x4d   :  { %827 = vmatprep.mubr.bf16.mxu1 %v7148_v35 }
  0x4e   :  { %3895 = vmatmul.mubr.msk.f32.gmra.mxu0 %vm93_vm1, %v5401_v53  ;;  %v727_v53 = vld [vmem:[#allocation3 + $0x88] sm:$0xff] }
  0x4f   :  { %318 = vmatprep.mubr.f32.mxu0 %v7150_v0  ;;  %v5634_v55 = vpack.c.bf16 %v727_v53, %v724_v52 }
  0x50   :  { %828 = vmatmul.mubr.bf16.vlgmr.msra.gmra.mxu1 %v7148_v35 }
  0x51   :  { %4334 = vmatpush3.bf16.msra.mxu1 %v5594_v36  ;;  %4349 = vmatprep.mubr.msk.bf16.mxu1 %vm5232_vm2, %v7150_v0 }
  0x52   :  { %4335 = vmatprep.subr.bf16.mxu1 %v7150_v0  ;;  %3896 = vmatmul.mubr.msk.f32.gmra.mxu0 %vm93_vm1, %v5419_v61  ;;  %v5648_v61 = vpack.c.bf16 %v715_v60, %v712_v59 }
  0x53   :  { %324 = vmatprep.mubr.f32.mxu0 %v7150_v0 }
  0x55   :  { %4336 = vmatpush3.bf16.msra.mxu1 %v5603_v38 }
  0x56   :  { %4337 = vmatprep.subr.bf16.mxu1 %v7150_v0  ;;  %3897 = vmatmul.mubr.msk.f32.gmra.mxu0 %vm93_vm1, %v5427_v63  ;;  %v78_v63 = vlaneseq }
  0x57   :  { %330 = vmatprep.mubr.f32.mxu0 %v7150_v0 }
  0x58   :  { %v5709_v2 = vshrl.u32 %v78_v63, 7 }
  0x59   :  { %4338 = vmatpush3.bf16.msra.mxu1 %v5613_v44 }
  0x5a   :  { %4339 = vmatprep.subr.bf16.mxu1 %v7150_v0  ;;  %3898 = vmatmul.mubr.msk.f32.gmra.mxu0 %vm93_vm1, %v5441_v7  ;;  %v88_v4 = vsub.s32 2, %v5709_v2 }
  0x5b   :  { %336 = vmatprep.mubr.f32.mxu0 %v7150_v0 }
  0x5c   :  { %v5715_v6 = vrot.slane %v76_v5, %v88_v4 }
  0x5d   :  { %4340 = vmatpush3.bf16.msra.mxu1 %v5620_v47 }
  0x5e   :  { %4341 = vmatprep.subr.bf16.mxu1 %v7150_v0  ;;  %3899 = vmatmul.mubr.msk.f32.gmra.mxu0 %vm93_vm1, %v5449_v9 }
  0x5f   :  { %342 = vmatprep.mubr.f32.mxu0 %v7150_v0 }
  0x61   :  { %4342 = vmatpush3.bf16.msra.mxu1 %v5627_v50 }
  0x62   :  { %4343 = vmatprep.subr.bf16.mxu1 %v7150_v0  ;;  %3900 = vmatmul.mubr.msk.f32.gmra.mxu0 %vm93_vm1, %v5466_v17 }
  0x63   :  { %348 = vmatprep.mubr.f32.mxu0 %v7150_v0 }
  0x65   :  { %4344 = vmatpush3.bf16.msra.mxu1 %v5634_v55 }
  0x66   :  { %4345 = vmatprep.subr.bf16.mxu1 %v7150_v0  ;;  %3901 = vmatmul.mubr.msk.f32.gmra.mxu0 %vm93_vm1, %v5474_v19 }
  0x67   :  { %354 = vmatprep.mubr.f32.mxu0 %v7150_v0 }
  0x69   :  { %4346 = vmatpush3.bf16.msra.mxu1 %v5641_v58 }
  0x6a   :  { %4347 = vmatprep.subr.bf16.mxu1 %v7150_v0  ;;  %3902 = vmatmul.mubr.msk.f32.gmra.mxu0 %vm93_vm1, %v5488_v13 }
  0x6b   :  { %360 = vmatprep.mubr.f32.mxu0 %v7150_v0 }
  0x6d   :  { %4348 = vmatpush3.bf16.msra.mxu1 %v5648_v61 }
  0x6e   :  { %4353 = vmatprep.subr.bf16.mxu1 %v7150_v0  ;;  %3903 = vmatmul.mubr.msk.f32.gmra.mxu0 %vm93_vm1, %v5494_v20 }
  0x6f   :  { %366 = vmatprep.mubr.f32.mxu0 %v7150_v0 }
  0x70   :  { %4350 = vmatmul.mubr.bf16.vlgmr.msra.gmra.mxu1 %v7148_v35 }
  0x71   :  { %4354 = vmatpush3.bf16.msra.mxu1 %v5594_v36  ;;  %4369 = vmatprep.mubr.msk.bf16.mxu1 %vm5232_vm2, %v7150_v0 }
  0x72   :  { %4355 = vmatprep.subr.bf16.mxu1 %v7150_v0  ;;  %3904 = vmatmul.mubr.msk.f32.gmra.mxu0 %vm93_vm1, %v5508_v15 }
  0x73   :  { %372 = vmatprep.mubr.f32.mxu0 %v7150_v0 }
  0x75   :  { %4356 = vmatpush3.bf16.msra.mxu1 %v5603_v38 }
  0x76   :  { %4357 = vmatprep.subr.bf16.mxu1 %v7150_v0  ;;  %3905 = vmatmul.mubr.msk.f32.gmra.mxu0 %vm93_vm1, %v5514_v25 }
  0x77   :  { %378 = vmatprep.mubr.f32.mxu0 %v7150_v0 }
  0x79   :  { %4358 = vmatpush3.bf16.msra.mxu1 %v5613_v44 }
  0x7a   :  { %4359 = vmatprep.subr.bf16.mxu1 %v7150_v0  ;;  %3906 = vmatmul.mubr.msk.f32.gmra.mxu0 %vm93_vm1, %v5527_v21 }
  0x7b   :  { %384 = vmatprep.mubr.f32.mxu0 %v7150_v0 }
  0x7d   :  { %4360 = vmatpush3.bf16.msra.mxu1 %v5620_v47 }
  0x7e   :  { %4361 = vmatprep.subr.bf16.mxu1 %v7150_v0  ;;  %3907 = vmatmul.mubr.msk.f32.gmra.mxu0 %vm93_vm1, %v5533_v26 }
  0x7f   :  { %390 = vmatprep.mubr.f32.mxu0 %v7150_v0 }
  0x81   :  { %4362 = vmatpush3.bf16.msra.mxu1 %v5627_v50 }
  0x82   :  { %4363 = vmatprep.subr.bf16.mxu1 %v7150_v0  ;;  %3908 = vmatmul.mubr.msk.f32.gmra.mxu0 %vm93_vm1, %v5546_v23 }
  0x83   :  { %396 = vmatprep.mubr.f32.mxu0 %v7150_v0 }
  0x85   :  { %4364 = vmatpush3.bf16.msra.mxu1 %v5634_v55 }
  0x86   :  { %4365 = vmatprep.subr.bf16.mxu1 %v7150_v0  ;;  %3909 = vmatmul.mubr.msk.f32.gmra.mxu0 %vm93_vm1, %v5552_v27 }
  0x87   :  { %402 = vmatprep.mubr.f32.mxu0 %v7150_v0 }
  0x89   :  { %4366 = vmatpush3.bf16.msra.mxu1 %v5641_v58 }
  0x8a   :  { %4367 = vmatprep.subr.bf16.mxu1 %v7150_v0  ;;  %3910 = vmatmul.mubr.msk.f32.gmra.mxu0 %vm93_vm1, %v5565_v28 }
  0x8b   :  { %408 = vmatprep.mubr.f32.mxu0 %v7150_v0 }
  0x8d   :  { %4368 = vmatpush3.bf16.msra.mxu1 %v5648_v61 }
  0x8e   :  { %4373 = vmatprep.subr.bf16.mxu1 %v7150_v0  ;;  %3911 = vmatmul.mubr.msk.f32.gmra.mxu0 %vm93_vm1, %v5571_v29 }
  0x8f   :  { %414 = vmatprep.mubr.f32.mxu0 %v7150_v0 }
  0x92   :  { %3912 = vmatmul.mubr.msk.f32.gmra.mxu0 %vm93_vm1, %v5584_v31 }
  0x93   :  { %936 = vmatprep.mubr.bf16.mxu0 %v7148_v35 }
  0xd8   :  { %v4293_v7 = vpop.f32.mrf.mxu1 }
  0xd9   :  { %v5718_v9 = vadd.f32 %v4293_v7, %v5715_v6 }
  0xda   :  { %v5720_v10 = vpop.f32.mrf.mxu1 }
  0xdc   :  { %v4296_v11 = vpop.f32.mrf.mxu1 }
  0xdd   :  { %v5723_v17 = vadd.f32 %v4296_v11, %v5715_v6 }
  0xde   :  { %v5725_v19 = vpop.f32.mrf.mxu1 }
  0xe0   :  { %v4299_v13 = vpop.f32.mrf.mxu1 }
  0xe1   :  { %v5728_v20 = vadd.f32 %v4299_v13, %v5715_v6 }
  0xe2   :  { %v507_v15 = vpop.f32.mrf.mxu1 }
  0xe3   :  { %v5731_v25 = vadd.f32 %v507_v15, %v5715_v6 }
  0xe4   :  { %v4302_v21 = vpop.f32.mrf.mxu1 }
  0xe5   :  { %v5734_v26 = vadd.f32 %v4302_v21, %v5715_v6 }
  0xe6   :  { %v5736_v23 = vpop.f32.mrf.mxu1 }
  0xe7   :  { %7152 = vst [vmem:[#allocation9_spill] sm:$0xff] %v5734_v26  ;;  %7153 = vst [vmem:[#allocation10_spill] sm:$0xff] %v5736_v23 }
  0xe8   :  { %v4305_v27 = vpop.f32.mrf.mxu1 }
  0xe9   :  { %v5739_v28 = vadd.f32 %v4305_v27, %v5715_v6  ;;  %v80_v27 = vsub.s32 0, %v5709_v2 }
  0xea   :  { %v527_v29 = vpop.f32.mrf.mxu1 }
  0xeb   :  { %7154 = vst [vmem:[#allocation11_spill] sm:$0xff] %v5739_v28  ;;  %v5742_v31 = vadd.f32 %v527_v29, %v5715_v6 }
  0xec   :  { %v4308_v33 = vpop.f32.mrf.mxu1 }
  0xed   :  { %7155 = vst [vmem:[#allocation12_spill] sm:$0xff] %v5742_v31  ;;  %v5745_v34 = vadd.f32 %v4308_v33, %v5715_v6 }
  0xee   :  { %v5747_v37 = vpop.f32.mrf.mxu1 }
  0xef   :  { %7156 = vst [vmem:[#allocation13_spill] sm:$0xff] %v5745_v34  ;;  %7157 = vst [vmem:[#allocation14_spill] sm:$0xff] %v5747_v37 }
  0xf0   :  { %v4311_v40 = vpop.f32.mrf.mxu1 }
  0xf1   :  { %v5750_v41 = vadd.f32 %v4311_v40, %v5715_v6 }
  0xf2   :  { %v547_v43 = vpop.f32.mrf.mxu1 }
  0xf3   :  { %7158 = vst [vmem:[#allocation15_spill] sm:$0xff] %v5750_v41  ;;  %v5753_v45 = vadd.f32 %v547_v43, %v5715_v6  ;;  %v5786_v43 = vrot.slane %v76_v5, %v80_v27 }
  0xf4   :  { %v4314_v46 = vpop.f32.mrf.mxu1 }
  0xf5   :  { %7159 = vst [vmem:[#allocation16_spill] sm:$0xff] %v5753_v45  ;;  %v5756_v48 = vadd.f32 %v4314_v46, %v5715_v6 }
  0xf6   :  { %v5758_v49 = vpop.f32.mrf.mxu1 }
  0xf7   :  { %7160 = vst [vmem:[#allocation17_spill] sm:$0xff] %v5756_v48  ;;  %7161 = vst [vmem:[#allocation18_spill] sm:$0xff] %v5758_v49 }
  0xf8   :  { %v4317_v52 = vpop.f32.mrf.mxu1 }
  0xf9   :  { %v5761_v53 = vadd.f32 %v4317_v52, %v5715_v6 }
  0xfa   :  { %v567_v56 = vpop.f32.mrf.mxu1 }
  0xfb   :  { %7162 = vst [vmem:[#allocation19_spill] sm:$0xff] %v5761_v53  ;;  %v5764_v57 = vadd.f32 %v567_v56, %v5715_v6 }
  0xfc   :  { %v4320_v59 = vpop.f32.mrf.mxu1 }
  0xfd   :  { %7163 = vst [vmem:[#allocation20_spill] sm:$0xff] %v5764_v57  ;;  %v5767_v60 = vadd.f32 %v4320_v59, %v5715_v6  ;;  %v254_v59 = vpop.f32.mrf.mxu0 }
  0xfe   :  { %v5769_v63 = vpop.f32.mrf.mxu1 }
  0xff   :  { %7164 = vst [vmem:[#allocation21_spill] sm:$0xff] %v5767_v60  ;;  %7165 = vst [vmem:[#allocation22_spill] sm:$0xff] %v5769_v63 }
 0x100   :  { %v4323_v4 = vpop.f32.mrf.mxu1 }
 0x101   :  { %v5772_v7 = vadd.f32 %v4323_v4, %v5715_v6 }
 0x102   :  { %v587_v11 = vpop.f32.mrf.mxu1 }
 0x103   :  { %7166 = vst [vmem:[#allocation23_spill] sm:$0xff] %v5772_v7  ;;  %v5775_v13 = vadd.f32 %v587_v11, %v5715_v6  ;;  %v255_v11 = vadd.f32 %v254_v59, %v5786_v43 }
 0x104   :  { %v4326_v15 = vpop.f32.mrf.mxu1 }
 0x105   :  { %7167 = vst [vmem:[#allocation24_spill] sm:$0xff] %v5775_v13  ;;  %v5778_v21 = vadd.f32 %v4326_v15, %v5715_v6 }
 0x106   :  { %v5781_v29 = vpop.f32.mrf.mxu1 }
 0x107   :  { %7168 = vst [vmem:[#allocation25_spill] sm:$0xff] %v5778_v21  ;;  %7169 = vst [vmem:[#allocation26_spill] sm:$0xff] %v5781_v29 }
 0x108   :  { %v4329_v33 = vpop.f32.mrf.mxu1 }
 0x109   :  { %v5784_v40 = vadd.f32 %v4329_v33, %v5715_v6  ;;  %v84_v33 = vsub.s32 1, %v5709_v2 }
 0x10a   :  { %v607_v46 = vpop.f32.mrf.mxu1 }
 0x10b   :  { %7170 = vst [vmem:[#allocation27_spill] sm:$0xff] %v5784_v40  ;;  %v5789_v52 = vadd.f32 %v607_v46, %v5715_v6  ;;  %v5798_v29 = vrot.slane %v76_v5, %v84_v33 }
 0x10c   :  { %v4332_v56 = vpop.f32.mrf.mxu1 }
 0x10d   :  { %7171 = vst [vmem:[#allocation28_spill] sm:$0xff] %v5789_v52  ;;  %v5792_v4 = vadd.f32 %v4332_v56, %v5715_v6  ;;  %v256_v52 = vpop.f32.mrf.mxu0 }
 0x10e   :  { %v5795_v15 = vpop.f32.mrf.mxu1  ;;  %v257_v7 = vadd.f32 %v256_v52, %v5798_v29  ;;  %v488_v52 = vadd.f32 %v5720_v10, %v5715_v6 }
 0x10f   :  { %7172 = vst [vmem:[#allocation29_spill] sm:$0xff] %v5792_v4  ;;  %7173 = vst [vmem:[#allocation30_spill] sm:$0xff] %v5795_v15 }
 0x110   :  { %v829_v35 = vpop.f32.mrf.mxu1 }
 0x111   :  { %v876_v0 = vadd.f32 %v829_v35, %v255_v11  ;;  %v5804_v35 = vld [vmem:[%s7146_s4] ss:$0 sm:$0xff] }
 0x112   :  { %v831_v40 = vpop.f32.mrf.mxu1 }
 0x113   :  { %v3943_v27 = vmul.f32 -1.442695, %v876_v0  ;;  %v877_v56 = vadd.f32 %v831_v40, %v257_v7 }
 0x114   :  { %v833_v21 = vpop.f32.mrf.mxu1 }
 0x115   :  { %4900 = vpow2.f32 %v3943_v27  ;;  %v3944_v4 = vmul.f32 -1.442695, %v877_v56  ;;  %v5809_v27 = vpop.f32.mrf.mxu0 }
 0x116   :  { %v834_v46 = vpop.f32.mrf.mxu1 }
 0x117   :  { %4902 = vpow2.f32 %v3944_v4  ;;  %v5811_v46 = vpop.f32.mrf.mxu0 }
 0x119   :  { %v5813_v56 = vpop.f32.mrf.mxu0 }
 0x122   :  { %v4901_v13 = vpop.eup %4900 }
 0x123   :  { %v884_v59 = vadd.f32 1.0, %v4901_v13 }
 0x124   :  { %v4903_v2 = vpop.eup %4902 }
 0x125   :  { %4904 = vrcp.f32 %v884_v59  ;;  %v885_v33 = vadd.f32 1.0, %v4903_v2  ;;  %v5815_v59 = vpop.f32.mrf.mxu0 }
 0x127   :  { %v5817_v10 = vpop.f32.mrf.mxu0 }
 0x130   :  { %v870_v0 = vpop.f32.mrf.mxu1 }
 0x131   :  { %v890_v5 = vadd.f32 %v5804_v35, %v870_v0 }
 0x132   :  { %v4905_v21 = vpop.eup %4904  ;;  %v4351_v11 = vpop.f32.mrf.mxu1 }
 0x133   :  { %v891_v7 = vmul.f32 %v4905_v21, %v890_v5  ;;  %v5823_v21 = vpop.f32.mrf.mxu0 }
 0x134   :  { %v873_v40 = vpop.f32.mrf.mxu1 }
 0x135   :  { %v892_v13 = vadd.f32 %v891_v7, %v488_v52  ;;  %v5827_v52 = vpop.f32.mrf.mxu0  ;;  %v7175_v7 = vmov 0  }
 0x136   :  { %v4352_v4 = vpop.f32.mrf.mxu1 }
 0x137   :  { %4906 = vtanh.f32 %v892_v13 }
 0x138   :  { %4908 = vrcp.f32 %v885_v33 }
 0x144   :  { %v4907_v0 = vpop.eup %4906 }
 0x145   :  { %v894_v11 = vsub.f32 0.0, %v4907_v0  ;;  %v4909_v15 = vpop.eup %4908 }
 0x147   :  { %v895_v60 = vmul.f32 %v4909_v15, %v894_v11  ;;  %v7174_v15 = vmov 0.0  }
 0x149   :  { %v5819_v5 = vadd.f32 %v4907_v0, %v895_v60  ;;  %v5836_v60 = vpop.f32.mrf.mxu0 }
 0x14b   :  { %v903_v2 = vpack.c.bf16 %v5819_v5, %v5819_v5  ;;  %v5842_v40 = vpop.f32.mrf.mxu0 }
 0x14d   :  { %937 = vmatmul.mubr.bf16.vlgmr.msra.gmra.mxu0 %v903_v2  ;;  %4370 = vmatmul.mubr.bf16.vlgmr.msra.gmra.mxu1 %v903_v2  ;;  %v5848_v33 = vpop.f32.mrf.mxu0 }
 0x14e   :  { %1014 = vmatpush1.bf16.msra.mxu0 %v5296_v14  ;;  %4374 = vmatpush3.bf16.msra.mxu1 %v5594_v36 }
 0x14f   :  { %1015 = vmatprep.subr.bf16.mxu0 %v5303_v16  ;;  %4375 = vmatprep.subr.bf16.mxu1 %v7174_v15  ;;  %v5854_v13 = vpop.f32.mrf.mxu0 }
 0x150   :  { %1045 = vmatprep.mubr.bf16.mxu0 %v7175_v7  ;;  %4389 = vmatprep.mubr.msk.bf16.mxu1 %vm5232_vm2, %v7174_v15 }
 0x151   :  { %v5860_v4 = vpop.f32.mrf.mxu0 }
 0x152   :  { %1016 = vmatpush1.bf16.msra.mxu0 %v5316_v22  ;;  %4376 = vmatpush3.bf16.msra.mxu1 %v5603_v38 }
 0x153   :  { %1017 = vmatprep.subr.bf16.mxu0 %v5324_v24  ;;  %4377 = vmatprep.subr.bf16.mxu1 %v7174_v15  ;;  %v5866_v0 = vpop.f32.mrf.mxu0 }
 0x154   :  { %7176 = vst [vmem:[#allocation31_spill] sm:$0xff] %v5866_v0 }
 0x155   :  { %v5872_v11 = vpop.f32.mrf.mxu0 }
 0x156   :  { %1018 = vmatpush1.bf16.msra.mxu0 %v5336_v30  ;;  %4378 = vmatpush3.bf16.msra.mxu1 %v5613_v44  ;;  %7177 = vst [vmem:[#allocation32_spill] sm:$0xff] %v5872_v11 }
 0x157   :  { %1019 = vmatprep.subr.bf16.mxu0 %v5344_v32  ;;  %4379 = vmatprep.subr.bf16.mxu1 %v7174_v15  ;;  %v5876_v2 = vpop.f32.mrf.mxu0 }
 0x158   :  { %7178 = vst [vmem:[#allocation33_spill] sm:$0xff] %v5876_v2 }
 0x159   :  { %v5878_v63 = vpop.f32.mrf.mxu0 }
 0x15a   :  { %1020 = vmatpush1.bf16.msra.mxu0 %v5361_v39  ;;  %4380 = vmatpush3.bf16.msra.mxu1 %v5620_v47  ;;  %7179 = vst [vmem:[#allocation34_spill] sm:$0xff] %v5878_v63 }
 0x15b   :  { %1021 = vmatprep.subr.bf16.mxu0 %v5367_v42  ;;  %4381 = vmatprep.subr.bf16.mxu1 %v7174_v15  ;;  %v5880_v53 = vpop.f32.mrf.mxu0 }
 0x15c   :  { %7180 = vst [vmem:[#allocation35_spill] sm:$0xff] %v5880_v53 }
 0x15d   :  { %v5882_v57 = vpop.f32.mrf.mxu0 }
 0x15e   :  { %1022 = vmatpush1.bf16.msra.mxu0 %v5393_v51  ;;  %4382 = vmatpush3.bf16.msra.mxu1 %v5627_v50  ;;  %7181 = vst [vmem:[#allocation36_spill] sm:$0xff] %v5882_v57 }
 0x15f   :  { %1023 = vmatprep.subr.bf16.mxu0 %v5404_v54  ;;  %4383 = vmatprep.subr.bf16.mxu1 %v7174_v15  ;;  %v5884_v48 = vpop.f32.mrf.mxu0 }
 0x160   :  { %7182 = vst [vmem:[#allocation37_spill] sm:$0xff] %v5884_v48 }
 0x161   :  { %v5886_v49 = vpop.f32.mrf.mxu0 }
 0x162   :  { %1024 = vmatpush1.bf16.msra.mxu0 %v5422_v62  ;;  %4384 = vmatpush3.bf16.msra.mxu1 %v5634_v55  ;;  %7183 = vst [vmem:[#allocation38_spill] sm:$0xff] %v5886_v49 }
 0x163   :  { %1025 = vmatprep.subr.bf16.mxu0 %v5430_v1  ;;  %4385 = vmatprep.subr.bf16.mxu1 %v7174_v15  ;;  %v5888_v41 = vpop.f32.mrf.mxu0 }
 0x164   :  { %7184 = vst [vmem:[#allocation39_spill] sm:$0xff] %v5888_v41 }
 0x165   :  { %v5890_v45 = vpop.f32.mrf.mxu0 }
 0x166   :  { %1026 = vmatpush1.bf16.msra.mxu0 %v5444_v8  ;;  %4386 = vmatpush3.bf16.msra.mxu1 %v5641_v58  ;;  %7185 = vst [vmem:[#allocation40_spill] sm:$0xff] %v5890_v45 }
 0x167   :  { %1027 = vmatprep.subr.bf16.mxu0 %v5452_v3  ;;  %4387 = vmatprep.subr.bf16.mxu1 %v7174_v15  ;;  %v5892_v34 = vpop.f32.mrf.mxu0 }
 0x168   :  { %7186 = vst [vmem:[#allocation41_spill] sm:$0xff] %v5892_v34 }
 0x169   :  { %v5894_v37 = vpop.f32.mrf.mxu0 }
 0x16a   :  { %1028 = vmatpush1.bf16.msra.mxu0 %v5469_v18  ;;  %4388 = vmatpush3.bf16.msra.mxu1 %v5648_v61  ;;  %7187 = vst [vmem:[#allocation42_spill] sm:$0xff] %v5894_v37 }
 0x16b   :  { %1122 = vmatprep.subr.bf16.mxu0 %v5289_v12  ;;  %4393 = vmatprep.subr.bf16.mxu1 %v7174_v15  ;;  %v5896_v28 = vpop.f32.mrf.mxu0 }
 0x16c   :  { %7188 = vst [vmem:[#allocation43_spill] sm:$0xff] %v5896_v28 }
 0x16d   :  { %v5898_v31 = vpop.f32.mrf.mxu0 }
 0x16e   :  { %7189 = vst [vmem:[#allocation44_spill] sm:$0xff] %v5898_v31 }
 0x16f   :  { %v5900_v63 = vpop.f32.mrf.mxu0 }
 0x170   :  { %7190 = vst [vmem:[#allocation45_spill] sm:$0xff] %v5900_v63 }
 0x171   :  { %v5902_v53 = vpop.f32.mrf.mxu0 }
 0x172   :  { %7191 = vst [vmem:[#allocation46_spill] sm:$0xff] %v5902_v53 }
 0x173   :  { %v5904_v57 = vpop.f32.mrf.mxu0 }
 0x174   :  { %7192 = vst [vmem:[#allocation47_spill] sm:$0xff] %v5904_v57 }
 0x175   :  { %v5906_v48 = vpop.f32.mrf.mxu0 }
 0x176   :  { %7193 = vst [vmem:[#allocation48_spill] sm:$0xff] %v5906_v48 }
 0x177   :  { %v5908_v49 = vpop.f32.mrf.mxu0 }
 0x178   :  { %7194 = vst [vmem:[#allocation49_spill] sm:$0xff] %v5908_v49 }
 0x179   :  { %v5910_v41 = vpop.f32.mrf.mxu0 }
 0x17a   :  { %7195 = vst [vmem:[#allocation50_spill] sm:$0xff] %v5910_v41 }
 0x17b   :  { %v5912_v45 = vpop.f32.mrf.mxu0 }
 0x17c   :  { %7196 = vst [vmem:[#allocation51_spill] sm:$0xff] %v5912_v45 }
 0x17d   :  { %v5914_v34 = vpop.f32.mrf.mxu0 }
 0x17e   :  { %7197 = vst [vmem:[#allocation52_spill] sm:$0xff] %v5914_v34 }
 0x17f   :  { %v5916_v37 = vpop.f32.mrf.mxu0 }
 0x180   :  { %7198 = vst [vmem:[#allocation53_spill] sm:$0xff] %v5916_v37 }
 0x181   :  { %v5918_v28 = vpop.f32.mrf.mxu0 }
 0x182   :  { %7199 = vst [vmem:[#allocation54_spill] sm:$0xff] %v5918_v28 }
 0x183   :  { %v5920_v31 = vpop.f32.mrf.mxu0 }
 0x184   :  { %7200 = vst [vmem:[#allocation55_spill] sm:$0xff] %v5920_v31 }
 0x185   :  { %v5922_v63 = vpop.f32.mrf.mxu0 }
 0x186   :  { %7201 = vst [vmem:[#allocation56_spill] sm:$0xff] %v5922_v63 }
 0x187   :  { %v5924_v53 = vpop.f32.mrf.mxu0 }
 0x188   :  { %7202 = vst [vmem:[#allocation57_spill] sm:$0xff] %v5924_v53 }
 0x189   :  { %v5926_v57 = vpop.f32.mrf.mxu0 }
 0x18a   :  { %7203 = vst [vmem:[#allocation58_spill] sm:$0xff] %v5926_v57 }
 0x18b   :  { %v5928_v48 = vpop.f32.mrf.mxu0 }
 0x18c   :  { %7204 = vst [vmem:[#allocation59_spill] sm:$0xff] %v5928_v48 }
 0x18d   :  { %v5930_v49 = vpop.f32.mrf.mxu0 }
 0x18e   :  { %7205 = vst [vmem:[#allocation60_spill] sm:$0xff] %v5930_v49 }
 0x18f   :  { %v5932_v41 = vpop.f32.mrf.mxu0 }
 0x190   :  { %7206 = vst [vmem:[#allocation61_spill] sm:$0xff] %v5932_v41 }
 0x191   :  { %v5934_v45 = vpop.f32.mrf.mxu0 }
 0x192   :  { %7207 = vst [vmem:[#allocation62_spill] sm:$0xff] %v5934_v45 }
 0x193   :  { %v5936_v34 = vpop.f32.mrf.mxu0 }
 0x194   :  { %7208 = vst [vmem:[#allocation63_spill] sm:$0xff] %v5936_v34  ;;  %v261_v34 = vadd.f32 %v5809_v27, %v5786_v43 }
 0x195   :  { %v5938_v37 = vpop.f32.mrf.mxu0 }
 0x196   :  { %7209 = vst [vmem:[#allocation64_spill] sm:$0xff] %v5938_v37 }
 0x197   :  { %v5940_v28 = vpop.f32.mrf.mxu0 }
 0x198   :  { %7210 = vst [vmem:[#allocation65_spill] sm:$0xff] %v5940_v28 }
 0x199   :  { %v5942_v31 = vpop.f32.mrf.mxu0 }
 0x19a   :  { %7211 = vst [vmem:[#allocation66_spill] sm:$0xff] %v5942_v31 }
 0x19b   :  { %v5944_v63 = vpop.f32.mrf.mxu0 }
 0x19c   :  { %7212 = vst [vmem:[#allocation67_spill] sm:$0xff] %v5944_v63 }
 0x19d   :  { %v5946_v53 = vpop.f32.mrf.mxu0 }
 0x19e   :  { %7213 = vst [vmem:[#allocation68_spill] sm:$0xff] %v5946_v53 }
 0x19f   :  { %v5948_v57 = vpop.f32.mrf.mxu0 }
 0x1a0   :  { %7214 = vst [vmem:[#allocation69_spill] sm:$0xff] %v5948_v57 }
 0x1a1   :  { %v5950_v48 = vpop.f32.mrf.mxu0 }
 0x1a2   :  { %7215 = vst [vmem:[#allocation70_spill] sm:$0xff] %v5950_v48  ;;  %v263_v48 = vadd.f32 %v5811_v46, %v5798_v29 }
 0x1a3   :  { %v5952_v49 = vpop.f32.mrf.mxu0 }
 0x1a4   :  { %7216 = vst [vmem:[#allocation71_spill] sm:$0xff] %v5952_v49 }
 0x1a5   :  { %v5954_v41 = vpop.f32.mrf.mxu0 }
 0x1a6   :  { %7217 = vst [vmem:[#allocation72_spill] sm:$0xff] %v5954_v41 }
 0x20d   :  { %v938_v37 = vpop.f32.mrf.mxu0  ;;  %v979_v45 = vpop.f32.mrf.mxu1 }
 0x20e   :  { %v985_v28 = vadd.f32 %v938_v37, %v261_v34  ;;  %v999_v34 = vadd.f32 %v5804_v35, %v979_v45 }
 0x20f   :  { %v940_v2 = vpop.f32.mrf.mxu0  ;;  %v4371_v31 = vpop.f32.mrf.mxu1 }
 0x210   :  { %v3945_v26 = vmul.f32 -1.442695, %v985_v28  ;;  %v986_v49 = vadd.f32 %v940_v2, %v263_v48 }
 0x211   :  { %v942_v63 = vpop.f32.mrf.mxu0  ;;  %v982_v11 = vpop.f32.mrf.mxu1 }
 0x212   :  { %4910 = vpow2.f32 %v3945_v26  ;;  %v3946_v0 = vmul.f32 -1.442695, %v986_v49 }
 0x213   :  { %v943_v53 = vpop.f32.mrf.mxu0  ;;  %v4372_v57 = vpop.f32.mrf.mxu1 }
 0x214   :  { %4912 = vpow2.f32 %v3946_v0 }
 0x21f   :  { %v4911_v41 = vpop.eup %4910 }
 0x220   :  { %v993_v23 = vadd.f32 1.0, %v4911_v41 }
 0x221   :  { %v4913_v27 = vpop.eup %4912 }
 0x222   :  { %4914 = vrcp.f32 %v993_v23  ;;  %v994_v63 = vadd.f32 1.0, %v4913_v27 }
 0x22f   :  { %v4915_v37 = vpop.eup %4914 }
 0x230   :  { %v1000_v31 = vmul.f32 %v4915_v37, %v999_v34 }
 0x232   :  { %v1001_v28 = vadd.f32 %v1000_v31, %v5718_v9  ;;  %v267_v9 = vadd.f32 %v5813_v56, %v5786_v43  ;;  %v269_v31 = vadd.f32 %v5815_v59, %v5798_v29 }
 0x234   :  { %4916 = vtanh.f32 %v1001_v28 }
 0x235   :  { %4918 = vrcp.f32 %v994_v63 }
 0x241   :  { %v4917_v26 = vpop.eup %4916 }
 0x242   :  { %v1003_v53 = vsub.f32 %v5819_v5, %v4917_v26  ;;  %v4919_v57 = vpop.eup %4918 }
 0x244   :  { %v1004_v48 = vmul.f32 %v4919_v57, %v1003_v53 }
 0x246   :  { %v5963_v49 = vadd.f32 %v4917_v26, %v1004_v48 }
 0x248   :  { %v1012_v23 = vpack.c.bf16 %v5963_v49, %v5963_v49 }
 0x24a   :  { %1046 = vmatmul.mubr.bf16.vlgmr.msra.gmra.mxu0 %v1012_v23  ;;  %4390 = vmatmul.mubr.bf16.vlgmr.msra.gmra.mxu1 %v1012_v23  ;;  %v498_v23 = vadd.f32 %v5725_v19, %v5715_v6  ;;  %v273_v19 = vadd.f32 %v5817_v10, %v5786_v43 }
 0x24b   :  { %1123 = vmatpush1.bf16.msra.mxu0 %v5296_v14  ;;  %4394 = vmatpush3.bf16.msra.mxu1 %v5594_v36 }
 0x24c   :  { %1124 = vmatprep.subr.bf16.mxu0 %v5303_v16  ;;  %4395 = vmatprep.subr.bf16.mxu1 %v7174_v15 }
 0x24d   :  { %1154 = vmatprep.mubr.bf16.mxu0 %v7175_v7  ;;  %4409 = vmatprep.mubr.msk.bf16.mxu1 %vm5232_vm2, %v7174_v15 }
 0x24f   :  { %1125 = vmatpush1.bf16.msra.mxu0 %v5316_v22  ;;  %4396 = vmatpush3.bf16.msra.mxu1 %v5603_v38 }
 0x250   :  { %1126 = vmatprep.subr.bf16.mxu0 %v5324_v24  ;;  %4397 = vmatprep.subr.bf16.mxu1 %v7174_v15 }
 0x253   :  { %1127 = vmatpush1.bf16.msra.mxu0 %v5336_v30  ;;  %4398 = vmatpush3.bf16.msra.mxu1 %v5613_v44 }
 0x254   :  { %1128 = vmatprep.subr.bf16.mxu0 %v5344_v32  ;;  %4399 = vmatprep.subr.bf16.mxu1 %v7174_v15 }
 0x257   :  { %1129 = vmatpush1.bf16.msra.mxu0 %v5361_v39  ;;  %4400 = vmatpush3.bf16.msra.mxu1 %v5620_v47 }
 0x258   :  { %1130 = vmatprep.subr.bf16.mxu0 %v5367_v42  ;;  %4401 = vmatprep.subr.bf16.mxu1 %v7174_v15 }
 0x25b   :  { %1131 = vmatpush1.bf16.msra.mxu0 %v5393_v51  ;;  %4402 = vmatpush3.bf16.msra.mxu1 %v5627_v50 }
 0x25c   :  { %1132 = vmatprep.subr.bf16.mxu0 %v5404_v54  ;;  %4403 = vmatprep.subr.bf16.mxu1 %v7174_v15 }
 0x25f   :  { %1133 = vmatpush1.bf16.msra.mxu0 %v5422_v62  ;;  %4404 = vmatpush3.bf16.msra.mxu1 %v5634_v55 }
 0x260   :  { %1134 = vmatprep.subr.bf16.mxu0 %v5430_v1  ;;  %4405 = vmatprep.subr.bf16.mxu1 %v7174_v15 }
 0x263   :  { %1135 = vmatpush1.bf16.msra.mxu0 %v5444_v8  ;;  %4406 = vmatpush3.bf16.msra.mxu1 %v5641_v58 }
 0x264   :  { %1136 = vmatprep.subr.bf16.mxu0 %v5452_v3  ;;  %4407 = vmatprep.subr.bf16.mxu1 %v7174_v15 }
 0x267   :  { %1137 = vmatpush1.bf16.msra.mxu0 %v5469_v18  ;;  %4408 = vmatpush3.bf16.msra.mxu1 %v5648_v61 }
 0x268   :  { %1231 = vmatprep.subr.bf16.mxu0 %v5289_v12  ;;  %4413 = vmatprep.subr.bf16.mxu1 %v7174_v15 }
 0x30a   :  { %v1047_v41 = vpop.f32.mrf.mxu0  ;;  %v1088_v45 = vpop.f32.mrf.mxu1 }
 0x30b   :  { %v1094_v46 = vadd.f32 %v1047_v41, %v267_v9  ;;  %v1108_v57 = vadd.f32 %v5804_v35, %v1088_v45 }
 0x30c   :  { %v1049_v5 = vpop.f32.mrf.mxu0  ;;  %v4391_v0 = vpop.f32.mrf.mxu1 }
 0x30d   :  { %v3947_v11 = vmul.f32 -1.442695, %v1094_v46  ;;  %v1095_v28 = vadd.f32 %v1049_v5, %v269_v31 }
 0x30e   :  { %v1051_v2 = vpop.f32.mrf.mxu0  ;;  %v1091_v27 = vpop.f32.mrf.mxu1 }
 0x30f   :  { %4920 = vpow2.f32 %v3947_v11  ;;  %v3948_v63 = vmul.f32 -1.442695, %v1095_v28 }
 0x310   :  { %v1052_v34 = vpop.f32.mrf.mxu0  ;;  %v4392_v37 = vpop.f32.mrf.mxu1 }
 0x311   :  { %4922 = vpow2.f32 %v3948_v63 }
 0x31c   :  { %v4921_v26 = vpop.eup %4920 }
 0x31d   :  { %v1102_v53 = vadd.f32 1.0, %v4921_v26 }
 0x31e   :  { %v4923_v56 = vpop.eup %4922 }
 0x31f   :  { %4924 = vrcp.f32 %v1102_v53  ;;  %v1103_v46 = vadd.f32 1.0, %v4923_v56 }
 0x32c   :  { %v4925_v48 = vpop.eup %4924 }
 0x32d   :  { %v1109_v9 = vmul.f32 %v4925_v48, %v1108_v57  ;;  %v275_v57 = vadd.f32 %v5823_v21, %v5798_v29 }
 0x32f   :  { %v1110_v41 = vadd.f32 %v1109_v9, %v498_v23 }
 0x331   :  { %4926 = vtanh.f32 %v1110_v41 }
 0x332   :  { %4928 = vrcp.f32 %v1103_v46 }
 0x33e   :  { %v4927_v0 = vpop.eup %4926 }
 0x33f   :  { %v1112_v59 = vsub.f32 %v5963_v49, %v4927_v0  ;;  %v4929_v5 = vpop.eup %4928 }
 0x341   :  { %v1113_v11 = vmul.f32 %v4929_v5, %v1112_v59 }
 0x343   :  { %v6010_v2 = vadd.f32 %v4927_v0, %v1113_v11 }
 0x345   :  { %v1121_v27 = vpack.c.bf16 %v6010_v2, %v6010_v2 }
 0x347   :  { %1155 = vmatmul.mubr.bf16.vlgmr.msra.gmra.mxu0 %v1121_v27  ;;  %4410 = vmatmul.mubr.bf16.vlgmr.msra.gmra.mxu1 %v1121_v27 }
 0x348   :  { %1232 = vmatpush1.bf16.msra.mxu0 %v5296_v14  ;;  %4414 = vmatpush3.bf16.msra.mxu1 %v5594_v36 }
 0x349   :  { %1233 = vmatprep.subr.bf16.mxu0 %v5303_v16  ;;  %4415 = vmatprep.subr.bf16.mxu1 %v7174_v15 }
 0x34a   :  { %1263 = vmatprep.mubr.bf16.mxu0 %v7175_v7  ;;  %4429 = vmatprep.mubr.msk.bf16.mxu1 %vm5232_vm2, %v7174_v15 }
 0x34c   :  { %1234 = vmatpush1.bf16.msra.mxu0 %v5316_v22  ;;  %4416 = vmatpush3.bf16.msra.mxu1 %v5603_v38 }
 0x34d   :  { %1235 = vmatprep.subr.bf16.mxu0 %v5324_v24  ;;  %4417 = vmatprep.subr.bf16.mxu1 %v7174_v15 }
 0x350   :  { %1236 = vmatpush1.bf16.msra.mxu0 %v5336_v30  ;;  %4418 = vmatpush3.bf16.msra.mxu1 %v5613_v44 }
 0x351   :  { %1237 = vmatprep.subr.bf16.mxu0 %v5344_v32  ;;  %4419 = vmatprep.subr.bf16.mxu1 %v7174_v15 }
 0x354   :  { %1238 = vmatpush1.bf16.msra.mxu0 %v5361_v39  ;;  %4420 = vmatpush3.bf16.msra.mxu1 %v5620_v47 }
 0x355   :  { %1239 = vmatprep.subr.bf16.mxu0 %v5367_v42  ;;  %4421 = vmatprep.subr.bf16.mxu1 %v7174_v15 }
 0x358   :  { %1240 = vmatpush1.bf16.msra.mxu0 %v5393_v51  ;;  %4422 = vmatpush3.bf16.msra.mxu1 %v5627_v50 }
 0x359   :  { %1241 = vmatprep.subr.bf16.mxu0 %v5404_v54  ;;  %4423 = vmatprep.subr.bf16.mxu1 %v7174_v15 }
 0x35c   :  { %1242 = vmatpush1.bf16.msra.mxu0 %v5422_v62  ;;  %4424 = vmatpush3.bf16.msra.mxu1 %v5634_v55 }
 0x35d   :  { %1243 = vmatprep.subr.bf16.mxu0 %v5430_v1  ;;  %4425 = vmatprep.subr.bf16.mxu1 %v7174_v15 }
 0x360   :  { %1244 = vmatpush1.bf16.msra.mxu0 %v5444_v8  ;;  %4426 = vmatpush3.bf16.msra.mxu1 %v5641_v58 }
 0x361   :  { %1245 = vmatprep.subr.bf16.mxu0 %v5452_v3  ;;  %4427 = vmatprep.subr.bf16.mxu1 %v7174_v15 }
 0x364   :  { %1246 = vmatpush1.bf16.msra.mxu0 %v5469_v18  ;;  %4428 = vmatpush3.bf16.msra.mxu1 %v5648_v61 }
 0x365   :  { %1340 = vmatprep.subr.bf16.mxu0 %v5289_v12  ;;  %4433 = vmatprep.subr.bf16.mxu1 %v7174_v15 }
 0x407   :  { %v1156_v49 = vpop.f32.mrf.mxu0  ;;  %v1197_v45 = vpop.f32.mrf.mxu1 }
 0x408   :  { %v1203_v34 = vadd.f32 %v1156_v49, %v273_v19  ;;  %v1217_v46 = vadd.f32 %v5804_v35, %v1197_v45 }
 0x409   :  { %v1158_v37 = vpop.f32.mrf.mxu0  ;;  %v4411_v31 = vpop.f32.mrf.mxu1 }
 0x40a   :  { %v3949_v28 = vmul.f32 -1.442695, %v1203_v34  ;;  %v1204_v48 = vadd.f32 %v1158_v37, %v275_v57 }
 0x40b   :  { %v1160_v63 = vpop.f32.mrf.mxu0  ;;  %v1200_v26 = vpop.f32.mrf.mxu1 }
 0x40c   :  { %4930 = vpow2.f32 %v3949_v28  ;;  %v3950_v23 = vmul.f32 -1.442695, %v1204_v48 }
 0x40d   :  { %v1161_v53 = vpop.f32.mrf.mxu0  ;;  %v4412_v56 = vpop.f32.mrf.mxu1 }
 0x40e   :  { %4932 = vpow2.f32 %v3950_v23  ;;  %v281_v23 = vadd.f32 %v5836_v60, %v5798_v29 }
 0x419   :  { %v4931_v9 = vpop.eup %4930 }
 0x41a   :  { %v1211_v41 = vadd.f32 1.0, %v4931_v9 }
 0x41b   :  { %v4933_v10 = vpop.eup %4932 }
 0x41c   :  { %4934 = vrcp.f32 %v1211_v41  ;;  %v1212_v11 = vadd.f32 1.0, %v4933_v10 }
 0x429   :  { %v4935_v0 = vpop.eup %4934 }
 0x42a   :  { %v1218_v59 = vmul.f32 %v4935_v0, %v1217_v46 }
 0x42c   :  { %v1219_v5 = vadd.f32 %v1218_v59, %v5723_v17  ;;  %v279_v17 = vadd.f32 %v5827_v52, %v5786_v43 }
 0x42e   :  { %4936 = vtanh.f32 %v1219_v5 }
 0x42f   :  { %4938 = vrcp.f32 %v1212_v11 }
 0x43b   :  { %v4937_v27 = vpop.eup %4936 }
 0x43c   :  { %v1221_v19 = vsub.f32 %v6010_v2, %v4937_v27  ;;  %v4939_v21 = vpop.eup %4938 }
 0x43e   :  { %v1222_v49 = vmul.f32 %v4939_v21, %v1221_v19 }
 0x440   :  { %v6056_v34 = vadd.f32 %v4937_v27, %v1222_v49 }
 0x442   :  { %v1230_v37 = vpack.c.bf16 %v6056_v34, %v6056_v34 }
 0x444   :  { %1264 = vmatmul.mubr.bf16.vlgmr.msra.gmra.mxu0 %v1230_v37  ;;  %4430 = vmatmul.mubr.bf16.vlgmr.msra.gmra.mxu1 %v1230_v37 }
 0x445   :  { %1341 = vmatpush1.bf16.msra.mxu0 %v5296_v14  ;;  %4434 = vmatpush3.bf16.msra.mxu1 %v5594_v36 }
 0x446   :  { %1342 = vmatprep.subr.bf16.mxu0 %v5303_v16  ;;  %4435 = vmatprep.subr.bf16.mxu1 %v7174_v15 }
 0x447   :  { %1372 = vmatprep.mubr.bf16.mxu0 %v7175_v7  ;;  %4449 = vmatprep.mubr.msk.bf16.mxu1 %vm5232_vm2, %v7174_v15 }
 0x449   :  { %1343 = vmatpush1.bf16.msra.mxu0 %v5316_v22  ;;  %4436 = vmatpush3.bf16.msra.mxu1 %v5603_v38 }
 0x44a   :  { %1344 = vmatprep.subr.bf16.mxu0 %v5324_v24  ;;  %4437 = vmatprep.subr.bf16.mxu1 %v7174_v15 }
 0x44d   :  { %1345 = vmatpush1.bf16.msra.mxu0 %v5336_v30  ;;  %4438 = vmatpush3.bf16.msra.mxu1 %v5613_v44 }
 0x44e   :  { %1346 = vmatprep.subr.bf16.mxu0 %v5344_v32  ;;  %4439 = vmatprep.subr.bf16.mxu1 %v7174_v15 }
 0x451   :  { %1347 = vmatpush1.bf16.msra.mxu0 %v5361_v39  ;;  %4440 = vmatpush3.bf16.msra.mxu1 %v5620_v47 }
 0x452   :  { %1348 = vmatprep.subr.bf16.mxu0 %v5367_v42  ;;  %4441 = vmatprep.subr.bf16.mxu1 %v7174_v15 }
 0x455   :  { %1349 = vmatpush1.bf16.msra.mxu0 %v5393_v51  ;;  %4442 = vmatpush3.bf16.msra.mxu1 %v5627_v50 }
 0x456   :  { %1350 = vmatprep.subr.bf16.mxu0 %v5404_v54  ;;  %4443 = vmatprep.subr.bf16.mxu1 %v7174_v15 }
 0x459   :  { %1351 = vmatpush1.bf16.msra.mxu0 %v5422_v62  ;;  %4444 = vmatpush3.bf16.msra.mxu1 %v5634_v55 }
 0x45a   :  { %1352 = vmatprep.subr.bf16.mxu0 %v5430_v1  ;;  %4445 = vmatprep.subr.bf16.mxu1 %v7174_v15 }
 0x45d   :  { %1353 = vmatpush1.bf16.msra.mxu0 %v5444_v8  ;;  %4446 = vmatpush3.bf16.msra.mxu1 %v5641_v58 }
 0x45e   :  { %1354 = vmatprep.subr.bf16.mxu0 %v5452_v3  ;;  %4447 = vmatprep.subr.bf16.mxu1 %v7174_v15 }
 0x461   :  { %1355 = vmatpush1.bf16.msra.mxu0 %v5469_v18  ;;  %4448 = vmatpush3.bf16.msra.mxu1 %v5648_v61 }
 0x462   :  { %1449 = vmatprep.subr.bf16.mxu0 %v5289_v12  ;;  %4453 = vmatprep.subr.bf16.mxu1 %v7174_v15 }
 0x504   :  { %v1265_v2 = vpop.f32.mrf.mxu0  ;;  %v1306_v45 = vpop.f32.mrf.mxu1 }
 0x505   :  { %v1312_v31 = vadd.f32 %v1265_v2, %v279_v17  ;;  %v1326_v0 = vadd.f32 %v5804_v35, %v1306_v45 }
 0x506   :  { %v1267_v28 = vpop.f32.mrf.mxu0  ;;  %v4431_v63 = vpop.f32.mrf.mxu1 }
 0x507   :  { %v3951_v26 = vmul.f32 -1.442695, %v1312_v31  ;;  %v1313_v9 = vadd.f32 %v1267_v28, %v281_v23 }
 0x508   :  { %v1269_v53 = vpop.f32.mrf.mxu0  ;;  %v1309_v56 = vpop.f32.mrf.mxu1 }
 0x509   :  { %4940 = vpow2.f32 %v3951_v26  ;;  %v3952_v41 = vmul.f32 -1.442695, %v1313_v9 }
 0x50a   :  { %v1270_v57 = vpop.f32.mrf.mxu0  ;;  %v4432_v48 = vpop.f32.mrf.mxu1 }
 0x50b   :  { %4942 = vpow2.f32 %v3952_v41  ;;  %v287_v48 = vadd.f32 %v5848_v33, %v5798_v29 }
 0x516   :  { %v4941_v10 = vpop.eup %4940 }
 0x517   :  { %v1320_v46 = vadd.f32 1.0, %v4941_v10 }
 0x518   :  { %v4943_v52 = vpop.eup %4942 }
 0x519   :  { %4944 = vrcp.f32 %v1320_v46  ;;  %v1321_v27 = vadd.f32 1.0, %v4943_v52 }
 0x526   :  { %v4945_v59 = vpop.eup %4944 }
 0x527   :  { %v1327_v5 = vmul.f32 %v4945_v59, %v1326_v0 }
 0x529   :  { %v1328_v11 = vadd.f32 %v1327_v5, %v5731_v25  ;;  %v285_v25 = vadd.f32 %v5842_v40, %v5786_v43 }
 0x52b   :  { %4946 = vtanh.f32 %v1328_v11 }
 0x52c   :  { %4948 = vrcp.f32 %v1321_v27 }
 0x538   :  { %v4947_v19 = vpop.eup %4946 }
 0x539   :  { %v1330_v21 = vsub.f32 %v6056_v34, %v4947_v19  ;;  %v4949_v60 = vpop.eup %4948 }
 0x53b   :  { %v1331_v49 = vmul.f32 %v4949_v60, %v1330_v21 }
 0x53d   :  { %v6102_v37 = vadd.f32 %v4947_v19, %v1331_v49 }
 0x53f   :  { %v1339_v17 = vpack.c.bf16 %v6102_v37, %v6102_v37 }
 0x541   :  { %1373 = vmatmul.mubr.bf16.vlgmr.msra.gmra.mxu0 %v1339_v17  ;;  %4450 = vmatmul.mubr.bf16.vlgmr.msra.gmra.mxu1 %v1339_v17 }
 0x542   :  { %1450 = vmatpush1.bf16.msra.mxu0 %v5296_v14  ;;  %4454 = vmatpush3.bf16.msra.mxu1 %v5594_v36 }
 0x543   :  { %1451 = vmatprep.subr.bf16.mxu0 %v5303_v16  ;;  %4455 = vmatprep.subr.bf16.mxu1 %v7174_v15 }
 0x544   :  { %1481 = vmatprep.mubr.bf16.mxu0 %v7175_v7  ;;  %4469 = vmatprep.mubr.msk.bf16.mxu1 %vm5232_vm2, %v7174_v15 }
 0x546   :  { %1452 = vmatpush1.bf16.msra.mxu0 %v5316_v22  ;;  %4456 = vmatpush3.bf16.msra.mxu1 %v5603_v38 }
 0x547   :  { %1453 = vmatprep.subr.bf16.mxu0 %v5324_v24  ;;  %4457 = vmatprep.subr.bf16.mxu1 %v7174_v15 }
 0x54a   :  { %1454 = vmatpush1.bf16.msra.mxu0 %v5336_v30  ;;  %4458 = vmatpush3.bf16.msra.mxu1 %v5613_v44 }
 0x54b   :  { %1455 = vmatprep.subr.bf16.mxu0 %v5344_v32  ;;  %4459 = vmatprep.subr.bf16.mxu1 %v7174_v15 }
 0x54e   :  { %1456 = vmatpush1.bf16.msra.mxu0 %v5361_v39  ;;  %4460 = vmatpush3.bf16.msra.mxu1 %v5620_v47 }
 0x54f   :  { %1457 = vmatprep.subr.bf16.mxu0 %v5367_v42  ;;  %4461 = vmatprep.subr.bf16.mxu1 %v7174_v15 }
 0x552   :  { %1458 = vmatpush1.bf16.msra.mxu0 %v5393_v51  ;;  %4462 = vmatpush3.bf16.msra.mxu1 %v5627_v50 }
 0x553   :  { %1459 = vmatprep.subr.bf16.mxu0 %v5404_v54  ;;  %4463 = vmatprep.subr.bf16.mxu1 %v7174_v15 }
 0x556   :  { %1460 = vmatpush1.bf16.msra.mxu0 %v5422_v62  ;;  %4464 = vmatpush3.bf16.msra.mxu1 %v5634_v55 }
 0x557   :  { %1461 = vmatprep.subr.bf16.mxu0 %v5430_v1  ;;  %4465 = vmatprep.subr.bf16.mxu1 %v7174_v15 }
 0x55a   :  { %1462 = vmatpush1.bf16.msra.mxu0 %v5444_v8  ;;  %4466 = vmatpush3.bf16.msra.mxu1 %v5641_v58 }
 0x55b   :  { %1463 = vmatprep.subr.bf16.mxu0 %v5452_v3  ;;  %4467 = vmatprep.subr.bf16.mxu1 %v7174_v15 }
 0x55e   :  { %1464 = vmatpush1.bf16.msra.mxu0 %v5469_v18  ;;  %4468 = vmatpush3.bf16.msra.mxu1 %v5648_v61 }
 0x55f   :  { %1558 = vmatprep.subr.bf16.mxu0 %v5289_v12  ;;  %4473 = vmatprep.subr.bf16.mxu1 %v7174_v15 }
 0x601   :  { %v1374_v34 = vpop.f32.mrf.mxu0  ;;  %v1415_v2 = vpop.f32.mrf.mxu1 }
 0x602   :  { %v1421_v45 = vadd.f32 %v1374_v34, %v285_v25  ;;  %v1435_v46 = vadd.f32 %v5804_v35, %v1415_v2 }
 0x603   :  { %v1376_v31 = vpop.f32.mrf.mxu0  ;;  %v4451_v28 = vpop.f32.mrf.mxu1 }
 0x604   :  { %v3953_v63 = vmul.f32 -1.442695, %v1421_v45  ;;  %v1422_v23 = vadd.f32 %v1376_v31, %v287_v48 }
 0x605   :  { %v1378_v26 = vpop.f32.mrf.mxu0  ;;  %v1418_v53 = vpop.f32.mrf.mxu1 }
 0x606   :  { %4950 = vpow2.f32 %v3953_v63  ;;  %v3954_v9 = vmul.f32 -1.442695, %v1422_v23  ;;  %v293_v26 = vadd.f32 %v5860_v4, %v5798_v29 }
 0x607   :  { %v1379_v56 = vpop.f32.mrf.mxu0  ;;  %v4452_v57 = vpop.f32.mrf.mxu1 }
 0x608   :  { %4952 = vpow2.f32 %v3954_v9 }
 0x613   :  { %v4951_v41 = vpop.eup %4950 }
 0x614   :  { %v1429_v10 = vadd.f32 1.0, %v4951_v41  ;;  %v7218_v41 = vld [vmem:[#allocation10_spill] sm:$0xff] }
 0x615   :  { %v4953_v40 = vpop.eup %4952 }
 0x616   :  { %4954 = vrcp.f32 %v1429_v10  ;;  %v1430_v5 = vadd.f32 1.0, %v4953_v40  ;;  %v518_v10 = vadd.f32 %v7218_v41, %v5715_v6 }
 0x623   :  { %v4955_v52 = vpop.eup %4954 }
 0x624   :  { %v1436_v0 = vmul.f32 %v4955_v52, %v1435_v46 }
 0x626   :  { %v1437_v59 = vadd.f32 %v1436_v0, %v5728_v20  ;;  %v291_v20 = vadd.f32 %v5854_v13, %v5786_v43 }
 0x628   :  { %4956 = vtanh.f32 %v1437_v59 }
 0x629   :  { %4958 = vrcp.f32 %v1430_v5 }
 0x635   :  { %v4957_v11 = vpop.eup %4956 }
 0x636   :  { %v1439_v27 = vsub.f32 %v6102_v37, %v4957_v11  ;;  %v4959_v33 = vpop.eup %4958 }
 0x638   :  { %v1440_v19 = vmul.f32 %v4959_v33, %v1439_v27 }
 0x63a   :  { %v6148_v21 = vadd.f32 %v4957_v11, %v1440_v19 }
 0x63c   :  { %v1448_v60 = vpack.c.bf16 %v6148_v21, %v6148_v21 }
 0x63e   :  { %1482 = vmatmul.mubr.bf16.vlgmr.msra.gmra.mxu0 %v1448_v60  ;;  %4470 = vmatmul.mubr.bf16.vlgmr.msra.gmra.mxu1 %v1448_v60 }
 0x63f   :  { %1559 = vmatpush1.bf16.msra.mxu0 %v5296_v14  ;;  %4474 = vmatpush3.bf16.msra.mxu1 %v5594_v36 }
 0x640   :  { %1560 = vmatprep.subr.bf16.mxu0 %v5303_v16  ;;  %4475 = vmatprep.subr.bf16.mxu1 %v7174_v15 }
 0x641   :  { %1590 = vmatprep.mubr.bf16.mxu0 %v7175_v7  ;;  %4489 = vmatprep.mubr.msk.bf16.mxu1 %vm5232_vm2, %v7174_v15 }
 0x643   :  { %1561 = vmatpush1.bf16.msra.mxu0 %v5316_v22  ;;  %4476 = vmatpush3.bf16.msra.mxu1 %v5603_v38 }
 0x644   :  { %1562 = vmatprep.subr.bf16.mxu0 %v5324_v24  ;;  %4477 = vmatprep.subr.bf16.mxu1 %v7174_v15 }
 0x647   :  { %1563 = vmatpush1.bf16.msra.mxu0 %v5336_v30  ;;  %4478 = vmatpush3.bf16.msra.mxu1 %v5613_v44 }
 0x648   :  { %1564 = vmatprep.subr.bf16.mxu0 %v5344_v32  ;;  %4479 = vmatprep.subr.bf16.mxu1 %v7174_v15 }
 0x64b   :  { %1565 = vmatpush1.bf16.msra.mxu0 %v5361_v39  ;;  %4480 = vmatpush3.bf16.msra.mxu1 %v5620_v47 }
 0x64c   :  { %1566 = vmatprep.subr.bf16.mxu0 %v5367_v42  ;;  %4481 = vmatprep.subr.bf16.mxu1 %v7174_v15 }
 0x64f   :  { %1567 = vmatpush1.bf16.msra.mxu0 %v5393_v51  ;;  %4482 = vmatpush3.bf16.msra.mxu1 %v5627_v50 }
 0x650   :  { %1568 = vmatprep.subr.bf16.mxu0 %v5404_v54  ;;  %4483 = vmatprep.subr.bf16.mxu1 %v7174_v15 }
 0x653   :  { %1569 = vmatpush1.bf16.msra.mxu0 %v5422_v62  ;;  %4484 = vmatpush3.bf16.msra.mxu1 %v5634_v55 }
 0x654   :  { %1570 = vmatprep.subr.bf16.mxu0 %v5430_v1  ;;  %4485 = vmatprep.subr.bf16.mxu1 %v7174_v15 }
 0x657   :  { %1571 = vmatpush1.bf16.msra.mxu0 %v5444_v8  ;;  %4486 = vmatpush3.bf16.msra.mxu1 %v5641_v58 }
 0x658   :  { %1572 = vmatprep.subr.bf16.mxu0 %v5452_v3  ;;  %4487 = vmatprep.subr.bf16.mxu1 %v7174_v15 }
 0x65b   :  { %1573 = vmatpush1.bf16.msra.mxu0 %v5469_v18  ;;  %4488 = vmatpush3.bf16.msra.mxu1 %v5648_v61 }
 0x65c   :  { %1667 = vmatprep.subr.bf16.mxu0 %v5289_v12  ;;  %4493 = vmatprep.subr.bf16.mxu1 %v7174_v15 }
 0x6fe   :  { %v1483_v49 = vpop.f32.mrf.mxu0  ;;  %v1524_v37 = vpop.f32.mrf.mxu1 }
 0x6ff   :  { %v1530_v17 = vadd.f32 %v1483_v49, %v291_v20  ;;  %v1544_v23 = vadd.f32 %v5804_v35, %v1524_v37  ;;  %v7219_v35 = vld [vmem:[#allocation31_spill] sm:$0xff] }
 0x700   :  { %v1485_v25 = vpop.f32.mrf.mxu0  ;;  %v4471_v34 = vpop.f32.mrf.mxu1  ;;  %v297_v33 = vadd.f32 %v7219_v35, %v5786_v43 }
 0x701   :  { %v3955_v2 = vmul.f32 -1.442695, %v1530_v17  ;;  %v1531_v53 = vadd.f32 %v1485_v25, %v293_v26 }
 0x702   :  { %v1487_v45 = vpop.f32.mrf.mxu0  ;;  %v1527_v31 = vpop.f32.mrf.mxu1 }
 0x703   :  { %4960 = vpow2.f32 %v3955_v2  ;;  %v3956_v56 = vmul.f32 -1.442695, %v1531_v53  ;;  %v7220_v45 = vld [vmem:[#allocation32_spill] sm:$0xff] }
 0x704   :  { %v1488_v28 = vpop.f32.mrf.mxu0  ;;  %v4472_v63 = vpop.f32.mrf.mxu1  ;;  %v299_v31 = vadd.f32 %v7220_v45, %v5798_v29 }
 0x705   :  { %4962 = vpow2.f32 %v3956_v56 }
 0x710   :  { %v4961_v57 = vpop.eup %4960 }
 0x711   :  { %v1538_v48 = vadd.f32 1.0, %v4961_v57  ;;  %v6241_v57 = vld [vmem:[%s7146_s4] ss:$0 sm:$0xff] }
 0x712   :  { %v4963_v13 = vpop.eup %4962 }
 0x713   :  { %4964 = vrcp.f32 %v1538_v48  ;;  %v1539_v52 = vadd.f32 1.0, %v4963_v13 }
 0x720   :  { %v4965_v9 = vpop.eup %4964 }
 0x721   :  { %v1545_v40 = vmul.f32 %v4965_v9, %v1544_v23  ;;  %v7221_v9 = vld [vmem:[#allocation9_spill] sm:$0xff] }
 0x723   :  { %v1546_v46 = vadd.f32 %v1545_v40, %v518_v10 }
 0x725   :  { %4966 = vtanh.f32 %v1546_v46 }
 0x726   :  { %4968 = vrcp.f32 %v1539_v52 }
 0x732   :  { %v4967_v0 = vpop.eup %4966 }
 0x733   :  { %v1548_v4 = vsub.f32 %v6148_v21, %v4967_v0  ;;  %v4969_v59 = vpop.eup %4968 }
 0x735   :  { %v1549_v5 = vmul.f32 %v4969_v59, %v1548_v4 }
 0x737   :  { %v6195_v11 = vadd.f32 %v4967_v0, %v1549_v5  ;;  %v7222_v5 = vld [vmem:[#allocation33_spill] sm:$0xff] }
 0x739   :  { %v1557_v27 = vpack.c.bf16 %v6195_v11, %v6195_v11 }
 0x73b   :  { %1591 = vmatmul.mubr.bf16.vlgmr.msra.gmra.mxu0 %v1557_v27  ;;  %4490 = vmatmul.mubr.bf16.vlgmr.msra.gmra.mxu1 %v1557_v27 }
 0x73c   :  { %1668 = vmatpush1.bf16.msra.mxu0 %v5296_v14  ;;  %4494 = vmatpush3.bf16.msra.mxu1 %v5594_v36 }
 0x73d   :  { %1669 = vmatprep.subr.bf16.mxu0 %v5303_v16  ;;  %4495 = vmatprep.subr.bf16.mxu1 %v7174_v15 }
 0x73e   :  { %1699 = vmatprep.mubr.bf16.mxu0 %v7175_v7  ;;  %4509 = vmatprep.mubr.msk.bf16.mxu1 %vm5232_vm2, %v7174_v15 }
 0x740   :  { %1670 = vmatpush1.bf16.msra.mxu0 %v5316_v22  ;;  %4496 = vmatpush3.bf16.msra.mxu1 %v5603_v38 }
 0x741   :  { %1671 = vmatprep.subr.bf16.mxu0 %v5324_v24  ;;  %4497 = vmatprep.subr.bf16.mxu1 %v7174_v15 }
 0x744   :  { %1672 = vmatpush1.bf16.msra.mxu0 %v5336_v30  ;;  %4498 = vmatpush3.bf16.msra.mxu1 %v5613_v44 }
 0x745   :  { %1673 = vmatprep.subr.bf16.mxu0 %v5344_v32  ;;  %4499 = vmatprep.subr.bf16.mxu1 %v7174_v15 }
 0x748   :  { %1674 = vmatpush1.bf16.msra.mxu0 %v5361_v39  ;;  %4500 = vmatpush3.bf16.msra.mxu1 %v5620_v47 }
 0x749   :  { %1675 = vmatprep.subr.bf16.mxu0 %v5367_v42  ;;  %4501 = vmatprep.subr.bf16.mxu1 %v7174_v15 }
 0x74c   :  { %1676 = vmatpush1.bf16.msra.mxu0 %v5393_v51  ;;  %4502 = vmatpush3.bf16.msra.mxu1 %v5627_v50 }
 0x74d   :  { %1677 = vmatprep.subr.bf16.mxu0 %v5404_v54  ;;  %4503 = vmatprep.subr.bf16.mxu1 %v7174_v15 }
 0x750   :  { %1678 = vmatpush1.bf16.msra.mxu0 %v5422_v62  ;;  %4504 = vmatpush3.bf16.msra.mxu1 %v5634_v55 }
 0x751   :  { %1679 = vmatprep.subr.bf16.mxu0 %v5430_v1  ;;  %4505 = vmatprep.subr.bf16.mxu1 %v7174_v15 }
 0x754   :  { %1680 = vmatpush1.bf16.msra.mxu0 %v5444_v8  ;;  %4506 = vmatpush3.bf16.msra.mxu1 %v5641_v58 }
 0x755   :  { %1681 = vmatprep.subr.bf16.mxu0 %v5452_v3  ;;  %4507 = vmatprep.subr.bf16.mxu1 %v7174_v15 }
 0x758   :  { %1682 = vmatpush1.bf16.msra.mxu0 %v5469_v18  ;;  %4508 = vmatpush3.bf16.msra.mxu1 %v5648_v61 }
 0x759   :  { %1776 = vmatprep.subr.bf16.mxu0 %v5289_v12  ;;  %4513 = vmatprep.subr.bf16.mxu1 %v7174_v15 }
 0x7fb   :  { %v1592_v19 = vpop.f32.mrf.mxu0  ;;  %v1633_v21 = vpop.f32.mrf.mxu1 }
 0x7fc   :  { %v1639_v60 = vadd.f32 %v1592_v19, %v297_v33  ;;  %v1653_v48 = vadd.f32 %v6241_v57, %v1633_v21 }
 0x7fd   :  { %v1594_v20 = vpop.f32.mrf.mxu0  ;;  %v4491_v49 = vpop.f32.mrf.mxu1 }
 0x7fe   :  { %v3957_v37 = vmul.f32 -1.442695, %v1639_v60  ;;  %v1640_v28 = vadd.f32 %v1594_v20, %v299_v31 }
 0x7ff   :  { %v1596_v17 = vpop.f32.mrf.mxu0  ;;  %v1636_v25 = vpop.f32.mrf.mxu1 }
 0x800   :  { %4970 = vpow2.f32 %v3957_v37  ;;  %v3958_v63 = vmul.f32 -1.442695, %v1640_v28  ;;  %v7223_v25 = vld [vmem:[#allocation34_spill] sm:$0xff] }
 0x801   :  { %v1597_v34 = vpop.f32.mrf.mxu0  ;;  %v4492_v2 = vpop.f32.mrf.mxu1 }
 0x802   :  { %4972 = vpow2.f32 %v3958_v63  ;;  %v305_v34 = vadd.f32 %v7223_v25, %v5798_v29 }
 0x80d   :  { %v4971_v26 = vpop.eup %4970 }
 0x80e   :  { %v1647_v53 = vadd.f32 1.0, %v4971_v26 }
 0x80f   :  { %v4973_v56 = vpop.eup %4972 }
 0x810   :  { %4974 = vrcp.f32 %v1647_v53  ;;  %v1648_v10 = vadd.f32 1.0, %v4973_v56 }
 0x81d   :  { %v4975_v13 = vpop.eup %4974 }
 0x81e   :  { %v1654_v23 = vmul.f32 %v4975_v13, %v1653_v48  ;;  %v7224_v48 = vld [vmem:[#allocation12_spill] sm:$0xff] }
 0x820   :  { %v1655_v41 = vadd.f32 %v1654_v23, %v7221_v9 }
 0x822   :  { %4976 = vtanh.f32 %v1655_v41 }
 0x823   :  { %4978 = vrcp.f32 %v1648_v10 }
 0x82f   :  { %v4977_v40 = vpop.eup %4976 }
 0x830   :  { %v1657_v46 = vsub.f32 %v6195_v11, %v4977_v40  ;;  %v4979_v52 = vpop.eup %4978  ;;  %v303_v11 = vadd.f32 %v7222_v5, %v5786_v43 }
 0x832   :  { %v1658_v0 = vmul.f32 %v4979_v52, %v1657_v46 }
 0x834   :  { %v6246_v4 = vadd.f32 %v4977_v40, %v1658_v0  ;;  %v7225_v0 = vld [vmem:[#allocation35_spill] sm:$0xff] }
 0x836   :  { %v1666_v59 = vpack.c.bf16 %v6246_v4, %v6246_v4 }
 0x838   :  { %1700 = vmatmul.mubr.bf16.vlgmr.msra.gmra.mxu0 %v1666_v59  ;;  %4510 = vmatmul.mubr.bf16.vlgmr.msra.gmra.mxu1 %v1666_v59 }
 0x839   :  { %1777 = vmatpush1.bf16.msra.mxu0 %v5296_v14  ;;  %4514 = vmatpush3.bf16.msra.mxu1 %v5594_v36 }
 0x83a   :  { %1778 = vmatprep.subr.bf16.mxu0 %v5303_v16  ;;  %4515 = vmatprep.subr.bf16.mxu1 %v7174_v15 }
 0x83b   :  { %1808 = vmatprep.mubr.bf16.mxu0 %v7175_v7  ;;  %4529 = vmatprep.mubr.msk.bf16.mxu1 %vm5232_vm2, %v7174_v15 }
 0x83d   :  { %1779 = vmatpush1.bf16.msra.mxu0 %v5316_v22  ;;  %4516 = vmatpush3.bf16.msra.mxu1 %v5603_v38 }
 0x83e   :  { %1780 = vmatprep.subr.bf16.mxu0 %v5324_v24  ;;  %4517 = vmatprep.subr.bf16.mxu1 %v7174_v15 }
 0x841   :  { %1781 = vmatpush1.bf16.msra.mxu0 %v5336_v30  ;;  %4518 = vmatpush3.bf16.msra.mxu1 %v5613_v44 }
 0x842   :  { %1782 = vmatprep.subr.bf16.mxu0 %v5344_v32  ;;  %4519 = vmatprep.subr.bf16.mxu1 %v7174_v15 }
 0x845   :  { %1783 = vmatpush1.bf16.msra.mxu0 %v5361_v39  ;;  %4520 = vmatpush3.bf16.msra.mxu1 %v5620_v47 }
 0x846   :  { %1784 = vmatprep.subr.bf16.mxu0 %v5367_v42  ;;  %4521 = vmatprep.subr.bf16.mxu1 %v7174_v15 }
 0x849   :  { %1785 = vmatpush1.bf16.msra.mxu0 %v5393_v51  ;;  %4522 = vmatpush3.bf16.msra.mxu1 %v5627_v50 }
 0x84a   :  { %1786 = vmatprep.subr.bf16.mxu0 %v5404_v54  ;;  %4523 = vmatprep.subr.bf16.mxu1 %v7174_v15 }
 0x84d   :  { %1787 = vmatpush1.bf16.msra.mxu0 %v5422_v62  ;;  %4524 = vmatpush3.bf16.msra.mxu1 %v5634_v55 }
 0x84e   :  { %1788 = vmatprep.subr.bf16.mxu0 %v5430_v1  ;;  %4525 = vmatprep.subr.bf16.mxu1 %v7174_v15 }
 0x851   :  { %1789 = vmatpush1.bf16.msra.mxu0 %v5444_v8  ;;  %4526 = vmatpush3.bf16.msra.mxu1 %v5641_v58 }
 0x852   :  { %1790 = vmatprep.subr.bf16.mxu0 %v5452_v3  ;;  %4527 = vmatprep.subr.bf16.mxu1 %v7174_v15 }
 0x855   :  { %1791 = vmatpush1.bf16.msra.mxu0 %v5469_v18  ;;  %4528 = vmatpush3.bf16.msra.mxu1 %v5648_v61 }
 0x856   :  { %1885 = vmatprep.subr.bf16.mxu0 %v5289_v12  ;;  %4533 = vmatprep.subr.bf16.mxu1 %v7174_v15 }
 0x8f8   :  { %v1701_v27 = vpop.f32.mrf.mxu0  ;;  %v1742_v35 = vpop.f32.mrf.mxu1 }
 0x8f9   :  { %v1748_v33 = vadd.f32 %v1701_v27, %v303_v11  ;;  %v1762_v26 = vadd.f32 %v6241_v57, %v1742_v35 }
 0x8fa   :  { %v1703_v19 = vpop.f32.mrf.mxu0  ;;  %v4511_v21 = vpop.f32.mrf.mxu1 }
 0x8fb   :  { %v3959_v60 = vmul.f32 -1.442695, %v1748_v33  ;;  %v1749_v2 = vadd.f32 %v1703_v19, %v305_v34 }
 0x8fc   :  { %v1705_v20 = vpop.f32.mrf.mxu0  ;;  %v1745_v49 = vpop.f32.mrf.mxu1 }
 0x8fd   :  { %4980 = vpow2.f32 %v3959_v60  ;;  %v3960_v45 = vmul.f32 -1.442695, %v1749_v2  ;;  %v7226_v49 = vld [vmem:[#allocation36_spill] sm:$0xff] }
 0x8fe   :  { %v1706_v37 = vpop.f32.mrf.mxu0  ;;  %v4512_v17 = vpop.f32.mrf.mxu1 }
 0x8ff   :  { %4982 = vpow2.f32 %v3960_v45  ;;  %v311_v37 = vadd.f32 %v7226_v49, %v5798_v29 }
 0x90a   :  { %v4981_v31 = vpop.eup %4980 }
 0x90b   :  { %v1756_v28 = vadd.f32 1.0, %v4981_v31 }
 0x90c   :  { %v4983_v63 = vpop.eup %4982 }
 0x90d   :  { %4984 = vrcp.f32 %v1756_v28  ;;  %v1757_v23 = vadd.f32 1.0, %v4983_v63 }
 0x91a   :  { %v4985_v53 = vpop.eup %4984 }
 0x91b   :  { %v1763_v56 = vmul.f32 %v4985_v53, %v1762_v26  ;;  %v7227_v26 = vld [vmem:[#allocation11_spill] sm:$0xff] }
 0x91d   :  { %v1764_v13 = vadd.f32 %v1763_v56, %v7224_v48 }
 0x91f   :  { %4986 = vtanh.f32 %v1764_v13 }
 0x920   :  { %4988 = vrcp.f32 %v1757_v23 }
 0x92c   :  { %v4987_v9 = vpop.eup %4986 }
 0x92d   :  { %v1766_v41 = vsub.f32 %v6246_v4, %v4987_v9  ;;  %v4989_v10 = vpop.eup %4988  ;;  %v309_v4 = vadd.f32 %v7225_v0, %v5786_v43 }
 0x92f   :  { %v1767_v40 = vmul.f32 %v4989_v10, %v1766_v41 }
 0x931   :  { %v6292_v46 = vadd.f32 %v4987_v9, %v1767_v40  ;;  %v7228_v40 = vld [vmem:[#allocation37_spill] sm:$0xff] }
 0x933   :  { %v1775_v52 = vpack.c.bf16 %v6292_v46, %v6292_v46 }
 0x935   :  { %1809 = vmatmul.mubr.bf16.vlgmr.msra.gmra.mxu0 %v1775_v52  ;;  %4530 = vmatmul.mubr.bf16.vlgmr.msra.gmra.mxu1 %v1775_v52 }
 0x936   :  { %1886 = vmatpush1.bf16.msra.mxu0 %v5296_v14  ;;  %4534 = vmatpush3.bf16.msra.mxu1 %v5594_v36 }
 0x937   :  { %1887 = vmatprep.subr.bf16.mxu0 %v5303_v16  ;;  %4535 = vmatprep.subr.bf16.mxu1 %v7174_v15 }
 0x938   :  { %1917 = vmatprep.mubr.bf16.mxu0 %v7175_v7  ;;  %4549 = vmatprep.mubr.msk.bf16.mxu1 %vm5232_vm2, %v7174_v15 }
 0x93a   :  { %1888 = vmatpush1.bf16.msra.mxu0 %v5316_v22  ;;  %4536 = vmatpush3.bf16.msra.mxu1 %v5603_v38 }
 0x93b   :  { %1889 = vmatprep.subr.bf16.mxu0 %v5324_v24  ;;  %4537 = vmatprep.subr.bf16.mxu1 %v7174_v15 }
 0x93e   :  { %1890 = vmatpush1.bf16.msra.mxu0 %v5336_v30  ;;  %4538 = vmatpush3.bf16.msra.mxu1 %v5613_v44 }
 0x93f   :  { %1891 = vmatprep.subr.bf16.mxu0 %v5344_v32  ;;  %4539 = vmatprep.subr.bf16.mxu1 %v7174_v15 }
 0x942   :  { %1892 = vmatpush1.bf16.msra.mxu0 %v5361_v39  ;;  %4540 = vmatpush3.bf16.msra.mxu1 %v5620_v47 }
 0x943   :  { %1893 = vmatprep.subr.bf16.mxu0 %v5367_v42  ;;  %4541 = vmatprep.subr.bf16.mxu1 %v7174_v15 }
 0x946   :  { %1894 = vmatpush1.bf16.msra.mxu0 %v5393_v51  ;;  %4542 = vmatpush3.bf16.msra.mxu1 %v5627_v50 }
 0x947   :  { %1895 = vmatprep.subr.bf16.mxu0 %v5404_v54  ;;  %4543 = vmatprep.subr.bf16.mxu1 %v7174_v15 }
 0x94a   :  { %1896 = vmatpush1.bf16.msra.mxu0 %v5422_v62  ;;  %4544 = vmatpush3.bf16.msra.mxu1 %v5634_v55 }
 0x94b   :  { %1897 = vmatprep.subr.bf16.mxu0 %v5430_v1  ;;  %4545 = vmatprep.subr.bf16.mxu1 %v7174_v15 }
 0x94e   :  { %1898 = vmatpush1.bf16.msra.mxu0 %v5444_v8  ;;  %4546 = vmatpush3.bf16.msra.mxu1 %v5641_v58 }
 0x94f   :  { %1899 = vmatprep.subr.bf16.mxu0 %v5452_v3  ;;  %4547 = vmatprep.subr.bf16.mxu1 %v7174_v15 }
 0x952   :  { %1900 = vmatpush1.bf16.msra.mxu0 %v5469_v18  ;;  %4548 = vmatpush3.bf16.msra.mxu1 %v5648_v61 }
 0x953   :  { %1994 = vmatprep.subr.bf16.mxu0 %v5289_v12  ;;  %4553 = vmatprep.subr.bf16.mxu1 %v7174_v15 }
 0x9f5   :  { %v1810_v59 = vpop.f32.mrf.mxu0  ;;  %v1851_v5 = vpop.f32.mrf.mxu1 }
 0x9f6   :  { %v1857_v11 = vadd.f32 %v1810_v59, %v309_v4  ;;  %v1871_v31 = vadd.f32 %v6241_v57, %v1851_v5 }
 0x9f7   :  { %v1812_v27 = vpop.f32.mrf.mxu0  ;;  %v4531_v35 = vpop.f32.mrf.mxu1 }
 0x9f8   :  { %v3961_v33 = vmul.f32 -1.442695, %v1857_v11  ;;  %v1858_v17 = vadd.f32 %v1812_v27, %v311_v37 }
 0x9f9   :  { %v1814_v19 = vpop.f32.mrf.mxu0  ;;  %v1854_v21 = vpop.f32.mrf.mxu1 }
 0x9fa   :  { %4990 = vpow2.f32 %v3961_v33  ;;  %v3962_v25 = vmul.f32 -1.442695, %v1858_v17  ;;  %v7229_v21 = vld [vmem:[#allocation38_spill] sm:$0xff] }
 0x9fb   :  { %v1815_v60 = vpop.f32.mrf.mxu0  ;;  %v4532_v20 = vpop.f32.mrf.mxu1 }
 0x9fc   :  { %4992 = vpow2.f32 %v3962_v25  ;;  %v317_v60 = vadd.f32 %v7229_v21, %v5798_v29 }
 0xa07   :  { %v4991_v34 = vpop.eup %4990 }
 0xa08   :  { %v1865_v2 = vadd.f32 1.0, %v4991_v34 }
 0xa09   :  { %v4993_v45 = vpop.eup %4992 }
 0xa0a   :  { %4994 = vrcp.f32 %v1865_v2  ;;  %v1866_v56 = vadd.f32 1.0, %v4993_v45  ;;  %v7230_v45 = vld [vmem:[#allocation14_spill] sm:$0xff] }
 0xa17   :  { %v4995_v28 = vpop.eup %4994 }
 0xa18   :  { %v1872_v63 = vmul.f32 %v4995_v28, %v1871_v31  ;;  %v538_v31 = vadd.f32 %v7230_v45, %v5715_v6 }
 0xa1a   :  { %v1873_v53 = vadd.f32 %v1872_v63, %v7227_v26 }
 0xa1c   :  { %4996 = vtanh.f32 %v1873_v53 }
 0xa1d   :  { %4998 = vrcp.f32 %v1866_v56 }
 0xa29   :  { %v4997_v48 = vpop.eup %4996 }
 0xa2a   :  { %v1875_v13 = vsub.f32 %v6292_v46, %v4997_v48  ;;  %v4999_v23 = vpop.eup %4998  ;;  %v315_v46 = vadd.f32 %v7228_v40, %v5786_v43 }
 0xa2c   :  { %v1876_v9 = vmul.f32 %v4999_v23, %v1875_v13 }
 0xa2e   :  { %v6338_v41 = vadd.f32 %v4997_v48, %v1876_v9 }
 0xa30   :  { %v1884_v10 = vpack.c.bf16 %v6338_v41, %v6338_v41 }
 0xa32   :  { %1918 = vmatmul.mubr.bf16.vlgmr.msra.gmra.mxu0 %v1884_v10  ;;  %4550 = vmatmul.mubr.bf16.vlgmr.msra.gmra.mxu1 %v1884_v10 }
 0xa33   :  { %1995 = vmatpush1.bf16.msra.mxu0 %v5296_v14  ;;  %4554 = vmatpush3.bf16.msra.mxu1 %v5594_v36 }
 0xa34   :  { %1996 = vmatprep.subr.bf16.mxu0 %v5303_v16  ;;  %4555 = vmatprep.subr.bf16.mxu1 %v7174_v15 }
 0xa35   :  { %2026 = vmatprep.mubr.bf16.mxu0 %v7175_v7  ;;  %4569 = vmatprep.mubr.msk.bf16.mxu1 %vm5232_vm2, %v7174_v15 }
 0xa37   :  { %1997 = vmatpush1.bf16.msra.mxu0 %v5316_v22  ;;  %4556 = vmatpush3.bf16.msra.mxu1 %v5603_v38 }
 0xa38   :  { %1998 = vmatprep.subr.bf16.mxu0 %v5324_v24  ;;  %4557 = vmatprep.subr.bf16.mxu1 %v7174_v15 }
 0xa3b   :  { %1999 = vmatpush1.bf16.msra.mxu0 %v5336_v30  ;;  %4558 = vmatpush3.bf16.msra.mxu1 %v5613_v44 }
 0xa3c   :  { %2000 = vmatprep.subr.bf16.mxu0 %v5344_v32  ;;  %4559 = vmatprep.subr.bf16.mxu1 %v7174_v15 }
 0xa3f   :  { %2001 = vmatpush1.bf16.msra.mxu0 %v5361_v39  ;;  %4560 = vmatpush3.bf16.msra.mxu1 %v5620_v47 }
 0xa40   :  { %2002 = vmatprep.subr.bf16.mxu0 %v5367_v42  ;;  %4561 = vmatprep.subr.bf16.mxu1 %v7174_v15 }
 0xa43   :  { %2003 = vmatpush1.bf16.msra.mxu0 %v5393_v51  ;;  %4562 = vmatpush3.bf16.msra.mxu1 %v5627_v50 }
 0xa44   :  { %2004 = vmatprep.subr.bf16.mxu0 %v5404_v54  ;;  %4563 = vmatprep.subr.bf16.mxu1 %v7174_v15 }
 0xa47   :  { %2005 = vmatpush1.bf16.msra.mxu0 %v5422_v62  ;;  %4564 = vmatpush3.bf16.msra.mxu1 %v5634_v55 }
 0xa48   :  { %2006 = vmatprep.subr.bf16.mxu0 %v5430_v1  ;;  %4565 = vmatprep.subr.bf16.mxu1 %v7174_v15 }
 0xa4b   :  { %2007 = vmatpush1.bf16.msra.mxu0 %v5444_v8  ;;  %4566 = vmatpush3.bf16.msra.mxu1 %v5641_v58 }
 0xa4c   :  { %2008 = vmatprep.subr.bf16.mxu0 %v5452_v3  ;;  %4567 = vmatprep.subr.bf16.mxu1 %v7174_v15 }
 0xa4f   :  { %2009 = vmatpush1.bf16.msra.mxu0 %v5469_v18  ;;  %4568 = vmatpush3.bf16.msra.mxu1 %v5648_v61 }
 0xa50   :  { %2103 = vmatprep.subr.bf16.mxu0 %v5289_v12  ;;  %4573 = vmatprep.subr.bf16.mxu1 %v7174_v15 }
 0xaf2   :  { %v1919_v52 = vpop.f32.mrf.mxu0  ;;  %v1960_v0 = vpop.f32.mrf.mxu1 }
 0xaf3   :  { %v1966_v4 = vadd.f32 %v1919_v52, %v315_v46  ;;  %v1980_v34 = vadd.f32 %v6241_v57, %v1960_v0 }
 0xaf4   :  { %v1921_v59 = vpop.f32.mrf.mxu0  ;;  %v4551_v5 = vpop.f32.mrf.mxu1 }
 0xaf5   :  { %v3963_v11 = vmul.f32 -1.442695, %v1966_v4  ;;  %v1967_v20 = vadd.f32 %v1921_v59, %v317_v60 }
 0xaf6   :  { %v1923_v27 = vpop.f32.mrf.mxu0  ;;  %v1963_v35 = vpop.f32.mrf.mxu1 }
 0xaf7   :  { %5000 = vpow2.f32 %v3963_v11  ;;  %v3964_v49 = vmul.f32 -1.442695, %v1967_v20 }
 0xaf8   :  { %v1924_v33 = vpop.f32.mrf.mxu0  ;;  %v4552_v19 = vpop.f32.mrf.mxu1 }
 0xaf9   :  { %5002 = vpow2.f32 %v3964_v49  ;;  %v7232_v33 = vld [vmem:[#allocation40_spill] sm:$0xff] }
 0xafa   :  { %v323_v19 = vadd.f32 %v7232_v33, %v5798_v29 }
 0xb04   :  { %v5001_v37 = vpop.eup %5000 }
 0xb05   :  { %v1974_v17 = vadd.f32 1.0, %v5001_v37 }
 0xb06   :  { %v5003_v25 = vpop.eup %5002 }
 0xb07   :  { %5004 = vrcp.f32 %v1974_v17  ;;  %v1975_v26 = vadd.f32 1.0, %v5003_v25 }
 0xb14   :  { %v5005_v2 = vpop.eup %5004 }
 0xb15   :  { %v1981_v28 = vmul.f32 %v5005_v2, %v1980_v34  ;;  %v7233_v2 = vld [vmem:[#allocation13_spill] sm:$0xff] }
 0xb17   :  { %v1982_v63 = vadd.f32 %v1981_v28, %v538_v31 }
 0xb19   :  { %5006 = vtanh.f32 %v1982_v63 }
 0xb1a   :  { %5008 = vrcp.f32 %v1975_v26 }
 0xb26   :  { %v5007_v53 = vpop.eup %5006 }
 0xb27   :  { %v1984_v56 = vsub.f32 %v6338_v41, %v5007_v53  ;;  %v5009_v48 = vpop.eup %5008  ;;  %v7231_v41 = vld [vmem:[#allocation39_spill] sm:$0xff] }
 0xb28   :  { %v321_v10 = vadd.f32 %v7231_v41, %v5786_v43 }
 0xb29   :  { %v1985_v13 = vmul.f32 %v5009_v48, %v1984_v56 }
 0xb2b   :  { %v6385_v23 = vadd.f32 %v5007_v53, %v1985_v13  ;;  %v7234_v13 = vld [vmem:[#allocation41_spill] sm:$0xff] }
 0xb2d   :  { %v1993_v9 = vpack.c.bf16 %v6385_v23, %v6385_v23 }
 0xb2f   :  { %2027 = vmatmul.mubr.bf16.vlgmr.msra.gmra.mxu0 %v1993_v9  ;;  %4570 = vmatmul.mubr.bf16.vlgmr.msra.gmra.mxu1 %v1993_v9 }
 0xb30   :  { %2104 = vmatpush1.bf16.msra.mxu0 %v5296_v14  ;;  %4574 = vmatpush3.bf16.msra.mxu1 %v5594_v36 }
 0xb31   :  { %2105 = vmatprep.subr.bf16.mxu0 %v5303_v16  ;;  %4575 = vmatprep.subr.bf16.mxu1 %v7174_v15 }
 0xb32   :  { %2135 = vmatprep.mubr.bf16.mxu0 %v7175_v7  ;;  %4589 = vmatprep.mubr.msk.bf16.mxu1 %vm5232_vm2, %v7174_v15 }
 0xb34   :  { %2106 = vmatpush1.bf16.msra.mxu0 %v5316_v22  ;;  %4576 = vmatpush3.bf16.msra.mxu1 %v5603_v38 }
 0xb35   :  { %2107 = vmatprep.subr.bf16.mxu0 %v5324_v24  ;;  %4577 = vmatprep.subr.bf16.mxu1 %v7174_v15 }
 0xb38   :  { %2108 = vmatpush1.bf16.msra.mxu0 %v5336_v30  ;;  %4578 = vmatpush3.bf16.msra.mxu1 %v5613_v44 }
 0xb39   :  { %2109 = vmatprep.subr.bf16.mxu0 %v5344_v32  ;;  %4579 = vmatprep.subr.bf16.mxu1 %v7174_v15 }
 0xb3c   :  { %2110 = vmatpush1.bf16.msra.mxu0 %v5361_v39  ;;  %4580 = vmatpush3.bf16.msra.mxu1 %v5620_v47 }
 0xb3d   :  { %2111 = vmatprep.subr.bf16.mxu0 %v5367_v42  ;;  %4581 = vmatprep.subr.bf16.mxu1 %v7174_v15 }
 0xb40   :  { %2112 = vmatpush1.bf16.msra.mxu0 %v5393_v51  ;;  %4582 = vmatpush3.bf16.msra.mxu1 %v5627_v50 }
 0xb41   :  { %2113 = vmatprep.subr.bf16.mxu0 %v5404_v54  ;;  %4583 = vmatprep.subr.bf16.mxu1 %v7174_v15 }
 0xb44   :  { %2114 = vmatpush1.bf16.msra.mxu0 %v5422_v62  ;;  %4584 = vmatpush3.bf16.msra.mxu1 %v5634_v55 }
 0xb45   :  { %2115 = vmatprep.subr.bf16.mxu0 %v5430_v1  ;;  %4585 = vmatprep.subr.bf16.mxu1 %v7174_v15 }
 0xb48   :  { %2116 = vmatpush1.bf16.msra.mxu0 %v5444_v8  ;;  %4586 = vmatpush3.bf16.msra.mxu1 %v5641_v58 }
 0xb49   :  { %2117 = vmatprep.subr.bf16.mxu0 %v5452_v3  ;;  %4587 = vmatprep.subr.bf16.mxu1 %v7174_v15 }
 0xb4c   :  { %2118 = vmatpush1.bf16.msra.mxu0 %v5469_v18  ;;  %4588 = vmatpush3.bf16.msra.mxu1 %v5648_v61 }
 0xb4d   :  { %2212 = vmatprep.subr.bf16.mxu0 %v5289_v12  ;;  %4593 = vmatprep.subr.bf16.mxu1 %v7174_v15 }
 0xbef   :  { %v2028_v40 = vpop.f32.mrf.mxu0  ;;  %v2069_v46 = vpop.f32.mrf.mxu1 }
 0xbf0   :  { %v2075_v52 = vadd.f32 %v2028_v40, %v321_v10  ;;  %v2089_v17 = vadd.f32 %v6241_v57, %v2069_v46 }
 0xbf1   :  { %v2030_v0 = vpop.f32.mrf.mxu0  ;;  %v4571_v4 = vpop.f32.mrf.mxu1 }
 0xbf2   :  { %v3965_v59 = vmul.f32 -1.442695, %v2075_v52  ;;  %v2076_v21 = vadd.f32 %v2030_v0, %v323_v19 }
 0xbf3   :  { %v2032_v5 = vpop.f32.mrf.mxu0  ;;  %v2072_v11 = vpop.f32.mrf.mxu1 }
 0xbf4   :  { %5010 = vpow2.f32 %v3965_v59  ;;  %v3966_v60 = vmul.f32 -1.442695, %v2076_v21  ;;  %v7235_v11 = vld [vmem:[#allocation42_spill] sm:$0xff] }
 0xbf5   :  { %v2033_v27 = vpop.f32.mrf.mxu0  ;;  %v4572_v35 = vpop.f32.mrf.mxu1 }
 0xbf6   :  { %5012 = vpow2.f32 %v3966_v60  ;;  %v329_v27 = vadd.f32 %v7235_v11, %v5798_v29 }
 0xc01   :  { %v5011_v20 = vpop.eup %5010 }
 0xc02   :  { %v2083_v49 = vadd.f32 1.0, %v5011_v20 }
 0xc03   :  { %v5013_v37 = vpop.eup %5012 }
 0xc04   :  { %5014 = vrcp.f32 %v2083_v49  ;;  %v2084_v31 = vadd.f32 1.0, %v5013_v37 }
 0xc11   :  { %v5015_v25 = vpop.eup %5014 }
 0xc12   :  { %v2090_v34 = vmul.f32 %v5015_v25, %v2089_v17  ;;  %v7236_v17 = vld [vmem:[#allocation16_spill] sm:$0xff] }
 0xc14   :  { %v2091_v45 = vadd.f32 %v2090_v34, %v7233_v2 }
 0xc16   :  { %5016 = vtanh.f32 %v2091_v45 }
 0xc17   :  { %5018 = vrcp.f32 %v2084_v31 }
 0xc23   :  { %v5017_v28 = vpop.eup %5016 }
 0xc24   :  { %v2093_v63 = vsub.f32 %v6385_v23, %v5017_v28  ;;  %v5019_v26 = vpop.eup %5018  ;;  %v327_v23 = vadd.f32 %v7234_v13, %v5786_v43 }
 0xc26   :  { %v2094_v53 = vmul.f32 %v5019_v26, %v2093_v63 }
 0xc28   :  { %v6431_v56 = vadd.f32 %v5017_v28, %v2094_v53  ;;  %v7237_v53 = vld [vmem:[#allocation43_spill] sm:$0xff] }
 0xc2a   :  { %v2102_v48 = vpack.c.bf16 %v6431_v56, %v6431_v56 }
 0xc2c   :  { %2136 = vmatmul.mubr.bf16.vlgmr.msra.gmra.mxu0 %v2102_v48  ;;  %4590 = vmatmul.mubr.bf16.vlgmr.msra.gmra.mxu1 %v2102_v48 }
 0xc2d   :  { %2213 = vmatpush1.bf16.msra.mxu0 %v5296_v14  ;;  %4594 = vmatpush3.bf16.msra.mxu1 %v5594_v36 }
 0xc2e   :  { %2214 = vmatprep.subr.bf16.mxu0 %v5303_v16  ;;  %4595 = vmatprep.subr.bf16.mxu1 %v7174_v15 }
 0xc2f   :  { %2244 = vmatprep.mubr.bf16.mxu0 %v7175_v7  ;;  %4609 = vmatprep.mubr.msk.bf16.mxu1 %vm5232_vm2, %v7174_v15 }
 0xc31   :  { %2215 = vmatpush1.bf16.msra.mxu0 %v5316_v22  ;;  %4596 = vmatpush3.bf16.msra.mxu1 %v5603_v38 }
 0xc32   :  { %2216 = vmatprep.subr.bf16.mxu0 %v5324_v24  ;;  %4597 = vmatprep.subr.bf16.mxu1 %v7174_v15 }
 0xc35   :  { %2217 = vmatpush1.bf16.msra.mxu0 %v5336_v30  ;;  %4598 = vmatpush3.bf16.msra.mxu1 %v5613_v44 }
 0xc36   :  { %2218 = vmatprep.subr.bf16.mxu0 %v5344_v32  ;;  %4599 = vmatprep.subr.bf16.mxu1 %v7174_v15 }
 0xc39   :  { %2219 = vmatpush1.bf16.msra.mxu0 %v5361_v39  ;;  %4600 = vmatpush3.bf16.msra.mxu1 %v5620_v47 }
 0xc3a   :  { %2220 = vmatprep.subr.bf16.mxu0 %v5367_v42  ;;  %4601 = vmatprep.subr.bf16.mxu1 %v7174_v15 }
 0xc3d   :  { %2221 = vmatpush1.bf16.msra.mxu0 %v5393_v51  ;;  %4602 = vmatpush3.bf16.msra.mxu1 %v5627_v50 }
 0xc3e   :  { %2222 = vmatprep.subr.bf16.mxu0 %v5404_v54  ;;  %4603 = vmatprep.subr.bf16.mxu1 %v7174_v15 }
 0xc41   :  { %2223 = vmatpush1.bf16.msra.mxu0 %v5422_v62  ;;  %4604 = vmatpush3.bf16.msra.mxu1 %v5634_v55 }
 0xc42   :  { %2224 = vmatprep.subr.bf16.mxu0 %v5430_v1  ;;  %4605 = vmatprep.subr.bf16.mxu1 %v7174_v15 }
 0xc45   :  { %2225 = vmatpush1.bf16.msra.mxu0 %v5444_v8  ;;  %4606 = vmatpush3.bf16.msra.mxu1 %v5641_v58 }
 0xc46   :  { %2226 = vmatprep.subr.bf16.mxu0 %v5452_v3  ;;  %4607 = vmatprep.subr.bf16.mxu1 %v7174_v15 }
 0xc49   :  { %2227 = vmatpush1.bf16.msra.mxu0 %v5469_v18  ;;  %4608 = vmatpush3.bf16.msra.mxu1 %v5648_v61 }
 0xc4a   :  { %2321 = vmatprep.subr.bf16.mxu0 %v5289_v12  ;;  %4613 = vmatprep.subr.bf16.mxu1 %v7174_v15 }
 0xcec   :  { %v2137_v9 = vpop.f32.mrf.mxu0  ;;  %v2178_v41 = vpop.f32.mrf.mxu1 }
 0xced   :  { %v2184_v10 = vadd.f32 %v2137_v9, %v327_v23  ;;  %v2198_v20 = vadd.f32 %v6241_v57, %v2178_v41 }
 0xcee   :  { %v2139_v40 = vpop.f32.mrf.mxu0  ;;  %v4591_v46 = vpop.f32.mrf.mxu1 }
 0xcef   :  { %v3967_v52 = vmul.f32 -1.442695, %v2184_v10  ;;  %v2185_v35 = vadd.f32 %v2139_v40, %v329_v27 }
 0xcf0   :  { %v2141_v0 = vpop.f32.mrf.mxu0  ;;  %v2181_v4 = vpop.f32.mrf.mxu1 }
 0xcf1   :  { %5020 = vpow2.f32 %v3967_v52  ;;  %v3968_v33 = vmul.f32 -1.442695, %v2185_v35  ;;  %v7238_v4 = vld [vmem:[#allocation44_spill] sm:$0xff] }
 0xcf2   :  { %v2142_v59 = vpop.f32.mrf.mxu0  ;;  %v4592_v5 = vpop.f32.mrf.mxu1 }
 0xcf3   :  { %5022 = vpow2.f32 %v3968_v33  ;;  %v335_v59 = vadd.f32 %v7238_v4, %v5798_v29 }
 0xcfe   :  { %v5021_v19 = vpop.eup %5020 }
 0xcff   :  { %v2192_v21 = vadd.f32 1.0, %v5021_v19 }
 0xd00   :  { %v5023_v60 = vpop.eup %5022 }
 0xd01   :  { %5024 = vrcp.f32 %v2192_v21  ;;  %v2193_v34 = vadd.f32 1.0, %v5023_v60 }
 0xd0e   :  { %v5025_v49 = vpop.eup %5024 }
 0xd0f   :  { %v2199_v37 = vmul.f32 %v5025_v49, %v2198_v20  ;;  %v7239_v20 = vld [vmem:[#allocation15_spill] sm:$0xff] }
 0xd11   :  { %v2200_v25 = vadd.f32 %v2199_v37, %v7236_v17 }
 0xd13   :  { %5026 = vtanh.f32 %v2200_v25 }
 0xd14   :  { %5028 = vrcp.f32 %v2193_v34 }
 0xd20   :  { %v5027_v2 = vpop.eup %5026 }
 0xd21   :  { %v2202_v45 = vsub.f32 %v6431_v56, %v5027_v2  ;;  %v5029_v31 = vpop.eup %5028  ;;  %v333_v56 = vadd.f32 %v7237_v53, %v5786_v43 }
 0xd23   :  { %v2203_v28 = vmul.f32 %v5029_v31, %v2202_v45 }
 0xd25   :  { %v6477_v63 = vadd.f32 %v5027_v2, %v2203_v28  ;;  %v7240_v28 = vld [vmem:[#allocation45_spill] sm:$0xff] }
 0xd27   :  { %v2211_v26 = vpack.c.bf16 %v6477_v63, %v6477_v63 }
 0xd29   :  { %2245 = vmatmul.mubr.bf16.vlgmr.msra.gmra.mxu0 %v2211_v26  ;;  %4610 = vmatmul.mubr.bf16.vlgmr.msra.gmra.mxu1 %v2211_v26 }
 0xd2a   :  { %2322 = vmatpush1.bf16.msra.mxu0 %v5296_v14  ;;  %4614 = vmatpush3.bf16.msra.mxu1 %v5594_v36 }
 0xd2b   :  { %2323 = vmatprep.subr.bf16.mxu0 %v5303_v16  ;;  %4615 = vmatprep.subr.bf16.mxu1 %v7174_v15 }
 0xd2c   :  { %2353 = vmatprep.mubr.bf16.mxu0 %v7175_v7  ;;  %4629 = vmatprep.mubr.msk.bf16.mxu1 %vm5232_vm2, %v7174_v15 }
 0xd2e   :  { %2324 = vmatpush1.bf16.msra.mxu0 %v5316_v22  ;;  %4616 = vmatpush3.bf16.msra.mxu1 %v5603_v38 }
 0xd2f   :  { %2325 = vmatprep.subr.bf16.mxu0 %v5324_v24  ;;  %4617 = vmatprep.subr.bf16.mxu1 %v7174_v15 }
 0xd32   :  { %2326 = vmatpush1.bf16.msra.mxu0 %v5336_v30  ;;  %4618 = vmatpush3.bf16.msra.mxu1 %v5613_v44 }
 0xd33   :  { %2327 = vmatprep.subr.bf16.mxu0 %v5344_v32  ;;  %4619 = vmatprep.subr.bf16.mxu1 %v7174_v15 }
 0xd36   :  { %2328 = vmatpush1.bf16.msra.mxu0 %v5361_v39  ;;  %4620 = vmatpush3.bf16.msra.mxu1 %v5620_v47 }
 0xd37   :  { %2329 = vmatprep.subr.bf16.mxu0 %v5367_v42  ;;  %4621 = vmatprep.subr.bf16.mxu1 %v7174_v15 }
 0xd3a   :  { %2330 = vmatpush1.bf16.msra.mxu0 %v5393_v51  ;;  %4622 = vmatpush3.bf16.msra.mxu1 %v5627_v50 }
 0xd3b   :  { %2331 = vmatprep.subr.bf16.mxu0 %v5404_v54  ;;  %4623 = vmatprep.subr.bf16.mxu1 %v7174_v15 }
 0xd3e   :  { %2332 = vmatpush1.bf16.msra.mxu0 %v5422_v62  ;;  %4624 = vmatpush3.bf16.msra.mxu1 %v5634_v55 }
 0xd3f   :  { %2333 = vmatprep.subr.bf16.mxu0 %v5430_v1  ;;  %4625 = vmatprep.subr.bf16.mxu1 %v7174_v15 }
 0xd42   :  { %2334 = vmatpush1.bf16.msra.mxu0 %v5444_v8  ;;  %4626 = vmatpush3.bf16.msra.mxu1 %v5641_v58 }
 0xd43   :  { %2335 = vmatprep.subr.bf16.mxu0 %v5452_v3  ;;  %4627 = vmatprep.subr.bf16.mxu1 %v7174_v15 }
 0xd46   :  { %2336 = vmatpush1.bf16.msra.mxu0 %v5469_v18  ;;  %4628 = vmatpush3.bf16.msra.mxu1 %v5648_v61 }
 0xd47   :  { %2430 = vmatprep.subr.bf16.mxu0 %v5289_v12  ;;  %4633 = vmatprep.subr.bf16.mxu1 %v7174_v15 }
 0xde9   :  { %v2246_v48 = vpop.f32.mrf.mxu0  ;;  %v2287_v13 = vpop.f32.mrf.mxu1 }
 0xdea   :  { %v2293_v23 = vadd.f32 %v2246_v48, %v333_v56  ;;  %v2307_v19 = vadd.f32 %v6241_v57, %v2287_v13 }
 0xdeb   :  { %v2248_v9 = vpop.f32.mrf.mxu0  ;;  %v4611_v41 = vpop.f32.mrf.mxu1 }
 0xdec   :  { %v3969_v10 = vmul.f32 -1.442695, %v2293_v23  ;;  %v2294_v5 = vadd.f32 %v2248_v9, %v335_v59 }
 0xded   :  { %v2250_v40 = vpop.f32.mrf.mxu0  ;;  %v2290_v46 = vpop.f32.mrf.mxu1 }
 0xdee   :  { %5030 = vpow2.f32 %v3969_v10  ;;  %v3970_v11 = vmul.f32 -1.442695, %v2294_v5  ;;  %v7241_v46 = vld [vmem:[#allocation46_spill] sm:$0xff] }
 0xdef   :  { %v2251_v52 = vpop.f32.mrf.mxu0  ;;  %v4612_v0 = vpop.f32.mrf.mxu1 }
 0xdf0   :  { %5032 = vpow2.f32 %v3970_v11  ;;  %v341_v52 = vadd.f32 %v7241_v46, %v5798_v29 }
 0xdfb   :  { %v5031_v27 = vpop.eup %5030 }
 0xdfc   :  { %v2301_v35 = vadd.f32 1.0, %v5031_v27 }
 0xdfd   :  { %v5033_v33 = vpop.eup %5032 }
 0xdfe   :  { %5034 = vrcp.f32 %v2301_v35  ;;  %v2302_v37 = vadd.f32 1.0, %v5033_v33  ;;  %v7242_v33 = vld [vmem:[#allocation18_spill] sm:$0xff] }
 0xe0b   :  { %v5035_v21 = vpop.eup %5034 }
 0xe0c   :  { %v2308_v60 = vmul.f32 %v5035_v21, %v2307_v19  ;;  %v558_v19 = vadd.f32 %v7242_v33, %v5715_v6 }
 0xe0e   :  { %v2309_v49 = vadd.f32 %v2308_v60, %v7239_v20 }
 0xe10   :  { %5036 = vtanh.f32 %v2309_v49 }
 0xe11   :  { %5038 = vrcp.f32 %v2302_v37 }
 0xe1d   :  { %v5037_v17 = vpop.eup %5036 }
 0xe1e   :  { %v2311_v25 = vsub.f32 %v6477_v63, %v5037_v17  ;;  %v5039_v34 = vpop.eup %5038  ;;  %v339_v63 = vadd.f32 %v7240_v28, %v5786_v43 }
 0xe20   :  { %v2312_v2 = vmul.f32 %v5039_v34, %v2311_v25 }
 0xe22   :  { %v6523_v45 = vadd.f32 %v5037_v17, %v2312_v2 }
 0xe24   :  { %v2320_v31 = vpack.c.bf16 %v6523_v45, %v6523_v45 }
 0xe26   :  { %2354 = vmatmul.mubr.bf16.vlgmr.msra.gmra.mxu0 %v2320_v31  ;;  %4630 = vmatmul.mubr.bf16.vlgmr.msra.gmra.mxu1 %v2320_v31 }
 0xe27   :  { %2431 = vmatpush1.bf16.msra.mxu0 %v5296_v14  ;;  %4634 = vmatpush3.bf16.msra.mxu1 %v5594_v36 }
 0xe28   :  { %2432 = vmatprep.subr.bf16.mxu0 %v5303_v16  ;;  %4635 = vmatprep.subr.bf16.mxu1 %v7174_v15 }
 0xe29   :  { %2462 = vmatprep.mubr.bf16.mxu0 %v7175_v7  ;;  %4649 = vmatprep.mubr.msk.bf16.mxu1 %vm5232_vm2, %v7174_v15 }
 0xe2b   :  { %2433 = vmatpush1.bf16.msra.mxu0 %v5316_v22  ;;  %4636 = vmatpush3.bf16.msra.mxu1 %v5603_v38 }
 0xe2c   :  { %2434 = vmatprep.subr.bf16.mxu0 %v5324_v24  ;;  %4637 = vmatprep.subr.bf16.mxu1 %v7174_v15 }
 0xe2f   :  { %2435 = vmatpush1.bf16.msra.mxu0 %v5336_v30  ;;  %4638 = vmatpush3.bf16.msra.mxu1 %v5613_v44 }
 0xe30   :  { %2436 = vmatprep.subr.bf16.mxu0 %v5344_v32  ;;  %4639 = vmatprep.subr.bf16.mxu1 %v7174_v15 }
 0xe33   :  { %2437 = vmatpush1.bf16.msra.mxu0 %v5361_v39  ;;  %4640 = vmatpush3.bf16.msra.mxu1 %v5620_v47 }
 0xe34   :  { %2438 = vmatprep.subr.bf16.mxu0 %v5367_v42  ;;  %4641 = vmatprep.subr.bf16.mxu1 %v7174_v15 }
 0xe37   :  { %2439 = vmatpush1.bf16.msra.mxu0 %v5393_v51  ;;  %4642 = vmatpush3.bf16.msra.mxu1 %v5627_v50 }
 0xe38   :  { %2440 = vmatprep.subr.bf16.mxu0 %v5404_v54  ;;  %4643 = vmatprep.subr.bf16.mxu1 %v7174_v15 }
 0xe3b   :  { %2441 = vmatpush1.bf16.msra.mxu0 %v5422_v62  ;;  %4644 = vmatpush3.bf16.msra.mxu1 %v5634_v55 }
 0xe3c   :  { %2442 = vmatprep.subr.bf16.mxu0 %v5430_v1  ;;  %4645 = vmatprep.subr.bf16.mxu1 %v7174_v15 }
 0xe3f   :  { %2443 = vmatpush1.bf16.msra.mxu0 %v5444_v8  ;;  %4646 = vmatpush3.bf16.msra.mxu1 %v5641_v58 }
 0xe40   :  { %2444 = vmatprep.subr.bf16.mxu0 %v5452_v3  ;;  %4647 = vmatprep.subr.bf16.mxu1 %v7174_v15 }
 0xe43   :  { %2445 = vmatpush1.bf16.msra.mxu0 %v5469_v18  ;;  %4648 = vmatpush3.bf16.msra.mxu1 %v5648_v61 }
 0xe44   :  { %2539 = vmatprep.subr.bf16.mxu0 %v5289_v12  ;;  %4653 = vmatprep.subr.bf16.mxu1 %v7174_v15 }
 0xee6   :  { %v2355_v26 = vpop.f32.mrf.mxu0  ;;  %v2396_v53 = vpop.f32.mrf.mxu1 }
 0xee7   :  { %v2402_v56 = vadd.f32 %v2355_v26, %v339_v63  ;;  %v2416_v27 = vadd.f32 %v6241_v57, %v2396_v53  ;;  %v7243_v57 = vld [vmem:[#allocation47_spill] sm:$0xff] }
 0xee8   :  { %v2357_v48 = vpop.f32.mrf.mxu0  ;;  %v4631_v13 = vpop.f32.mrf.mxu1 }
 0xee9   :  { %v3971_v23 = vmul.f32 -1.442695, %v2402_v56  ;;  %v2403_v0 = vadd.f32 %v2357_v48, %v341_v52 }
 0xeea   :  { %v2359_v9 = vpop.f32.mrf.mxu0  ;;  %v2399_v41 = vpop.f32.mrf.mxu1 }
 0xeeb   :  { %5040 = vpow2.f32 %v3971_v23  ;;  %v3972_v4 = vmul.f32 -1.442695, %v2403_v0  ;;  %v7244_v41 = vld [vmem:[#allocation48_spill] sm:$0xff] }
 0xeec   :  { %v2360_v10 = vpop.f32.mrf.mxu0  ;;  %v4632_v40 = vpop.f32.mrf.mxu1 }
 0xeed   :  { %5042 = vpow2.f32 %v3972_v4  ;;  %v347_v10 = vadd.f32 %v7244_v41, %v5798_v29 }
 0xef8   :  { %v5041_v59 = vpop.eup %5040 }
 0xef9   :  { %v2410_v5 = vadd.f32 1.0, %v5041_v59  ;;  %v6616_v59 = vld [vmem:[%s7146_s4] ss:$0 sm:$0xff] }
 0xefa   :  { %v5043_v11 = vpop.eup %5042 }
 0xefb   :  { %5044 = vrcp.f32 %v2410_v5  ;;  %v2411_v20 = vadd.f32 1.0, %v5043_v11 }
 0xf08   :  { %v5045_v35 = vpop.eup %5044 }
 0xf09   :  { %v2417_v21 = vmul.f32 %v5045_v35, %v2416_v27  ;;  %v7245_v35 = vld [vmem:[#allocation17_spill] sm:$0xff] }
 0xf0b   :  { %v2418_v60 = vadd.f32 %v2417_v21, %v558_v19 }
 0xf0d   :  { %5046 = vtanh.f32 %v2418_v60 }
 0xf0e   :  { %5048 = vrcp.f32 %v2411_v20 }
 0xf1a   :  { %v5047_v49 = vpop.eup %5046 }
 0xf1b   :  { %v2420_v37 = vsub.f32 %v6523_v45, %v5047_v49  ;;  %v5049_v17 = vpop.eup %5048  ;;  %v345_v45 = vadd.f32 %v7243_v57, %v5786_v43 }
 0xf1d   :  { %v2421_v25 = vmul.f32 %v5049_v17, %v2420_v37 }
 0xf1f   :  { %v6570_v34 = vadd.f32 %v5047_v49, %v2421_v25  ;;  %v7246_v25 = vld [vmem:[#allocation49_spill] sm:$0xff] }
 0xf21   :  { %v2429_v2 = vpack.c.bf16 %v6570_v34, %v6570_v34 }
 0xf23   :  { %2463 = vmatmul.mubr.bf16.vlgmr.msra.gmra.mxu0 %v2429_v2  ;;  %4650 = vmatmul.mubr.bf16.vlgmr.msra.gmra.mxu1 %v2429_v2 }
 0xf24   :  { %2540 = vmatpush1.bf16.msra.mxu0 %v5296_v14  ;;  %4654 = vmatpush3.bf16.msra.mxu1 %v5594_v36 }
 0xf25   :  { %2541 = vmatprep.subr.bf16.mxu0 %v5303_v16  ;;  %4655 = vmatprep.subr.bf16.mxu1 %v7174_v15 }
 0xf26   :  { %2571 = vmatprep.mubr.bf16.mxu0 %v7175_v7  ;;  %4669 = vmatprep.mubr.msk.bf16.mxu1 %vm5232_vm2, %v7174_v15 }
 0xf28   :  { %2542 = vmatpush1.bf16.msra.mxu0 %v5316_v22  ;;  %4656 = vmatpush3.bf16.msra.mxu1 %v5603_v38 }
 0xf29   :  { %2543 = vmatprep.subr.bf16.mxu0 %v5324_v24  ;;  %4657 = vmatprep.subr.bf16.mxu1 %v7174_v15 }
 0xf2c   :  { %2544 = vmatpush1.bf16.msra.mxu0 %v5336_v30  ;;  %4658 = vmatpush3.bf16.msra.mxu1 %v5613_v44 }
 0xf2d   :  { %2545 = vmatprep.subr.bf16.mxu0 %v5344_v32  ;;  %4659 = vmatprep.subr.bf16.mxu1 %v7174_v15 }
 0xf30   :  { %2546 = vmatpush1.bf16.msra.mxu0 %v5361_v39  ;;  %4660 = vmatpush3.bf16.msra.mxu1 %v5620_v47 }
 0xf31   :  { %2547 = vmatprep.subr.bf16.mxu0 %v5367_v42  ;;  %4661 = vmatprep.subr.bf16.mxu1 %v7174_v15 }
 0xf34   :  { %2548 = vmatpush1.bf16.msra.mxu0 %v5393_v51  ;;  %4662 = vmatpush3.bf16.msra.mxu1 %v5627_v50 }
 0xf35   :  { %2549 = vmatprep.subr.bf16.mxu0 %v5404_v54  ;;  %4663 = vmatprep.subr.bf16.mxu1 %v7174_v15 }
 0xf38   :  { %2550 = vmatpush1.bf16.msra.mxu0 %v5422_v62  ;;  %4664 = vmatpush3.bf16.msra.mxu1 %v5634_v55 }
 0xf39   :  { %2551 = vmatprep.subr.bf16.mxu0 %v5430_v1  ;;  %4665 = vmatprep.subr.bf16.mxu1 %v7174_v15 }
 0xf3c   :  { %2552 = vmatpush1.bf16.msra.mxu0 %v5444_v8  ;;  %4666 = vmatpush3.bf16.msra.mxu1 %v5641_v58 }
 0xf3d   :  { %2553 = vmatprep.subr.bf16.mxu0 %v5452_v3  ;;  %4667 = vmatprep.subr.bf16.mxu1 %v7174_v15 }
 0xf40   :  { %2554 = vmatpush1.bf16.msra.mxu0 %v5469_v18  ;;  %4668 = vmatpush3.bf16.msra.mxu1 %v5648_v61 }
 0xf41   :  { %2648 = vmatprep.subr.bf16.mxu0 %v5289_v12  ;;  %4673 = vmatprep.subr.bf16.mxu1 %v7174_v15 }
 0xfe3   :  { %v2464_v31 = vpop.f32.mrf.mxu0  ;;  %v2505_v28 = vpop.f32.mrf.mxu1 }
 0xfe4   :  { %v2511_v63 = vadd.f32 %v2464_v31, %v345_v45  ;;  %v2525_v5 = vadd.f32 %v6616_v59, %v2505_v28 }
 0xfe5   :  { %v2466_v26 = vpop.f32.mrf.mxu0  ;;  %v4651_v53 = vpop.f32.mrf.mxu1 }
 0xfe6   :  { %v3973_v56 = vmul.f32 -1.442695, %v2511_v63  ;;  %v2512_v40 = vadd.f32 %v2466_v26, %v347_v10 }
 0xfe7   :  { %v2468_v48 = vpop.f32.mrf.mxu0  ;;  %v2508_v13 = vpop.f32.mrf.mxu1 }
 0xfe8   :  { %5050 = vpow2.f32 %v3973_v56  ;;  %v3974_v46 = vmul.f32 -1.442695, %v2512_v40  ;;  %v7247_v13 = vld [vmem:[#allocation50_spill] sm:$0xff] }
 0xfe9   :  { %v2469_v23 = vpop.f32.mrf.mxu0  ;;  %v4652_v9 = vpop.f32.mrf.mxu1 }
 0xfea   :  { %5052 = vpow2.f32 %v3974_v46  ;;  %v353_v23 = vadd.f32 %v7247_v13, %v5798_v29 }
 0xff5   :  { %v5051_v52 = vpop.eup %5050 }
 0xff6   :  { %v2519_v0 = vadd.f32 1.0, %v5051_v52 }
 0xff7   :  { %v5053_v4 = vpop.eup %5052 }
 0xff8   :  { %5054 = vrcp.f32 %v2519_v0  ;;  %v2520_v19 = vadd.f32 1.0, %v5053_v4 }
0x1005   :  { %v5055_v11 = vpop.eup %5054 }
0x1006   :  { %v2526_v27 = vmul.f32 %v5055_v11, %v2525_v5  ;;  %v7248_v5 = vld [vmem:[#allocation20_spill] sm:$0xff] }
0x1008   :  { %v2527_v33 = vadd.f32 %v2526_v27, %v7245_v35 }
0x100a   :  { %5056 = vtanh.f32 %v2527_v33 }
0x100b   :  { %5058 = vrcp.f32 %v2520_v19 }
0x1017   :  { %v5057_v21 = vpop.eup %5056 }
0x1018   :  { %v2529_v60 = vsub.f32 %v6570_v34, %v5057_v21  ;;  %v5059_v20 = vpop.eup %5058  ;;  %v351_v34 = vadd.f32 %v7246_v25, %v5786_v43 }
0x101a   :  { %v2530_v49 = vmul.f32 %v5059_v20, %v2529_v60 }
0x101c   :  { %v6621_v37 = vadd.f32 %v5057_v21, %v2530_v49  ;;  %v7249_v49 = vld [vmem:[#allocation51_spill] sm:$0xff] }
0x101e   :  { %v2538_v17 = vpack.c.bf16 %v6621_v37, %v6621_v37 }
0x1020   :  { %2572 = vmatmul.mubr.bf16.vlgmr.msra.gmra.mxu0 %v2538_v17  ;;  %4670 = vmatmul.mubr.bf16.vlgmr.msra.gmra.mxu1 %v2538_v17 }
0x1021   :  { %2649 = vmatpush1.bf16.msra.mxu0 %v5296_v14  ;;  %4674 = vmatpush3.bf16.msra.mxu1 %v5594_v36 }
0x1022   :  { %2650 = vmatprep.subr.bf16.mxu0 %v5303_v16  ;;  %4675 = vmatprep.subr.bf16.mxu1 %v7174_v15 }
0x1023   :  { %2680 = vmatprep.mubr.bf16.mxu0 %v7175_v7  ;;  %4689 = vmatprep.mubr.msk.bf16.mxu1 %vm5232_vm2, %v7174_v15 }
0x1025   :  { %2651 = vmatpush1.bf16.msra.mxu0 %v5316_v22  ;;  %4676 = vmatpush3.bf16.msra.mxu1 %v5603_v38 }
0x1026   :  { %2652 = vmatprep.subr.bf16.mxu0 %v5324_v24  ;;  %4677 = vmatprep.subr.bf16.mxu1 %v7174_v15 }
0x1029   :  { %2653 = vmatpush1.bf16.msra.mxu0 %v5336_v30  ;;  %4678 = vmatpush3.bf16.msra.mxu1 %v5613_v44 }
0x102a   :  { %2654 = vmatprep.subr.bf16.mxu0 %v5344_v32  ;;  %4679 = vmatprep.subr.bf16.mxu1 %v7174_v15 }
0x102d   :  { %2655 = vmatpush1.bf16.msra.mxu0 %v5361_v39  ;;  %4680 = vmatpush3.bf16.msra.mxu1 %v5620_v47 }
0x102e   :  { %2656 = vmatprep.subr.bf16.mxu0 %v5367_v42  ;;  %4681 = vmatprep.subr.bf16.mxu1 %v7174_v15 }
0x1031   :  { %2657 = vmatpush1.bf16.msra.mxu0 %v5393_v51  ;;  %4682 = vmatpush3.bf16.msra.mxu1 %v5627_v50 }
0x1032   :  { %2658 = vmatprep.subr.bf16.mxu0 %v5404_v54  ;;  %4683 = vmatprep.subr.bf16.mxu1 %v7174_v15 }
0x1035   :  { %2659 = vmatpush1.bf16.msra.mxu0 %v5422_v62  ;;  %4684 = vmatpush3.bf16.msra.mxu1 %v5634_v55 }
0x1036   :  { %2660 = vmatprep.subr.bf16.mxu0 %v5430_v1  ;;  %4685 = vmatprep.subr.bf16.mxu1 %v7174_v15 }
0x1039   :  { %2661 = vmatpush1.bf16.msra.mxu0 %v5444_v8  ;;  %4686 = vmatpush3.bf16.msra.mxu1 %v5641_v58 }
0x103a   :  { %2662 = vmatprep.subr.bf16.mxu0 %v5452_v3  ;;  %4687 = vmatprep.subr.bf16.mxu1 %v7174_v15 }
0x103d   :  { %2663 = vmatpush1.bf16.msra.mxu0 %v5469_v18  ;;  %4688 = vmatpush3.bf16.msra.mxu1 %v5648_v61 }
0x103e   :  { %2757 = vmatprep.subr.bf16.mxu0 %v5289_v12  ;;  %4693 = vmatprep.subr.bf16.mxu1 %v7174_v15 }
0x10e0   :  { %v2573_v2 = vpop.f32.mrf.mxu0  ;;  %v2614_v57 = vpop.f32.mrf.mxu1 }
0x10e1   :  { %v2620_v45 = vadd.f32 %v2573_v2, %v351_v34  ;;  %v2634_v52 = vadd.f32 %v6616_v59, %v2614_v57 }
0x10e2   :  { %v2575_v31 = vpop.f32.mrf.mxu0  ;;  %v4671_v28 = vpop.f32.mrf.mxu1 }
0x10e3   :  { %v3975_v63 = vmul.f32 -1.442695, %v2620_v45  ;;  %v2621_v9 = vadd.f32 %v2575_v31, %v353_v23 }
0x10e4   :  { %v2577_v26 = vpop.f32.mrf.mxu0  ;;  %v2617_v53 = vpop.f32.mrf.mxu1 }
0x10e5   :  { %5060 = vpow2.f32 %v3975_v63  ;;  %v3976_v41 = vmul.f32 -1.442695, %v2621_v9  ;;  %v7250_v53 = vld [vmem:[#allocation52_spill] sm:$0xff] }
0x10e6   :  { %v2578_v56 = vpop.f32.mrf.mxu0  ;;  %v4672_v48 = vpop.f32.mrf.mxu1 }
0x10e7   :  { %5062 = vpow2.f32 %v3976_v41  ;;  %v359_v56 = vadd.f32 %v7250_v53, %v5798_v29 }
0x10f2   :  { %v5061_v10 = vpop.eup %5060 }
0x10f3   :  { %v2628_v40 = vadd.f32 1.0, %v5061_v10 }
0x10f4   :  { %v5063_v46 = vpop.eup %5062 }
0x10f5   :  { %5064 = vrcp.f32 %v2628_v40  ;;  %v2629_v27 = vadd.f32 1.0, %v5063_v46 }
0x1102   :  { %v5065_v0 = vpop.eup %5064 }
0x1103   :  { %v2635_v4 = vmul.f32 %v5065_v0, %v2634_v52  ;;  %v7251_v52 = vld [vmem:[#allocation19_spill] sm:$0xff] }
0x1105   :  { %v2636_v11 = vadd.f32 %v2635_v4, %v7248_v5 }
0x1107   :  { %5066 = vtanh.f32 %v2636_v11 }
0x1108   :  { %5068 = vrcp.f32 %v2629_v27 }
0x1114   :  { %v5067_v35 = vpop.eup %5066 }
0x1115   :  { %v2638_v33 = vsub.f32 %v6621_v37, %v5067_v35  ;;  %v5069_v19 = vpop.eup %5068  ;;  %v357_v37 = vadd.f32 %v7249_v49, %v5786_v43 }
0x1117   :  { %v2639_v21 = vmul.f32 %v5069_v19, %v2638_v33 }
0x1119   :  { %v6667_v60 = vadd.f32 %v5067_v35, %v2639_v21  ;;  %v7252_v21 = vld [vmem:[#allocation53_spill] sm:$0xff] }
0x111b   :  { %v2647_v20 = vpack.c.bf16 %v6667_v60, %v6667_v60 }
0x111d   :  { %2681 = vmatmul.mubr.bf16.vlgmr.msra.gmra.mxu0 %v2647_v20  ;;  %4690 = vmatmul.mubr.bf16.vlgmr.msra.gmra.mxu1 %v2647_v20 }
0x111e   :  { %2758 = vmatpush1.bf16.msra.mxu0 %v5296_v14  ;;  %4694 = vmatpush3.bf16.msra.mxu1 %v5594_v36 }
0x111f   :  { %2759 = vmatprep.subr.bf16.mxu0 %v5303_v16  ;;  %4695 = vmatprep.subr.bf16.mxu1 %v7174_v15 }
0x1120   :  { %2789 = vmatprep.mubr.bf16.mxu0 %v7175_v7  ;;  %4709 = vmatprep.mubr.msk.bf16.mxu1 %vm5232_vm2, %v7174_v15 }
0x1122   :  { %2760 = vmatpush1.bf16.msra.mxu0 %v5316_v22  ;;  %4696 = vmatpush3.bf16.msra.mxu1 %v5603_v38 }
0x1123   :  { %2761 = vmatprep.subr.bf16.mxu0 %v5324_v24  ;;  %4697 = vmatprep.subr.bf16.mxu1 %v7174_v15 }
0x1126   :  { %2762 = vmatpush1.bf16.msra.mxu0 %v5336_v30  ;;  %4698 = vmatpush3.bf16.msra.mxu1 %v5613_v44 }
0x1127   :  { %2763 = vmatprep.subr.bf16.mxu0 %v5344_v32  ;;  %4699 = vmatprep.subr.bf16.mxu1 %v7174_v15 }
0x112a   :  { %2764 = vmatpush1.bf16.msra.mxu0 %v5361_v39  ;;  %4700 = vmatpush3.bf16.msra.mxu1 %v5620_v47 }
0x112b   :  { %2765 = vmatprep.subr.bf16.mxu0 %v5367_v42  ;;  %4701 = vmatprep.subr.bf16.mxu1 %v7174_v15 }
0x112e   :  { %2766 = vmatpush1.bf16.msra.mxu0 %v5393_v51  ;;  %4702 = vmatpush3.bf16.msra.mxu1 %v5627_v50 }
0x112f   :  { %2767 = vmatprep.subr.bf16.mxu0 %v5404_v54  ;;  %4703 = vmatprep.subr.bf16.mxu1 %v7174_v15 }
0x1132   :  { %2768 = vmatpush1.bf16.msra.mxu0 %v5422_v62  ;;  %4704 = vmatpush3.bf16.msra.mxu1 %v5634_v55 }
0x1133   :  { %2769 = vmatprep.subr.bf16.mxu0 %v5430_v1  ;;  %4705 = vmatprep.subr.bf16.mxu1 %v7174_v15 }
0x1136   :  { %2770 = vmatpush1.bf16.msra.mxu0 %v5444_v8  ;;  %4706 = vmatpush3.bf16.msra.mxu1 %v5641_v58 }
0x1137   :  { %2771 = vmatprep.subr.bf16.mxu0 %v5452_v3  ;;  %4707 = vmatprep.subr.bf16.mxu1 %v7174_v15 }
0x113a   :  { %2772 = vmatpush1.bf16.msra.mxu0 %v5469_v18  ;;  %4708 = vmatpush3.bf16.msra.mxu1 %v5648_v61 }
0x113b   :  { %2866 = vmatprep.subr.bf16.mxu0 %v5289_v12  ;;  %4713 = vmatprep.subr.bf16.mxu1 %v7174_v15 }
0x11dd   :  { %v2682_v17 = vpop.f32.mrf.mxu0  ;;  %v2723_v25 = vpop.f32.mrf.mxu1 }
0x11de   :  { %v2729_v34 = vadd.f32 %v2682_v17, %v357_v37  ;;  %v2743_v10 = vadd.f32 %v6616_v59, %v2723_v25 }
0x11df   :  { %v2684_v2 = vpop.f32.mrf.mxu0  ;;  %v4691_v57 = vpop.f32.mrf.mxu1 }
0x11e0   :  { %v3977_v45 = vmul.f32 -1.442695, %v2729_v34  ;;  %v2730_v48 = vadd.f32 %v2684_v2, %v359_v56 }
0x11e1   :  { %v2686_v31 = vpop.f32.mrf.mxu0  ;;  %v2726_v28 = vpop.f32.mrf.mxu1 }
0x11e2   :  { %5070 = vpow2.f32 %v3977_v45  ;;  %v3978_v13 = vmul.f32 -1.442695, %v2730_v48  ;;  %v7253_v28 = vld [vmem:[#allocation54_spill] sm:$0xff] }
0x11e3   :  { %v2687_v63 = vpop.f32.mrf.mxu0  ;;  %v4692_v26 = vpop.f32.mrf.mxu1 }
0x11e4   :  { %5072 = vpow2.f32 %v3978_v13  ;;  %v365_v63 = vadd.f32 %v7253_v28, %v5798_v29 }
0x11ef   :  { %v5071_v23 = vpop.eup %5070 }
0x11f0   :  { %v2737_v9 = vadd.f32 1.0, %v5071_v23 }
0x11f1   :  { %v5073_v41 = vpop.eup %5072 }
0x11f2   :  { %5074 = vrcp.f32 %v2737_v9  ;;  %v2738_v4 = vadd.f32 1.0, %v5073_v41  ;;  %v7254_v41 = vld [vmem:[#allocation22_spill] sm:$0xff] }
0x11ff   :  { %v5075_v40 = vpop.eup %5074 }
0x1200   :  { %v2744_v46 = vmul.f32 %v5075_v40, %v2743_v10  ;;  %v578_v10 = vadd.f32 %v7254_v41, %v5715_v6 }
0x1202   :  { %v2745_v0 = vadd.f32 %v2744_v46, %v7251_v52 }
0x1204   :  { %5076 = vtanh.f32 %v2745_v0 }
0x1205   :  { %5078 = vrcp.f32 %v2738_v4 }
0x1211   :  { %v5077_v5 = vpop.eup %5076 }
0x1212   :  { %v2747_v11 = vsub.f32 %v6667_v60, %v5077_v5  ;;  %v5079_v27 = vpop.eup %5078  ;;  %v363_v60 = vadd.f32 %v7252_v21, %v5786_v43 }
0x1214   :  { %v2748_v35 = vmul.f32 %v5079_v27, %v2747_v11 }
0x1216   :  { %v6713_v33 = vadd.f32 %v5077_v5, %v2748_v35 }
0x1218   :  { %v2756_v19 = vpack.c.bf16 %v6713_v33, %v6713_v33 }
0x121a   :  { %2790 = vmatmul.mubr.bf16.vlgmr.msra.gmra.mxu0 %v2756_v19  ;;  %4710 = vmatmul.mubr.bf16.vlgmr.msra.gmra.mxu1 %v2756_v19 }
0x121b   :  { %2867 = vmatpush1.bf16.msra.mxu0 %v5296_v14  ;;  %4714 = vmatpush3.bf16.msra.mxu1 %v5594_v36 }
0x121c   :  { %2868 = vmatprep.subr.bf16.mxu0 %v5303_v16  ;;  %4715 = vmatprep.subr.bf16.mxu1 %v7174_v15 }
0x121d   :  { %2898 = vmatprep.mubr.bf16.mxu0 %v7175_v7  ;;  %4729 = vmatprep.mubr.msk.bf16.mxu1 %vm5232_vm2, %v7174_v15 }
0x121f   :  { %2869 = vmatpush1.bf16.msra.mxu0 %v5316_v22  ;;  %4716 = vmatpush3.bf16.msra.mxu1 %v5603_v38 }
0x1220   :  { %2870 = vmatprep.subr.bf16.mxu0 %v5324_v24  ;;  %4717 = vmatprep.subr.bf16.mxu1 %v7174_v15 }
0x1223   :  { %2871 = vmatpush1.bf16.msra.mxu0 %v5336_v30  ;;  %4718 = vmatpush3.bf16.msra.mxu1 %v5613_v44 }
0x1224   :  { %2872 = vmatprep.subr.bf16.mxu0 %v5344_v32  ;;  %4719 = vmatprep.subr.bf16.mxu1 %v7174_v15 }
0x1227   :  { %2873 = vmatpush1.bf16.msra.mxu0 %v5361_v39  ;;  %4720 = vmatpush3.bf16.msra.mxu1 %v5620_v47 }
0x1228   :  { %2874 = vmatprep.subr.bf16.mxu0 %v5367_v42  ;;  %4721 = vmatprep.subr.bf16.mxu1 %v7174_v15 }
0x122b   :  { %2875 = vmatpush1.bf16.msra.mxu0 %v5393_v51  ;;  %4722 = vmatpush3.bf16.msra.mxu1 %v5627_v50 }
0x122c   :  { %2876 = vmatprep.subr.bf16.mxu0 %v5404_v54  ;;  %4723 = vmatprep.subr.bf16.mxu1 %v7174_v15 }
0x122f   :  { %2877 = vmatpush1.bf16.msra.mxu0 %v5422_v62  ;;  %4724 = vmatpush3.bf16.msra.mxu1 %v5634_v55 }
0x1230   :  { %2878 = vmatprep.subr.bf16.mxu0 %v5430_v1  ;;  %4725 = vmatprep.subr.bf16.mxu1 %v7174_v15 }
0x1233   :  { %2879 = vmatpush1.bf16.msra.mxu0 %v5444_v8  ;;  %4726 = vmatpush3.bf16.msra.mxu1 %v5641_v58 }
0x1234   :  { %2880 = vmatprep.subr.bf16.mxu0 %v5452_v3  ;;  %4727 = vmatprep.subr.bf16.mxu1 %v7174_v15 }
0x1237   :  { %2881 = vmatpush1.bf16.msra.mxu0 %v5469_v18  ;;  %4728 = vmatpush3.bf16.msra.mxu1 %v5648_v61 }
0x1238   :  { %2975 = vmatprep.subr.bf16.mxu0 %v5289_v12  ;;  %4733 = vmatprep.subr.bf16.mxu1 %v7174_v15 }
0x12da   :  { %v2791_v20 = vpop.f32.mrf.mxu0  ;;  %v2832_v49 = vpop.f32.mrf.mxu1 }
0x12db   :  { %v2838_v37 = vadd.f32 %v2791_v20, %v363_v60  ;;  %v2852_v23 = vadd.f32 %v6616_v59, %v2832_v49 }
0x12dc   :  { %v2793_v17 = vpop.f32.mrf.mxu0  ;;  %v4711_v25 = vpop.f32.mrf.mxu1 }
0x12dd   :  { %v3979_v34 = vmul.f32 -1.442695, %v2838_v37  ;;  %v2839_v26 = vadd.f32 %v2793_v17, %v365_v63 }
0x12de   :  { %v2795_v2 = vpop.f32.mrf.mxu0  ;;  %v2835_v57 = vpop.f32.mrf.mxu1 }
0x12df   :  { %5080 = vpow2.f32 %v3979_v34  ;;  %v3980_v53 = vmul.f32 -1.442695, %v2839_v26 }
0x12e0   :  { %v2796_v45 = vpop.f32.mrf.mxu0  ;;  %v4712_v31 = vpop.f32.mrf.mxu1 }
0x12e1   :  { %5082 = vpow2.f32 %v3980_v53  ;;  %v7256_v45 = vld [vmem:[#allocation56_spill] sm:$0xff] }
0x12e2   :  { %v371_v31 = vadd.f32 %v7256_v45, %v5798_v29 }
0x12ec   :  { %v5081_v56 = vpop.eup %5080 }
0x12ed   :  { %v2846_v48 = vadd.f32 1.0, %v5081_v56 }
0x12ee   :  { %v5083_v13 = vpop.eup %5082 }
0x12ef   :  { %5084 = vrcp.f32 %v2846_v48  ;;  %v2847_v52 = vadd.f32 1.0, %v5083_v13 }
0x12fc   :  { %v5085_v9 = vpop.eup %5084 }
0x12fd   :  { %v2853_v40 = vmul.f32 %v5085_v9, %v2852_v23  ;;  %v7257_v9 = vld [vmem:[#allocation21_spill] sm:$0xff] }
0x12ff   :  { %v2854_v46 = vadd.f32 %v2853_v40, %v578_v10 }
0x1301   :  { %5086 = vtanh.f32 %v2854_v46 }
0x1302   :  { %5088 = vrcp.f32 %v2847_v52 }
0x130e   :  { %v5087_v0 = vpop.eup %5086 }
0x130f   :  { %v2856_v4 = vsub.f32 %v6713_v33, %v5087_v0  ;;  %v5089_v5 = vpop.eup %5088  ;;  %v7255_v33 = vld [vmem:[#allocation55_spill] sm:$0xff] }
0x1310   :  { %v369_v19 = vadd.f32 %v7255_v33, %v5786_v43 }
0x1311   :  { %v2857_v11 = vmul.f32 %v5089_v5, %v2856_v4 }
0x1313   :  { %v6760_v27 = vadd.f32 %v5087_v0, %v2857_v11  ;;  %v7258_v11 = vld [vmem:[#allocation57_spill] sm:$0xff] }
0x1315   :  { %v2865_v35 = vpack.c.bf16 %v6760_v27, %v6760_v27 }
0x1317   :  { %2899 = vmatmul.mubr.bf16.vlgmr.msra.gmra.mxu0 %v2865_v35  ;;  %4730 = vmatmul.mubr.bf16.vlgmr.msra.gmra.mxu1 %v2865_v35 }
0x1318   :  { %2976 = vmatpush1.bf16.msra.mxu0 %v5296_v14  ;;  %4734 = vmatpush3.bf16.msra.mxu1 %v5594_v36 }
0x1319   :  { %2977 = vmatprep.subr.bf16.mxu0 %v5303_v16  ;;  %4735 = vmatprep.subr.bf16.mxu1 %v7174_v15 }
0x131a   :  { %3007 = vmatprep.mubr.bf16.mxu0 %v7175_v7  ;;  %4749 = vmatprep.mubr.msk.bf16.mxu1 %vm5232_vm2, %v7174_v15 }
0x131c   :  { %2978 = vmatpush1.bf16.msra.mxu0 %v5316_v22  ;;  %4736 = vmatpush3.bf16.msra.mxu1 %v5603_v38 }
0x131d   :  { %2979 = vmatprep.subr.bf16.mxu0 %v5324_v24  ;;  %4737 = vmatprep.subr.bf16.mxu1 %v7174_v15 }
0x1320   :  { %2980 = vmatpush1.bf16.msra.mxu0 %v5336_v30  ;;  %4738 = vmatpush3.bf16.msra.mxu1 %v5613_v44 }
0x1321   :  { %2981 = vmatprep.subr.bf16.mxu0 %v5344_v32  ;;  %4739 = vmatprep.subr.bf16.mxu1 %v7174_v15 }
0x1324   :  { %2982 = vmatpush1.bf16.msra.mxu0 %v5361_v39  ;;  %4740 = vmatpush3.bf16.msra.mxu1 %v5620_v47 }
0x1325   :  { %2983 = vmatprep.subr.bf16.mxu0 %v5367_v42  ;;  %4741 = vmatprep.subr.bf16.mxu1 %v7174_v15 }
0x1328   :  { %2984 = vmatpush1.bf16.msra.mxu0 %v5393_v51  ;;  %4742 = vmatpush3.bf16.msra.mxu1 %v5627_v50 }
0x1329   :  { %2985 = vmatprep.subr.bf16.mxu0 %v5404_v54  ;;  %4743 = vmatprep.subr.bf16.mxu1 %v7174_v15 }
0x132c   :  { %2986 = vmatpush1.bf16.msra.mxu0 %v5422_v62  ;;  %4744 = vmatpush3.bf16.msra.mxu1 %v5634_v55 }
0x132d   :  { %2987 = vmatprep.subr.bf16.mxu0 %v5430_v1  ;;  %4745 = vmatprep.subr.bf16.mxu1 %v7174_v15 }
0x1330   :  { %2988 = vmatpush1.bf16.msra.mxu0 %v5444_v8  ;;  %4746 = vmatpush3.bf16.msra.mxu1 %v5641_v58 }
0x1331   :  { %2989 = vmatprep.subr.bf16.mxu0 %v5452_v3  ;;  %4747 = vmatprep.subr.bf16.mxu1 %v7174_v15 }
0x1334   :  { %2990 = vmatpush1.bf16.msra.mxu0 %v5469_v18  ;;  %4748 = vmatpush3.bf16.msra.mxu1 %v5648_v61 }
0x1335   :  { %3084 = vmatprep.subr.bf16.mxu0 %v5289_v12  ;;  %4753 = vmatprep.subr.bf16.mxu1 %v7174_v15 }
0x13d7   :  { %v2900_v21 = vpop.f32.mrf.mxu0  ;;  %v2941_v60 = vpop.f32.mrf.mxu1 }
0x13d8   :  { %v2947_v20 = vadd.f32 %v2900_v21, %v369_v19  ;;  %v2961_v48 = vadd.f32 %v6616_v59, %v2941_v60 }
0x13d9   :  { %v2902_v49 = vpop.f32.mrf.mxu0  ;;  %v4731_v37 = vpop.f32.mrf.mxu1 }
0x13da   :  { %v3981_v17 = vmul.f32 -1.442695, %v2947_v20  ;;  %v2948_v28 = vadd.f32 %v2902_v49, %v371_v31 }
0x13db   :  { %v2904_v25 = vpop.f32.mrf.mxu0  ;;  %v2944_v34 = vpop.f32.mrf.mxu1 }
0x13dc   :  { %5090 = vpow2.f32 %v3981_v17  ;;  %v3982_v63 = vmul.f32 -1.442695, %v2948_v28  ;;  %v7259_v34 = vld [vmem:[#allocation58_spill] sm:$0xff] }
0x13dd   :  { %v2905_v2 = vpop.f32.mrf.mxu0  ;;  %v4732_v57 = vpop.f32.mrf.mxu1 }
0x13de   :  { %5092 = vpow2.f32 %v3982_v63  ;;  %v377_v2 = vadd.f32 %v7259_v34, %v5798_v29 }
0x13e9   :  { %v5091_v26 = vpop.eup %5090 }
0x13ea   :  { %v2955_v53 = vadd.f32 1.0, %v5091_v26 }
0x13eb   :  { %v5093_v56 = vpop.eup %5092 }
0x13ec   :  { %5094 = vrcp.f32 %v2955_v53  ;;  %v2956_v10 = vadd.f32 1.0, %v5093_v56 }
0x13f9   :  { %v5095_v13 = vpop.eup %5094 }
0x13fa   :  { %v2962_v23 = vmul.f32 %v5095_v13, %v2961_v48  ;;  %v7260_v48 = vld [vmem:[#allocation24_spill] sm:$0xff] }
0x13fc   :  { %v2963_v41 = vadd.f32 %v2962_v23, %v7257_v9 }
0x13fe   :  { %5096 = vtanh.f32 %v2963_v41 }
0x13ff   :  { %5098 = vrcp.f32 %v2956_v10 }
0x140b   :  { %v5097_v40 = vpop.eup %5096 }
0x140c   :  { %v2965_v46 = vsub.f32 %v6760_v27, %v5097_v40  ;;  %v5099_v52 = vpop.eup %5098  ;;  %v375_v27 = vadd.f32 %v7258_v11, %v5786_v43 }
0x140e   :  { %v2966_v0 = vmul.f32 %v5099_v52, %v2965_v46 }
0x1410   :  { %v6806_v4 = vadd.f32 %v5097_v40, %v2966_v0  ;;  %v7261_v0 = vld [vmem:[#allocation59_spill] sm:$0xff] }
0x1412   :  { %v2974_v5 = vpack.c.bf16 %v6806_v4, %v6806_v4 }
0x1414   :  { %3008 = vmatmul.mubr.bf16.vlgmr.msra.gmra.mxu0 %v2974_v5  ;;  %4750 = vmatmul.mubr.bf16.vlgmr.msra.gmra.mxu1 %v2974_v5 }
0x1415   :  { %3085 = vmatpush1.bf16.msra.mxu0 %v5296_v14  ;;  %4754 = vmatpush3.bf16.msra.mxu1 %v5594_v36 }
0x1416   :  { %3086 = vmatprep.subr.bf16.mxu0 %v5303_v16  ;;  %4755 = vmatprep.subr.bf16.mxu1 %v7174_v15 }
0x1417   :  { %3116 = vmatprep.mubr.bf16.mxu0 %v7175_v7  ;;  %4769 = vmatprep.mubr.msk.bf16.mxu1 %vm5232_vm2, %v7174_v15 }
0x1419   :  { %3087 = vmatpush1.bf16.msra.mxu0 %v5316_v22  ;;  %4756 = vmatpush3.bf16.msra.mxu1 %v5603_v38 }
0x141a   :  { %3088 = vmatprep.subr.bf16.mxu0 %v5324_v24  ;;  %4757 = vmatprep.subr.bf16.mxu1 %v7174_v15 }
0x141d   :  { %3089 = vmatpush1.bf16.msra.mxu0 %v5336_v30  ;;  %4758 = vmatpush3.bf16.msra.mxu1 %v5613_v44 }
0x141e   :  { %3090 = vmatprep.subr.bf16.mxu0 %v5344_v32  ;;  %4759 = vmatprep.subr.bf16.mxu1 %v7174_v15 }
0x1421   :  { %3091 = vmatpush1.bf16.msra.mxu0 %v5361_v39  ;;  %4760 = vmatpush3.bf16.msra.mxu1 %v5620_v47 }
0x1422   :  { %3092 = vmatprep.subr.bf16.mxu0 %v5367_v42  ;;  %4761 = vmatprep.subr.bf16.mxu1 %v7174_v15 }
0x1425   :  { %3093 = vmatpush1.bf16.msra.mxu0 %v5393_v51  ;;  %4762 = vmatpush3.bf16.msra.mxu1 %v5627_v50 }
0x1426   :  { %3094 = vmatprep.subr.bf16.mxu0 %v5404_v54  ;;  %4763 = vmatprep.subr.bf16.mxu1 %v7174_v15 }
0x1429   :  { %3095 = vmatpush1.bf16.msra.mxu0 %v5422_v62  ;;  %4764 = vmatpush3.bf16.msra.mxu1 %v5634_v55 }
0x142a   :  { %3096 = vmatprep.subr.bf16.mxu0 %v5430_v1  ;;  %4765 = vmatprep.subr.bf16.mxu1 %v7174_v15 }
0x142d   :  { %3097 = vmatpush1.bf16.msra.mxu0 %v5444_v8  ;;  %4766 = vmatpush3.bf16.msra.mxu1 %v5641_v58 }
0x142e   :  { %3098 = vmatprep.subr.bf16.mxu0 %v5452_v3  ;;  %4767 = vmatprep.subr.bf16.mxu1 %v7174_v15 }
0x1431   :  { %3099 = vmatpush1.bf16.msra.mxu0 %v5469_v18  ;;  %4768 = vmatpush3.bf16.msra.mxu1 %v5648_v61 }
0x1432   :  { %3193 = vmatprep.subr.bf16.mxu0 %v5289_v12  ;;  %4773 = vmatprep.subr.bf16.mxu1 %v7174_v15 }
0x14d4   :  { %v3009_v35 = vpop.f32.mrf.mxu0  ;;  %v3050_v33 = vpop.f32.mrf.mxu1 }
0x14d5   :  { %v3056_v19 = vadd.f32 %v3009_v35, %v375_v27  ;;  %v3070_v26 = vadd.f32 %v6616_v59, %v3050_v33 }
0x14d6   :  { %v3011_v21 = vpop.f32.mrf.mxu0  ;;  %v4751_v60 = vpop.f32.mrf.mxu1 }
0x14d7   :  { %v3983_v20 = vmul.f32 -1.442695, %v3056_v19  ;;  %v3057_v57 = vadd.f32 %v3011_v21, %v377_v2 }
0x14d8   :  { %v3013_v49 = vpop.f32.mrf.mxu0  ;;  %v3053_v37 = vpop.f32.mrf.mxu1 }
0x14d9   :  { %5100 = vpow2.f32 %v3983_v20  ;;  %v3984_v45 = vmul.f32 -1.442695, %v3057_v57  ;;  %v7262_v37 = vld [vmem:[#allocation60_spill] sm:$0xff] }
0x14da   :  { %v3014_v17 = vpop.f32.mrf.mxu0  ;;  %v4752_v25 = vpop.f32.mrf.mxu1 }
0x14db   :  { %5102 = vpow2.f32 %v3984_v45  ;;  %v383_v17 = vadd.f32 %v7262_v37, %v5798_v29 }
0x14e6   :  { %v5101_v31 = vpop.eup %5100 }
0x14e7   :  { %v3064_v28 = vadd.f32 1.0, %v5101_v31 }
0x14e8   :  { %v5103_v63 = vpop.eup %5102 }
0x14e9   :  { %5104 = vrcp.f32 %v3064_v28  ;;  %v3065_v23 = vadd.f32 1.0, %v5103_v63 }
0x14f6   :  { %v5105_v53 = vpop.eup %5104 }
0x14f7   :  { %v3071_v56 = vmul.f32 %v5105_v53, %v3070_v26  ;;  %v7263_v26 = vld [vmem:[#allocation23_spill] sm:$0xff] }
0x14f9   :  { %v3072_v13 = vadd.f32 %v3071_v56, %v7260_v48 }
0x14fb   :  { %5106 = vtanh.f32 %v3072_v13 }
0x14fc   :  { %5108 = vrcp.f32 %v3065_v23 }
0x1508   :  { %v5107_v9 = vpop.eup %5106 }
0x1509   :  { %v3074_v41 = vsub.f32 %v6806_v4, %v5107_v9  ;;  %v5109_v10 = vpop.eup %5108  ;;  %v381_v4 = vadd.f32 %v7261_v0, %v5786_v43 }
0x150b   :  { %v3075_v40 = vmul.f32 %v5109_v10, %v3074_v41 }
0x150d   :  { %v6852_v46 = vadd.f32 %v5107_v9, %v3075_v40  ;;  %v7264_v40 = vld [vmem:[#allocation61_spill] sm:$0xff] }
0x150f   :  { %v3083_v52 = vpack.c.bf16 %v6852_v46, %v6852_v46 }
0x1511   :  { %3117 = vmatmul.mubr.bf16.vlgmr.msra.gmra.mxu0 %v3083_v52  ;;  %4770 = vmatmul.mubr.bf16.vlgmr.msra.gmra.mxu1 %v3083_v52 }
0x1512   :  { %3194 = vmatpush1.bf16.msra.mxu0 %v5296_v14  ;;  %4774 = vmatpush3.bf16.msra.mxu1 %v5594_v36 }
0x1513   :  { %3195 = vmatprep.subr.bf16.mxu0 %v5303_v16  ;;  %4775 = vmatprep.subr.bf16.mxu1 %v7174_v15 }
0x1514   :  { %3225 = vmatprep.mubr.bf16.mxu0 %v7175_v7  ;;  %4789 = vmatprep.mubr.msk.bf16.mxu1 %vm5232_vm2, %v7174_v15 }
0x1516   :  { %3196 = vmatpush1.bf16.msra.mxu0 %v5316_v22  ;;  %4776 = vmatpush3.bf16.msra.mxu1 %v5603_v38 }
0x1517   :  { %3197 = vmatprep.subr.bf16.mxu0 %v5324_v24  ;;  %4777 = vmatprep.subr.bf16.mxu1 %v7174_v15 }
0x151a   :  { %3198 = vmatpush1.bf16.msra.mxu0 %v5336_v30  ;;  %4778 = vmatpush3.bf16.msra.mxu1 %v5613_v44 }
0x151b   :  { %3199 = vmatprep.subr.bf16.mxu0 %v5344_v32  ;;  %4779 = vmatprep.subr.bf16.mxu1 %v7174_v15 }
0x151e   :  { %3200 = vmatpush1.bf16.msra.mxu0 %v5361_v39  ;;  %4780 = vmatpush3.bf16.msra.mxu1 %v5620_v47 }
0x151f   :  { %3201 = vmatprep.subr.bf16.mxu0 %v5367_v42  ;;  %4781 = vmatprep.subr.bf16.mxu1 %v7174_v15 }
0x1522   :  { %3202 = vmatpush1.bf16.msra.mxu0 %v5393_v51  ;;  %4782 = vmatpush3.bf16.msra.mxu1 %v5627_v50 }
0x1523   :  { %3203 = vmatprep.subr.bf16.mxu0 %v5404_v54  ;;  %4783 = vmatprep.subr.bf16.mxu1 %v7174_v15 }
0x1526   :  { %3204 = vmatpush1.bf16.msra.mxu0 %v5422_v62  ;;  %4784 = vmatpush3.bf16.msra.mxu1 %v5634_v55 }
0x1527   :  { %3205 = vmatprep.subr.bf16.mxu0 %v5430_v1  ;;  %4785 = vmatprep.subr.bf16.mxu1 %v7174_v15 }
0x152a   :  { %3206 = vmatpush1.bf16.msra.mxu0 %v5444_v8  ;;  %4786 = vmatpush3.bf16.msra.mxu1 %v5641_v58 }
0x152b   :  { %3207 = vmatprep.subr.bf16.mxu0 %v5452_v3  ;;  %4787 = vmatprep.subr.bf16.mxu1 %v7174_v15 }
0x152e   :  { %3208 = vmatpush1.bf16.msra.mxu0 %v5469_v18  ;;  %4788 = vmatpush3.bf16.msra.mxu1 %v5648_v61 }
0x152f   :  { %3302 = vmatprep.subr.bf16.mxu0 %v5289_v12  ;;  %4793 = vmatprep.subr.bf16.mxu1 %v7174_v15 }
0x15d1   :  { %v3118_v5 = vpop.f32.mrf.mxu0  ;;  %v3159_v11 = vpop.f32.mrf.mxu1 }
0x15d2   :  { %v3165_v27 = vadd.f32 %v3118_v5, %v381_v4  ;;  %v3179_v31 = vadd.f32 %v6616_v59, %v3159_v11 }
0x15d3   :  { %v3120_v35 = vpop.f32.mrf.mxu0  ;;  %v4771_v33 = vpop.f32.mrf.mxu1 }
0x15d4   :  { %v3985_v19 = vmul.f32 -1.442695, %v3165_v27  ;;  %v3166_v25 = vadd.f32 %v3120_v35, %v383_v17 }
0x15d5   :  { %v3122_v21 = vpop.f32.mrf.mxu0  ;;  %v3162_v60 = vpop.f32.mrf.mxu1 }
0x15d6   :  { %5110 = vpow2.f32 %v3985_v19  ;;  %v3986_v34 = vmul.f32 -1.442695, %v3166_v25  ;;  %v7265_v60 = vld [vmem:[#allocation62_spill] sm:$0xff] }
0x15d7   :  { %v3123_v20 = vpop.f32.mrf.mxu0  ;;  %v4772_v49 = vpop.f32.mrf.mxu1 }
0x15d8   :  { %5112 = vpow2.f32 %v3986_v34  ;;  %v389_v20 = vadd.f32 %v7265_v60, %v5798_v29 }
0x15e3   :  { %v5111_v2 = vpop.eup %5110 }
0x15e4   :  { %v3173_v57 = vadd.f32 1.0, %v5111_v2 }
0x15e5   :  { %v5113_v45 = vpop.eup %5112 }
0x15e6   :  { %5114 = vrcp.f32 %v3173_v57  ;;  %v3174_v56 = vadd.f32 1.0, %v5113_v45  ;;  %v7266_v45 = vld [vmem:[#allocation26_spill] sm:$0xff] }
0x15f3   :  { %v5115_v28 = vpop.eup %5114 }
0x15f4   :  { %v3180_v63 = vmul.f32 %v5115_v28, %v3179_v31  ;;  %v598_v31 = vadd.f32 %v7266_v45, %v5715_v6 }
0x15f6   :  { %v3181_v53 = vadd.f32 %v3180_v63, %v7263_v26 }
0x15f8   :  { %5116 = vtanh.f32 %v3181_v53 }
0x15f9   :  { %5118 = vrcp.f32 %v3174_v56 }
0x1605   :  { %v5117_v48 = vpop.eup %5116 }
0x1606   :  { %v3183_v13 = vsub.f32 %v6852_v46, %v5117_v48  ;;  %v5119_v23 = vpop.eup %5118  ;;  %v387_v46 = vadd.f32 %v7264_v40, %v5786_v43 }
0x1608   :  { %v3184_v9 = vmul.f32 %v5119_v23, %v3183_v13 }
0x160a   :  { %v6898_v41 = vadd.f32 %v5117_v48, %v3184_v9 }
0x160c   :  { %v3192_v10 = vpack.c.bf16 %v6898_v41, %v6898_v41 }
0x160e   :  { %3226 = vmatmul.mubr.bf16.vlgmr.msra.gmra.mxu0 %v3192_v10  ;;  %4790 = vmatmul.mubr.bf16.vlgmr.msra.gmra.mxu1 %v3192_v10 }
0x160f   :  { %3303 = vmatpush1.bf16.msra.mxu0 %v5296_v14  ;;  %4794 = vmatpush3.bf16.msra.mxu1 %v5594_v36 }
0x1610   :  { %3304 = vmatprep.subr.bf16.mxu0 %v5303_v16  ;;  %4795 = vmatprep.subr.bf16.mxu1 %v7174_v15 }
0x1611   :  { %3334 = vmatprep.mubr.bf16.mxu0 %v7175_v7  ;;  %4809 = vmatprep.mubr.msk.bf16.mxu1 %vm5232_vm2, %v7174_v15 }
0x1613   :  { %3305 = vmatpush1.bf16.msra.mxu0 %v5316_v22  ;;  %4796 = vmatpush3.bf16.msra.mxu1 %v5603_v38 }
0x1614   :  { %3306 = vmatprep.subr.bf16.mxu0 %v5324_v24  ;;  %4797 = vmatprep.subr.bf16.mxu1 %v7174_v15 }
0x1617   :  { %3307 = vmatpush1.bf16.msra.mxu0 %v5336_v30  ;;  %4798 = vmatpush3.bf16.msra.mxu1 %v5613_v44 }
0x1618   :  { %3308 = vmatprep.subr.bf16.mxu0 %v5344_v32  ;;  %4799 = vmatprep.subr.bf16.mxu1 %v7174_v15 }
0x161b   :  { %3309 = vmatpush1.bf16.msra.mxu0 %v5361_v39  ;;  %4800 = vmatpush3.bf16.msra.mxu1 %v5620_v47 }
0x161c   :  { %3310 = vmatprep.subr.bf16.mxu0 %v5367_v42  ;;  %4801 = vmatprep.subr.bf16.mxu1 %v7174_v15 }
0x161f   :  { %3311 = vmatpush1.bf16.msra.mxu0 %v5393_v51  ;;  %4802 = vmatpush3.bf16.msra.mxu1 %v5627_v50 }
0x1620   :  { %3312 = vmatprep.subr.bf16.mxu0 %v5404_v54  ;;  %4803 = vmatprep.subr.bf16.mxu1 %v7174_v15 }
0x1623   :  { %3313 = vmatpush1.bf16.msra.mxu0 %v5422_v62  ;;  %4804 = vmatpush3.bf16.msra.mxu1 %v5634_v55 }
0x1624   :  { %3314 = vmatprep.subr.bf16.mxu0 %v5430_v1  ;;  %4805 = vmatprep.subr.bf16.mxu1 %v7174_v15 }
0x1627   :  { %3315 = vmatpush1.bf16.msra.mxu0 %v5444_v8  ;;  %4806 = vmatpush3.bf16.msra.mxu1 %v5641_v58 }
0x1628   :  { %3316 = vmatprep.subr.bf16.mxu0 %v5452_v3  ;;  %4807 = vmatprep.subr.bf16.mxu1 %v7174_v15 }
0x162b   :  { %3317 = vmatpush1.bf16.msra.mxu0 %v5469_v18  ;;  %4808 = vmatpush3.bf16.msra.mxu1 %v5648_v61 }
0x162c   :  { %3411 = vmatprep.subr.bf16.mxu0 %v5289_v12  ;;  %4813 = vmatprep.subr.bf16.mxu1 %v7174_v15 }
0x16ce   :  { %v3227_v52 = vpop.f32.mrf.mxu0  ;;  %v3268_v0 = vpop.f32.mrf.mxu1 }
0x16cf   :  { %v3274_v4 = vadd.f32 %v3227_v52, %v387_v46  ;;  %v3288_v2 = vadd.f32 %v6616_v59, %v3268_v0  ;;  %v7267_v59 = vld [vmem:[#allocation63_spill] sm:$0xff] }
0x16d0   :  { %v3229_v5 = vpop.f32.mrf.mxu0  ;;  %v4791_v11 = vpop.f32.mrf.mxu1 }
0x16d1   :  { %v3987_v27 = vmul.f32 -1.442695, %v3274_v4  ;;  %v3275_v49 = vadd.f32 %v3229_v5, %v389_v20 }
0x16d2   :  { %v3231_v35 = vpop.f32.mrf.mxu0  ;;  %v3271_v33 = vpop.f32.mrf.mxu1 }
0x16d3   :  { %5120 = vpow2.f32 %v3987_v27  ;;  %v3988_v37 = vmul.f32 -1.442695, %v3275_v49  ;;  %v7268_v33 = vld [vmem:[#allocation64_spill] sm:$0xff] }
0x16d4   :  { %v3232_v19 = vpop.f32.mrf.mxu0  ;;  %v4792_v21 = vpop.f32.mrf.mxu1 }
0x16d5   :  { %5122 = vpow2.f32 %v3988_v37  ;;  %v395_v19 = vadd.f32 %v7268_v33, %v5798_v29 }
0x16e0   :  { %v5121_v17 = vpop.eup %5120 }
0x16e1   :  { %v3282_v25 = vadd.f32 1.0, %v5121_v17  ;;  %v6991_v17 = vld [vmem:[%s7146_s4] ss:$0 sm:$0xff]  ;;  %s5233_s4 = smov [#allocation6]  }
0x16e2   :  { %v5123_v34 = vpop.eup %5122  ;;  %s3847_s7 = sshll.u32 %s5233_s4, 4  ;;  %s3848_s7 = int_to_ptr.vmem [resolvable:$true] %s3847_s7 }
0x16e3   :  { %5124 = vrcp.f32 %v3282_v25  ;;  %v3283_v26 = vadd.f32 1.0, %v5123_v34  ;;  %s5203_s8 = scalar_lea.vmem %s3848_s7, 128  ;;  %p5208_p6 = scmp.lt.s32.totalorder %s3848_s7, %s3848_s7 }
0x16e4   :  { %p5204_p5 = scmp.ne.s32.totalorder %s3848_s7, %s5203_s8  ;;  %p5209_p7 = scmp.lt.s32.totalorder %s5203_s8, %s5203_s8 }
0x16e6   :  { %p5210_p8 = por %p5209_p7, %p5208_p6 }
0x16e8   :  { %p5211_p9 = pnand %p5210_p8, %p5204_p5 }
0x16f0   :  { %v5125_v57 = vpop.eup %5124 }
0x16f1   :  { %v3289_v28 = vmul.f32 %v5125_v57, %v3288_v2  ;;  %v7269_v57 = vld [vmem:[#allocation25_spill] sm:$0xff] }
0x16f3   :  { %v3290_v63 = vadd.f32 %v3289_v28, %v598_v31 }
0x16f5   :  { %5126 = vtanh.f32 %v3290_v63 }
0x16f6   :  { %5128 = vrcp.f32 %v3283_v26 }
0x1702   :  { %v5127_v53 = vpop.eup %5126 }
0x1703   :  { %v3292_v56 = vsub.f32 %v6898_v41, %v5127_v53  ;;  %v5129_v48 = vpop.eup %5128  ;;  %v393_v41 = vadd.f32 %v7267_v59, %v5786_v43 }
0x1705   :  { %v3293_v13 = vmul.f32 %v5129_v48, %v3292_v56 }
0x1707   :  { %v6945_v23 = vadd.f32 %v5127_v53, %v3293_v13  ;;  %v7270_v13 = vld [vmem:[#allocation65_spill] sm:$0xff] }
0x1709   :  { %v3301_v9 = vpack.c.bf16 %v6945_v23, %v6945_v23 }
0x170b   :  { %3335 = vmatmul.mubr.bf16.vlgmr.msra.gmra.mxu0 %v3301_v9  ;;  %4810 = vmatmul.mubr.bf16.vlgmr.msra.gmra.mxu1 %v3301_v9 }
0x170c   :  { %3412 = vmatpush1.bf16.msra.mxu0 %v5296_v14  ;;  %4814 = vmatpush3.bf16.msra.mxu1 %v5594_v36 }
0x170d   :  { %3413 = vmatprep.subr.bf16.mxu0 %v5303_v16  ;;  %4815 = vmatprep.subr.bf16.mxu1 %v7174_v15 }
0x170e   :  { %3443 = vmatprep.mubr.bf16.mxu0 %v7175_v7  ;;  %4829 = vmatprep.mubr.msk.bf16.mxu1 %vm5232_vm2, %v7174_v15 }
0x1710   :  { %3414 = vmatpush1.bf16.msra.mxu0 %v5316_v22  ;;  %4816 = vmatpush3.bf16.msra.mxu1 %v5603_v38 }
0x1711   :  { %3415 = vmatprep.subr.bf16.mxu0 %v5324_v24  ;;  %4817 = vmatprep.subr.bf16.mxu1 %v7174_v15 }
0x1714   :  { %3416 = vmatpush1.bf16.msra.mxu0 %v5336_v30  ;;  %4818 = vmatpush3.bf16.msra.mxu1 %v5613_v44 }
0x1715   :  { %3417 = vmatprep.subr.bf16.mxu0 %v5344_v32  ;;  %4819 = vmatprep.subr.bf16.mxu1 %v7174_v15 }
0x1718   :  { %3418 = vmatpush1.bf16.msra.mxu0 %v5361_v39  ;;  %4820 = vmatpush3.bf16.msra.mxu1 %v5620_v47 }
0x1719   :  { %3419 = vmatprep.subr.bf16.mxu0 %v5367_v42  ;;  %4821 = vmatprep.subr.bf16.mxu1 %v7174_v15 }
0x171c   :  { %3420 = vmatpush1.bf16.msra.mxu0 %v5393_v51  ;;  %4822 = vmatpush3.bf16.msra.mxu1 %v5627_v50 }
0x171d   :  { %3421 = vmatprep.subr.bf16.mxu0 %v5404_v54  ;;  %4823 = vmatprep.subr.bf16.mxu1 %v7174_v15 }
0x1720   :  { %3422 = vmatpush1.bf16.msra.mxu0 %v5422_v62  ;;  %4824 = vmatpush3.bf16.msra.mxu1 %v5634_v55 }
0x1721   :  { %3423 = vmatprep.subr.bf16.mxu0 %v5430_v1  ;;  %4825 = vmatprep.subr.bf16.mxu1 %v7174_v15 }
0x1724   :  { %3424 = vmatpush1.bf16.msra.mxu0 %v5444_v8  ;;  %4826 = vmatpush3.bf16.msra.mxu1 %v5641_v58 }
0x1725   :  { %3425 = vmatprep.subr.bf16.mxu0 %v5452_v3  ;;  %4827 = vmatprep.subr.bf16.mxu1 %v7174_v15 }
0x1728   :  { %3426 = vmatpush1.bf16.msra.mxu0 %v5469_v18  ;;  %4828 = vmatpush3.bf16.msra.mxu1 %v5648_v61 }
0x1729   :  { %3520 = vmatprep.subr.bf16.mxu0 %v5289_v12  ;;  %4833 = vmatprep.subr.bf16.mxu1 %v7174_v15 }
0x17cb   :  { %v3336_v10 = vpop.f32.mrf.mxu0  ;;  %v3377_v40 = vpop.f32.mrf.mxu1 }
0x17cc   :  { %v3383_v46 = vadd.f32 %v3336_v10, %v393_v41  ;;  %v3397_v25 = vadd.f32 %v6991_v17, %v3377_v40 }
0x17cd   :  { %v3338_v52 = vpop.f32.mrf.mxu0  ;;  %v4811_v0 = vpop.f32.mrf.mxu1 }
0x17ce   :  { %v3989_v4 = vmul.f32 -1.442695, %v3383_v46  ;;  %v3384_v21 = vadd.f32 %v3338_v52, %v395_v19 }
0x17cf   :  { %v3340_v5 = vpop.f32.mrf.mxu0  ;;  %v3380_v11 = vpop.f32.mrf.mxu1 }
0x17d0   :  { %5130 = vpow2.f32 %v3989_v4  ;;  %v3990_v60 = vmul.f32 -1.442695, %v3384_v21  ;;  %v7271_v11 = vld [vmem:[#allocation66_spill] sm:$0xff] }
0x17d1   :  { %v3341_v27 = vpop.f32.mrf.mxu0  ;;  %v4812_v35 = vpop.f32.mrf.mxu1 }
0x17d2   :  { %5132 = vpow2.f32 %v3990_v60  ;;  %v401_v27 = vadd.f32 %v7271_v11, %v5798_v29 }
0x17dd   :  { %v5131_v20 = vpop.eup %5130 }
0x17de   :  { %v3391_v49 = vadd.f32 1.0, %v5131_v20 }
0x17df   :  { %v5133_v37 = vpop.eup %5132 }
0x17e0   :  { %5134 = vrcp.f32 %v3391_v49  ;;  %v3392_v31 = vadd.f32 1.0, %v5133_v37 }
0x17ed   :  { %v5135_v34 = vpop.eup %5134 }
0x17ee   :  { %v3398_v2 = vmul.f32 %v5135_v34, %v3397_v25  ;;  %v7272_v25 = vld [vmem:[#allocation28_spill] sm:$0xff] }
0x17f0   :  { %v3399_v45 = vadd.f32 %v3398_v2, %v7269_v57 }
0x17f2   :  { %5136 = vtanh.f32 %v3399_v45 }
0x17f3   :  { %5138 = vrcp.f32 %v3392_v31 }
0x17ff   :  { %v5137_v28 = vpop.eup %5136 }
0x1800   :  { %v3401_v63 = vsub.f32 %v6945_v23, %v5137_v28  ;;  %v5139_v26 = vpop.eup %5138  ;;  %v399_v23 = vadd.f32 %v7270_v13, %v5786_v43 }
0x1802   :  { %v3402_v53 = vmul.f32 %v5139_v26, %v3401_v63 }
0x1804   :  { %v6996_v56 = vadd.f32 %v5137_v28, %v3402_v53  ;;  %v7273_v53 = vld [vmem:[#allocation67_spill] sm:$0xff] }
0x1806   :  { %v3410_v48 = vpack.c.bf16 %v6996_v56, %v6996_v56 }
0x1808   :  { %3444 = vmatmul.mubr.bf16.vlgmr.msra.gmra.mxu0 %v3410_v48  ;;  %4830 = vmatmul.mubr.bf16.vlgmr.msra.gmra.mxu1 %v3410_v48 }
0x1809   :  { %3521 = vmatpush1.bf16.msra.mxu0 %v5296_v14  ;;  %4834 = vmatpush3.bf16.msra.mxu1 %v5594_v36 }
0x180a   :  { %3522 = vmatprep.subr.bf16.mxu0 %v5303_v16  ;;  %4835 = vmatprep.subr.bf16.mxu1 %v7174_v15 }
0x180b   :  { %3552 = vmatprep.mubr.bf16.mxu0 %v7175_v7  ;;  %4849 = vmatprep.mubr.msk.bf16.mxu1 %vm5232_vm2, %v7174_v15 }
0x180d   :  { %3523 = vmatpush1.bf16.msra.mxu0 %v5316_v22  ;;  %4836 = vmatpush3.bf16.msra.mxu1 %v5603_v38 }
0x180e   :  { %3524 = vmatprep.subr.bf16.mxu0 %v5324_v24  ;;  %4837 = vmatprep.subr.bf16.mxu1 %v7174_v15 }
0x1811   :  { %3525 = vmatpush1.bf16.msra.mxu0 %v5336_v30  ;;  %4838 = vmatpush3.bf16.msra.mxu1 %v5613_v44 }
0x1812   :  { %3526 = vmatprep.subr.bf16.mxu0 %v5344_v32  ;;  %4839 = vmatprep.subr.bf16.mxu1 %v7174_v15 }
0x1815   :  { %3527 = vmatpush1.bf16.msra.mxu0 %v5361_v39  ;;  %4840 = vmatpush3.bf16.msra.mxu1 %v5620_v47 }
0x1816   :  { %3528 = vmatprep.subr.bf16.mxu0 %v5367_v42  ;;  %4841 = vmatprep.subr.bf16.mxu1 %v7174_v15 }
0x1819   :  { %3529 = vmatpush1.bf16.msra.mxu0 %v5393_v51  ;;  %4842 = vmatpush3.bf16.msra.mxu1 %v5627_v50 }
0x181a   :  { %3530 = vmatprep.subr.bf16.mxu0 %v5404_v54  ;;  %4843 = vmatprep.subr.bf16.mxu1 %v7174_v15 }
0x181d   :  { %3531 = vmatpush1.bf16.msra.mxu0 %v5422_v62  ;;  %4844 = vmatpush3.bf16.msra.mxu1 %v5634_v55 }
0x181e   :  { %3532 = vmatprep.subr.bf16.mxu0 %v5430_v1  ;;  %4845 = vmatprep.subr.bf16.mxu1 %v7174_v15 }
0x1821   :  { %3533 = vmatpush1.bf16.msra.mxu0 %v5444_v8  ;;  %4846 = vmatpush3.bf16.msra.mxu1 %v5641_v58 }
0x1822   :  { %3534 = vmatprep.subr.bf16.mxu0 %v5452_v3  ;;  %4847 = vmatprep.subr.bf16.mxu1 %v7174_v15 }
0x1825   :  { %3535 = vmatpush1.bf16.msra.mxu0 %v5469_v18  ;;  %4848 = vmatpush3.bf16.msra.mxu1 %v5648_v61 }
0x1826   :  { %3629 = vmatprep.subr.bf16.mxu0 %v5289_v12  ;;  %4853 = vmatprep.subr.bf16.mxu1 %v7174_v15 }
0x18c8   :  { %v3445_v9 = vpop.f32.mrf.mxu0  ;;  %v3486_v59 = vpop.f32.mrf.mxu1 }
0x18c9   :  { %v3492_v41 = vadd.f32 %v3445_v9, %v399_v23  ;;  %v3506_v20 = vadd.f32 %v6991_v17, %v3486_v59 }
0x18ca   :  { %v3447_v10 = vpop.f32.mrf.mxu0  ;;  %v4831_v40 = vpop.f32.mrf.mxu1 }
0x18cb   :  { %v3991_v46 = vmul.f32 -1.442695, %v3492_v41  ;;  %v3493_v35 = vadd.f32 %v3447_v10, %v401_v27 }
0x18cc   :  { %v3449_v52 = vpop.f32.mrf.mxu0  ;;  %v3489_v0 = vpop.f32.mrf.mxu1 }
0x18cd   :  { %5140 = vpow2.f32 %v3991_v46  ;;  %v3992_v33 = vmul.f32 -1.442695, %v3493_v35  ;;  %v7274_v0 = vld [vmem:[#allocation68_spill] sm:$0xff] }
0x18ce   :  { %v3450_v4 = vpop.f32.mrf.mxu0  ;;  %v4832_v5 = vpop.f32.mrf.mxu1 }
0x18cf   :  { %5142 = vpow2.f32 %v3992_v33  ;;  %v407_v4 = vadd.f32 %v7274_v0, %v5798_v29 }
0x18da   :  { %v5141_v19 = vpop.eup %5140 }
0x18db   :  { %v3500_v21 = vadd.f32 1.0, %v5141_v19 }
0x18dc   :  { %v5143_v60 = vpop.eup %5142 }
0x18dd   :  { %5144 = vrcp.f32 %v3500_v21  ;;  %v3501_v2 = vadd.f32 1.0, %v5143_v60  ;;  %v7275_v60 = vld [vmem:[#allocation27_spill] sm:$0xff] }
0x18ea   :  { %v5145_v49 = vpop.eup %5144 }
0x18eb   :  { %v3507_v37 = vmul.f32 %v5145_v49, %v3506_v20 }
0x18ed   :  { %v3508_v34 = vadd.f32 %v3507_v37, %v7272_v25 }
0x18ef   :  { %5146 = vtanh.f32 %v3508_v34 }
0x18f0   :  { %5148 = vrcp.f32 %v3501_v2 }
0x18fc   :  { %v5147_v57 = vpop.eup %5146 }
0x18fd   :  { %v3510_v45 = vsub.f32 %v6996_v56, %v5147_v57  ;;  %v5149_v31 = vpop.eup %5148  ;;  %v405_v56 = vadd.f32 %v7273_v53, %v5786_v43 }
0x18ff   :  { %v3511_v28 = vmul.f32 %v5149_v31, %v3510_v45 }
0x1901   :  { %v7042_v63 = vadd.f32 %v5147_v57, %v3511_v28 }
0x1903   :  { %v3519_v26 = vpack.c.bf16 %v7042_v63, %v7042_v63 }
0x1905   :  { %3553 = vmatmul.mubr.bf16.vlgmr.msra.gmra.mxu0 %v3519_v26  ;;  %4850 = vmatmul.mubr.bf16.vlgmr.msra.gmra.mxu1 %v3519_v26 }
0x1906   :  { %3630 = vmatpush1.bf16.msra.mxu0 %v5296_v14  ;;  %4854 = vmatpush3.bf16.msra.mxu1 %v5594_v36 }
0x1907   :  { %3631 = vmatprep.subr.bf16.mxu0 %v5303_v16  ;;  %4855 = vmatprep.subr.bf16.mxu1 %v7174_v15 }
0x1908   :  { %3661 = vmatprep.mubr.bf16.mxu0 %v7175_v7  ;;  %4869 = vmatprep.mubr.msk.bf16.mxu1 %vm5232_vm2, %v7174_v15 }
0x190a   :  { %3632 = vmatpush1.bf16.msra.mxu0 %v5316_v22  ;;  %4856 = vmatpush3.bf16.msra.mxu1 %v5603_v38 }
0x190b   :  { %3633 = vmatprep.subr.bf16.mxu0 %v5324_v24  ;;  %4857 = vmatprep.subr.bf16.mxu1 %v7174_v15 }
0x190e   :  { %3634 = vmatpush1.bf16.msra.mxu0 %v5336_v30  ;;  %4858 = vmatpush3.bf16.msra.mxu1 %v5613_v44 }
0x190f   :  { %3635 = vmatprep.subr.bf16.mxu0 %v5344_v32  ;;  %4859 = vmatprep.subr.bf16.mxu1 %v7174_v15 }
0x1912   :  { %3636 = vmatpush1.bf16.msra.mxu0 %v5361_v39  ;;  %4860 = vmatpush3.bf16.msra.mxu1 %v5620_v47 }
0x1913   :  { %3637 = vmatprep.subr.bf16.mxu0 %v5367_v42  ;;  %4861 = vmatprep.subr.bf16.mxu1 %v7174_v15 }
0x1916   :  { %3638 = vmatpush1.bf16.msra.mxu0 %v5393_v51  ;;  %4862 = vmatpush3.bf16.msra.mxu1 %v5627_v50 }
0x1917   :  { %3639 = vmatprep.subr.bf16.mxu0 %v5404_v54  ;;  %4863 = vmatprep.subr.bf16.mxu1 %v7174_v15 }
0x191a   :  { %3640 = vmatpush1.bf16.msra.mxu0 %v5422_v62  ;;  %4864 = vmatpush3.bf16.msra.mxu1 %v5634_v55 }
0x191b   :  { %3641 = vmatprep.subr.bf16.mxu0 %v5430_v1  ;;  %4865 = vmatprep.subr.bf16.mxu1 %v7174_v15 }
0x191e   :  { %3642 = vmatpush1.bf16.msra.mxu0 %v5444_v8  ;;  %4866 = vmatpush3.bf16.msra.mxu1 %v5641_v58 }
0x191f   :  { %3643 = vmatprep.subr.bf16.mxu0 %v5452_v3  ;;  %4867 = vmatprep.subr.bf16.mxu1 %v7174_v15 }
0x1922   :  { %3644 = vmatpush1.bf16.msra.mxu0 %v5469_v18  ;;  %4868 = vmatpush3.bf16.msra.mxu1 %v5648_v61 }
0x1923   :  { %3738 = vmatprep.subr.bf16.mxu0 %v5289_v12  ;;  %4873 = vmatprep.subr.bf16.mxu1 %v7174_v15 }
0x19c5   :  { %v3554_v48 = vpop.f32.mrf.mxu0  ;;  %v3595_v13 = vpop.f32.mrf.mxu1 }
0x19c6   :  { %v3601_v23 = vadd.f32 %v3554_v48, %v405_v56  ;;  %v3615_v33 = vadd.f32 %v6991_v17, %v3595_v13  ;;  %v7279_v13 = vld [vmem:[#allocation71_spill] sm:$0xff] }
0x19c7   :  { %v3556_v9 = vpop.f32.mrf.mxu0  ;;  %v4851_v59 = vpop.f32.mrf.mxu1 }
0x19c8   :  { %v3993_v41 = vmul.f32 -1.442695, %v3601_v23  ;;  %v3602_v12 = vadd.f32 %v3556_v9, %v407_v4  ;;  %v417_v23 = vadd.f32 %v7279_v13, %v5786_v43 }
0x19c9   :  { %v3558_v10 = vpop.f32.mrf.mxu0  ;;  %v3598_v40 = vpop.f32.mrf.mxu1 }
0x19ca   :  { %5150 = vpow2.f32 %v3993_v41  ;;  %v3994_v5 = vmul.f32 -1.442695, %v3602_v12  ;;  %v7280_v12 = vld [vmem:[#allocation72_spill] sm:$0xff] }
0x19cb   :  { %v3559_v46 = vpop.f32.mrf.mxu0  ;;  %v4852_v52 = vpop.f32.mrf.mxu1 }
0x19cc   :  { %5152 = vpow2.f32 %v3994_v5  ;;  %v419_v5 = vadd.f32 %v7280_v12, %v5798_v29 }
0x19d7   :  { %v5151_v11 = vpop.eup %5150 }
0x19d8   :  { %v3609_v27 = vadd.f32 1.0, %v5151_v11 }
0x19d9   :  { %v5153_v35 = vpop.eup %5152 }
0x19da   :  { %5154 = vrcp.f32 %v3609_v27  ;;  %v3610_v49 = vadd.f32 1.0, %v5153_v35 }
0x19e7   :  { %v5155_v19 = vpop.eup %5154 }
0x19e8   :  { %v3616_v21 = vmul.f32 %v5155_v19, %v3615_v33 }
0x19ea   :  { %v3617_v20 = vadd.f32 %v3616_v21, %v7275_v60 }
0x19ec   :  { %5156 = vtanh.f32 %v3617_v20  ;;  %v7281_v20 = vld [vmem:[#allocation29_spill] sm:$0xff] }
0x19ed   :  { %5158 = vrcp.f32 %v3610_v49 }
0x19f9   :  { %v5157_v37 = vpop.eup %5156 }
0x19fa   :  { %v3619_v25 = vsub.f32 %v7042_v63, %v5157_v37  ;;  %v5159_v34 = vpop.eup %5158 }
0x19fc   :  { %v3620_v2 = vmul.f32 %v5159_v34, %v3619_v25 }
0x19fe   :  { %v7088_v57 = vadd.f32 %v5157_v37, %v3620_v2 }
0x1a00   :  { %v3628_v45 = vpack.c.bf16 %v7088_v57, %v7088_v57 }
0x1a02   :  { %3662 = vmatmul.mubr.bf16.vlgmr.msra.gmra.mxu0 %v3628_v45  ;;  %4870 = vmatmul.mubr.bf16.vlgmr.msra.gmra.mxu1 %v3628_v45 }
0x1a03   :  { %3739 = vmatpush1.bf16.msra.mxu0 %v5296_v14  ;;  %4874 = vmatpush3.bf16.msra.mxu1 %v5594_v36  ;;  %v7276_v14 = vld [vmem:[#allocation69_spill] sm:$0xff] }
0x1a04   :  { %3740 = vmatprep.subr.bf16.mxu0 %v5303_v16  ;;  %4875 = vmatprep.subr.bf16.mxu1 %v7174_v15  ;;  %v411_v16 = vadd.f32 %v7276_v14, %v5786_v43 }
0x1a05   :  { %3770 = vmatprep.mubr.bf16.mxu0 %v7175_v7  ;;  %4889 = vmatprep.mubr.msk.bf16.mxu1 %vm5232_vm2, %v7174_v15 }
0x1a07   :  { %3741 = vmatpush1.bf16.msra.mxu0 %v5316_v22  ;;  %4876 = vmatpush3.bf16.msra.mxu1 %v5603_v38 }
0x1a08   :  { %3742 = vmatprep.subr.bf16.mxu0 %v5324_v24  ;;  %4877 = vmatprep.subr.bf16.mxu1 %v7174_v15 }
0x1a0b   :  { %3743 = vmatpush1.bf16.msra.mxu0 %v5336_v30  ;;  %4878 = vmatpush3.bf16.msra.mxu1 %v5613_v44 }
0x1a0c   :  { %3744 = vmatprep.subr.bf16.mxu0 %v5344_v32  ;;  %4879 = vmatprep.subr.bf16.mxu1 %v7174_v15 }
0x1a0f   :  { %3745 = vmatpush1.bf16.msra.mxu0 %v5361_v39  ;;  %4880 = vmatpush3.bf16.msra.mxu1 %v5620_v47 }
0x1a10   :  { %3746 = vmatprep.subr.bf16.mxu0 %v5367_v42  ;;  %4881 = vmatprep.subr.bf16.mxu1 %v7174_v15 }
0x1a13   :  { %3747 = vmatpush1.bf16.msra.mxu0 %v5393_v51  ;;  %4882 = vmatpush3.bf16.msra.mxu1 %v5627_v50 }
0x1a14   :  { %3748 = vmatprep.subr.bf16.mxu0 %v5404_v54  ;;  %4883 = vmatprep.subr.bf16.mxu1 %v7174_v15 }
0x1a17   :  { %3749 = vmatpush1.bf16.msra.mxu0 %v5422_v62  ;;  %4884 = vmatpush3.bf16.msra.mxu1 %v5634_v55 }
0x1a18   :  { %3750 = vmatprep.subr.bf16.mxu0 %v5430_v1  ;;  %4885 = vmatprep.subr.bf16.mxu1 %v7174_v15 }
0x1a1b   :  { %3751 = vmatpush1.bf16.msra.mxu0 %v5444_v8  ;;  %4886 = vmatpush3.bf16.msra.mxu1 %v5641_v58  ;;  %v7277_v8 = vld [vmem:[#allocation70_spill] sm:$0xff] }
0x1a1c   :  { %3752 = vmatprep.subr.bf16.mxu0 %v5452_v3  ;;  %4887 = vmatprep.subr.bf16.mxu1 %v7174_v15  ;;  %v413_v3 = vadd.f32 %v7277_v8, %v5798_v29  ;;  %v7278_v58 = vld [vmem:[#allocation30_spill] sm:$0xff] }
0x1a1f   :  { %3753 = vmatpush1.bf16.msra.mxu0 %v5469_v18  ;;  %4888 = vmatpush3.bf16.msra.mxu1 %v5648_v61  ;;  %v618_v61 = vadd.f32 %v7278_v58, %v5715_v6 }
0x1ac2   :  { %v3663_v22 = vpop.f32.mrf.mxu0  ;;  %v3704_v24 = vpop.f32.mrf.mxu1 }
0x1ac3   :  { %v3710_v30 = vadd.f32 %v3663_v22, %v411_v16  ;;  %v3724_v50 = vadd.f32 %v6991_v17, %v3704_v24 }
0x1ac4   :  { %v3665_v32 = vpop.f32.mrf.mxu0  ;;  %v4871_v39 = vpop.f32.mrf.mxu1 }
0x1ac5   :  { %v3995_v42 = vmul.f32 -1.442695, %v3710_v30  ;;  %v3711_v18 = vadd.f32 %v3665_v32, %v413_v3 }
0x1ac6   :  { %v3667_v51 = vpop.f32.mrf.mxu0  ;;  %v3707_v54 = vpop.f32.mrf.mxu1 }
0x1ac7   :  { %5160 = vpow2.f32 %v3995_v42  ;;  %v3996_v36 = vmul.f32 -1.442695, %v3711_v18 }
0x1ac8   :  { %v3668_v62 = vpop.f32.mrf.mxu0  ;;  %v4872_v1 = vpop.f32.mrf.mxu1 }
0x1ac9   :  { %5162 = vpow2.f32 %v3996_v36 }
0x1ad4   :  { %v5161_v38 = vpop.eup %5160 }
0x1ad5   :  { %v3718_v44 = vadd.f32 1.0, %v5161_v38 }
0x1ad6   :  { %v5163_v47 = vpop.eup %5162 }
0x1ad7   :  { %5164 = vrcp.f32 %v3718_v44  ;;  %v3719_v31 = vadd.f32 1.0, %v5163_v47 }
0x1ae4   :  { %v5165_v55 = vpop.eup %5164 }
0x1ae5   :  { %v3725_v15 = vmul.f32 %v5165_v55, %v3724_v50 }
0x1ae7   :  { %v3726_v7 = vadd.f32 %v3725_v15, %v618_v61 }
0x1ae9   :  { %5166 = vtanh.f32 %v3726_v7 }
0x1aea   :  { %5168 = vrcp.f32 %v3719_v31 }
0x1af6   :  { %v5167_v28 = vpop.eup %5166 }
0x1af7   :  { %v3728_v63 = vsub.f32 %v7088_v57, %v5167_v28  ;;  %v5169_v26 = vpop.eup %5168 }
0x1af9   :  { %v3729_v53 = vmul.f32 %v5169_v26, %v3728_v63 }
0x1afb   :  { %v3730_v56 = vadd.f32 %v5167_v28, %v3729_v53 }
0x1afd   :  { %v3737_v48 = vpack.c.bf16 %v3730_v56, %v3730_v56 }
0x1aff   :  { %3771 = vmatmul.mubr.bf16.vlgmr.msra.gmra.mxu0 %v3737_v48  ;;  %4890 = vmatmul.mubr.bf16.vlgmr.msra.gmra.mxu1 %v3737_v48 }
0x1bbf   :  { %v3772_v9 = vpop.f32.mrf.mxu0  ;;  %v3813_v59 = vpop.f32.mrf.mxu1 }
0x1bc0   :  { %v3819_v6 = vadd.f32 %v3772_v9, %v417_v23  ;;  %v3833_v19 = vadd.f32 %v6991_v17, %v3813_v59 }
0x1bc1   :  { %v3774_v41 = vpop.f32.mrf.mxu0  ;;  %v4891_v10 = vpop.f32.mrf.mxu1 }
0x1bc2   :  { %v3997_v40 = vmul.f32 -1.442695, %v3819_v6  ;;  %v3820_v11 = vadd.f32 %v3774_v41, %v419_v5 }
0x1bc3   :  { %v3776_v46 = vpop.f32.mrf.mxu0  ;;  %v3816_v52 = vpop.f32.mrf.mxu1 }
0x1bc4   :  { %5170 = vpow2.f32 %v3997_v40  ;;  %v3998_v27 = vmul.f32 -1.442695, %v3820_v11 }
0x1bc5   :  { %v3777_v0 = vpop.f32.mrf.mxu0  ;;  %v4892_v4 = vpop.f32.mrf.mxu1 }
0x1bc6   :  { %5172 = vpow2.f32 %v3998_v27 }
0x1bd1   :  { %v5171_v35 = vpop.eup %5170 }
0x1bd2   :  { %v3827_v33 = vadd.f32 1.0, %v5171_v35 }
0x1bd3   :  { %v5173_v43 = vpop.eup %5172 }
0x1bd4   :  { %5174 = vrcp.f32 %v3827_v33  ;;  %v3828_v37 = vadd.f32 1.0, %v5173_v43 }
0x1be1   :  { %v5175_v21 = vpop.eup %5174 }
0x1be2   :  { %v3834_v60 = vmul.f32 %v5175_v21, %v3833_v19 }
0x1be4   :  { %v3835_v49 = vadd.f32 %v3834_v60, %v7281_v20 }
0x1be6   :  { %5176 = vtanh.f32 %v3835_v49 }
0x1be7   :  { %5178 = vrcp.f32 %v3828_v37 }
0x1bf3   :  { %v5177_v25 = vpop.eup %5176 }
0x1bf4   :  { %v3837_v34 = vsub.f32 %v3730_v56, %v5177_v25  ;;  %v5179_v2 = vpop.eup %5178 }
0x1bf6   :  { %v3838_v29 = vmul.f32 %v5179_v2, %v3837_v34 }
0x1bf8   :  { %v3839_v57 = vadd.f32 %v5177_v25, %v3838_v29 }
0x1bfa   :  { %3840 = vst [vmem:[#allocation6] sm:$0xff] %v3839_v57 }
0x1bfb   :  { %5214 = shalt.err (!%p5211_p9)
}
0x1bfc   :  { %3850 = dma.vmem_to_hbm [thread:$0]  %s3848_s7, 128, %s7147_s5, [#allocation5]  }
0x1bfd   :  { %5225 = dma.done.wait [#allocation5], 128  }
0x1bfe   :  { %5226 = vsyncadd [#allocation5], 4294967168 }
0x1bff   :  { %3854 = vsyncpa [#allocation4], 1 }
0x1c00   :  { %3855 = vsyncpa [#allocation5], 1 }

</bundles_post_ra>
